<compile_context>
chip_gen: v6e
topology: v6e:2x2x1
jax: 0.10.0
libtpu: 0.0.40
codegen_flags: <defaults>
</compile_context>

<pallas_src>
import jax
import jax.numpy as jnp
from jax import lax
from jax.experimental import pallas as pl
from jax.experimental.pallas import tpu as pltpu

# ---------------- configuration ----------------
C_IN = 16
C_OUT = 32
PROJ_RATIO = 4
C_RED = C_IN // PROJ_RATIO          # reduced_depth = in_channels / projection_ratio = 4
N, H, W = 2, 16, 16
HW = H * W
K_TAPS = 5
EPS = 1e-5


# ---------------- Pallas kernel ----------------
def asneck_kernel(x_ref, w1_ref, w21_ref, w22_ref, w3_ref, t1_ref, t2_ref,
                  alpha_ref, o_ref):
    a1 = alpha_ref[0]
    a2 = alpha_ref[1]
    a3 = alpha_ref[2]

    x = x_ref[0]                                      # (HW, C_IN)
    t1 = t1_ref[...]                                  # (1, C_RED)

    # ---- conv1: 1x1 (C_IN -> C_RED), BN1 scale folded into weights; +shift; PReLU1 ----
    y = jnp.dot(x, w1_ref[...], preferred_element_type=jnp.float32) + t1
    y = jnp.where(y > 0, y, a1 * y)                   # (HW, C_RED)

    # ---- conv21: (1,5) conv, padding (0,2) -> single im2col matmul (K = 5*C_RED) ----
    y_hw = y.reshape(H, W, C_RED)
    zw = jnp.zeros((H, 2, C_RED), jnp.float32)
    pw = jnp.concatenate([zw, y_hw, zw], axis=1)      # (H, W+4, C_RED)
    taps = jnp.concatenate([pw[:, k:k + W, :] for k in range(K_TAPS)], axis=2)
    y = jnp.dot(taps.reshape(HW, K_TAPS * C_RED), w21_ref[...],
                preferred_element_type=jnp.float32)   # (HW, C_RED)

    # ---- conv22: (5,1) conv, padding (2,0) -> single im2col matmul; BN1 folded; PReLU2 ----
    y_hw = y.reshape(H, W, C_RED)
    zh = jnp.zeros((2, W, C_RED), jnp.float32)
    ph = jnp.concatenate([zh, y_hw, zh], axis=0)      # (H+4, W, C_RED)
    taps = jnp.concatenate([ph[k:k + H, :, :] for k in range(K_TAPS)], axis=2)
    y = jnp.dot(taps.reshape(HW, K_TAPS * C_RED), w22_ref[...],
                preferred_element_type=jnp.float32) + t1
    y = jnp.where(y > 0, y, a2 * y)                   # (HW, C_RED)

    # ---- conv3: 1x1 (C_RED -> C_OUT), BN2 scale folded; +shift ----
    # Dropout2d: identity (inference).
    y = jnp.dot(y, w3_ref[...], preferred_element_type=jnp.float32) + t2_ref[...]

    # ---- residual add (in-kernel, zero-extended channels) + PReLU3 ----
    if C_OUT > C_IN:
        y = jnp.concatenate([y[:, :C_IN] + x, y[:, C_IN:]], axis=1)
    else:
        y = y + x
    o_ref[0] = jnp.where(y > 0, y, a3 * y)


# ---------------- wrapper ----------------
def fold_bn(gamma, beta, mean, var):
    s = gamma / jnp.sqrt(var + EPS)
    return s, beta - mean * s


def asneck_forward(x_nchw, p):
    # NCHW -> NHWC -> (N, H*W, C); flattening done here so the kernel never reshapes x.
    x = jnp.transpose(x_nchw, (0, 2, 3, 1)).reshape(N, HW, C_IN).astype(jnp.float32)

    s1, t1 = fold_bn(p['bn1_gamma'], p['bn1_beta'], p['bn1_mean'], p['bn1_var'])
    s2, t2 = fold_bn(p['bn2_gamma'], p['bn2_beta'], p['bn2_mean'], p['bn2_var'])

    # Fold BN scales into conv weights (shift-add stays in the kernel).
    w1s = p['w1'] * s1[None, :]                                   # (C_IN, C_RED)
    w21f = p['w21'].reshape(K_TAPS * C_RED, C_RED)                # (20, C_RED)
    w22f = (p['w22'] * s1[None, None, :]).reshape(K_TAPS * C_RED, C_RED)
    w3s = p['w3'] * s2[None, :]                                   # (C_RED, C_OUT)
    alphas = jnp.concatenate([p['alpha1'], p['alpha2'], p['alpha3']])   # (3,)

    grid_spec = pltpu.PrefetchScalarGridSpec(
        num_scalar_prefetch=0,
        grid=(N,),
        in_specs=[
            pl.BlockSpec((1, HW, C_IN), lambda n: (n, 0, 0)),
            pl.BlockSpec((C_IN, C_RED), lambda n: (0, 0)),
            pl.BlockSpec((K_TAPS * C_RED, C_RED), lambda n: (0, 0)),
            pl.BlockSpec((K_TAPS * C_RED, C_RED), lambda n: (0, 0)),
            pl.BlockSpec((C_RED, C_OUT), lambda n: (0, 0)),
            pl.BlockSpec((1, C_RED), lambda n: (0, 0)),
            pl.BlockSpec((1, C_OUT), lambda n: (0, 0)),
            pl.BlockSpec(memory_space=pltpu.MemorySpace.SMEM),
        ],
        out_specs=pl.BlockSpec((1, HW, C_OUT), lambda n: (n, 0, 0)),
    )

    out = pl.pallas_call(
        asneck_kernel,
        out_shape=jax.ShapeDtypeStruct((N, HW, C_OUT), jnp.float32),
        grid_spec=grid_spec,
        compiler_params=pltpu.CompilerParams(
            dimension_semantics=("parallel",)),   # 1 image per TensorCore on v7x
    )(x, w1s, w21f, w22f, w3s,
      t1.reshape(1, C_RED), t2.reshape(1, C_OUT), alphas)

    return jnp.transpose(out.reshape(N, H, W, C_OUT), (0, 3, 1, 2))   # -> NCHW


# ---------------- deterministic parameter init ----------------
def init_params(key):
    ks = jax.random.split(key, 12)
    return dict(
        # conv1 weight: torch (C_RED, C_IN, 1, 1) stored transposed as (C_IN, C_RED)
        w1=0.1 * jax.random.normal(ks[0], (C_IN, C_RED), jnp.float32),
        # conv21 weight: torch (C_RED, C_RED, 1, 5) stored as (kx, ci, co)
        w21=0.1 * jax.random.normal(ks[1], (K_TAPS, C_RED, C_RED), jnp.float32),
        # conv22 weight: torch (C_RED, C_RED, 5, 1) stored as (ky, ci, co)
        w22=0.1 * jax.random.normal(ks[2], (K_TAPS, C_RED, C_RED), jnp.float32),
        # conv3 weight: torch (C_OUT, C_RED, 1, 1) stored transposed as (C_RED, C_OUT)
        w3=0.1 * jax.random.normal(ks[3], (C_RED, C_OUT), jnp.float32),
        bn1_gamma=1.0 + 0.1 * jax.random.normal(ks[4], (C_RED,), jnp.float32),
        bn1_beta=0.1 * jax.random.normal(ks[5], (C_RED,), jnp.float32),
        bn1_mean=0.05 * jax.random.normal(ks[6], (C_RED,), jnp.float32),
        bn1_var=0.9 + 0.1 * jax.random.uniform(ks[7], (C_RED,), jnp.float32),
        bn2_gamma=1.0 + 0.1 * jax.random.normal(ks[8], (C_OUT,), jnp.float32),
        bn2_beta=0.1 * jax.random.normal(ks[9], (C_OUT,), jnp.float32),
        bn2_mean=0.05 * jax.random.normal(ks[10], (C_OUT,), jnp.float32),
        bn2_var=0.9 + 0.1 * jax.random.uniform(ks[11], (C_OUT,), jnp.float32),
        alpha1=jnp.array([0.25], jnp.float32),   # independent nn.PReLU() params
        alpha2=jnp.array([0.10], jnp.float32),
        alpha3=jnp.array([0.30], jnp.float32),
    )


# ---------------- pure-JAX reference (sanity check) ----------------
def ref_forward(x_nchw, p):
    x = jnp.transpose(x_nchw, (0, 2, 3, 1)).astype(jnp.float32)   # NHWC
    s1, t1 = fold_bn(p['bn1_gamma'], p['bn1_beta'], p['bn1_mean'], p['bn1_var'])
    s2, t2 = fold_bn(p['bn2_gamma'], p['bn2_beta'], p['bn2_mean'], p['bn2_var'])
    prelu = lambda v, a: jnp.where(v > 0, v, a * v)

    y = jnp.einsum('nhwi,ir->nhwr', x, p['w1'])
    y = prelu(y * s1 + t1, p['alpha1'][0])
    y = lax.conv_general_dilated(y, p['w21'][None, :, :, :], (1, 1),
                                 ((0, 0), (2, 2)),
                                 dimension_numbers=('NHWC', 'HWIO', 'NHWC'))
    y = lax.conv_general_dilated(y, p['w22'][:, None, :, :], (1, 1),
                                 ((2, 2), (0, 0)),
                                 dimension_numbers=('NHWC', 'HWIO', 'NHWC'))
    y = prelu(y * s1 + t1, p['alpha2'][0])
    y = jnp.einsum('nhwr,ro->nhwo', y, p['w3'])
    y = y * s2 + t2                                   # dropout: identity (inference)
    skip = jnp.pad(x, ((0, 0), (0, 0), (0, 0), (0, C_OUT - C_IN)))
    y = prelu(y + skip, p['alpha3'][0])
    return jnp.transpose(y, (0, 3, 1, 2))


if __name__ == "__main__":
    key = jax.random.PRNGKey(0)
    kx, kp = jax.random.split(key)
    x = jax.random.normal(kx, (N, C_IN, H, W), jnp.float32)   # NCHW, like the PyTorch module
    params = init_params(kp)

    out = jax.block_until_ready(asneck_forward(x, params))
    assert out.shape == (N, C_OUT, H, W)

    ref = ref_forward(x, params)
    max_err = float(jnp.max(jnp.abs(out - ref)))
    if max_err > 1e-2:
        raise AssertionError(f"Pallas kernel mismatch vs reference, max abs err = {max_err}")

    print("KERNEL_OK")
</pallas_src>

<mosaic_0001>
module attributes {stable_mosaic.version = 11 : i64} {
  func.func @asneck_kernel(%arg0: i32, %arg1: memref<1x256x16xf32, #tpu.memory_space<vmem>>, %arg2: memref<16x4xf32, #tpu.memory_space<vmem>>, %arg3: memref<20x4xf32, #tpu.memory_space<vmem>>, %arg4: memref<20x4xf32, #tpu.memory_space<vmem>>, %arg5: memref<4x32xf32, #tpu.memory_space<vmem>>, %arg6: memref<1x4xf32, #tpu.memory_space<vmem>>, %arg7: memref<1x32xf32, #tpu.memory_space<vmem>>, %arg8: memref<3xf32, #tpu.memory_space<smem>>, %arg9: memref<1x256x32xf32, #tpu.memory_space<vmem>>) attributes {dimension_semantics = [#tpu.dimension_semantics<parallel>], iteration_bounds = array<i64: 2>, scalar_prefetch = 0 : i64, scratch_operands = 0 : i64, tpu.core_type = #tpu.core_type<tc>, window_params = [{transform_indices = @transform_0, window_bounds = array<i64: 1, 256, 16>}, {pipeline_mode = #tpu.pipeline_mode<synchronous>, transform_indices = @transform_1, window_bounds = array<i64: 16, 4>}, {pipeline_mode = #tpu.pipeline_mode<synchronous>, transform_indices = @transform_2, window_bounds = array<i64: 20, 4>}, {pipeline_mode = #tpu.pipeline_mode<synchronous>, transform_indices = @transform_3, window_bounds = array<i64: 20, 4>}, {pipeline_mode = #tpu.pipeline_mode<synchronous>, transform_indices = @transform_4, window_bounds = array<i64: 4, 32>}, {pipeline_mode = #tpu.pipeline_mode<synchronous>, transform_indices = @transform_5, window_bounds = array<i64: 1, 4>}, {pipeline_mode = #tpu.pipeline_mode<synchronous>, transform_indices = @transform_6, window_bounds = array<i64: 1, 32>}, {transform_indices = @transform_7, window_bounds = array<i64: 3>}, {transform_indices = @transform_8, window_bounds = array<i64: 1, 256, 32>}]} {
    %c0 = arith.constant 0 : index
    %0 = memref.load %arg8[%c0] : memref<3xf32, #tpu.memory_space<smem>>
    %c1 = arith.constant 1 : index
    %1 = memref.load %arg8[%c1] : memref<3xf32, #tpu.memory_space<smem>>
    %c2 = arith.constant 2 : index
    %2 = memref.load %arg8[%c2] : memref<3xf32, #tpu.memory_space<smem>>
    %c0_0 = arith.constant 0 : index
    %c0_1 = arith.constant 0 : index
    %c0_2 = arith.constant 0 : index
    %3 = vector.load %arg1[%c0_0, %c0_1, %c0_2] : memref<1x256x16xf32, #tpu.memory_space<vmem>>, vector<1x256x16xf32>
    %4 = vector.shape_cast %3 : vector<1x256x16xf32> to vector<256x16xf32>
    %c0_3 = arith.constant 0 : index
    %c0_4 = arith.constant 0 : index
    %5 = vector.load %arg6[%c0_3, %c0_4] : memref<1x4xf32, #tpu.memory_space<vmem>>, vector<1x4xf32>
    %c0_5 = arith.constant 0 : index
    %c0_6 = arith.constant 0 : index
    %6 = vector.load %arg2[%c0_5, %c0_6] : memref<16x4xf32, #tpu.memory_space<vmem>>, vector<16x4xf32>
    %cst = arith.constant dense<0.000000e+00> : vector<256x4xf32>
    %7 = tpu.matmul %4, %6, %cst {dimension_numbers = #tpu.dot_dimension_numbers<[1], [0], [0], [1], [0, 0, 1, 1], [], []>} : vector<256x16xf32>, vector<16x4xf32>, vector<256x4xf32> -> vector<256x4xf32>
    %8 = vector.broadcast %5 : vector<1x4xf32> to vector<256x4xf32>
    %9 = arith.addf %7, %8 : vector<256x4xf32>
    %cst_7 = arith.constant 0.000000e+00 : f32
    %10 = vector.broadcast %cst_7 : f32 to vector<256x4xf32>
    %11 = arith.cmpf ogt, %9, %10 : vector<256x4xf32>
    %12 = vector.broadcast %0 : f32 to vector<256x4xf32>
    %13 = arith.mulf %12, %9 : vector<256x4xf32>
    %14 = arith.select %11, %9, %13 : vector<256x4xi1>, vector<256x4xf32>
    %15 = vector.shape_cast %14 : vector<256x4xf32> to vector<16x16x4xf32>
    %cst_8 = arith.constant 0.000000e+00 : f32
    %16 = vector.broadcast %cst_8 : f32 to vector<16x2x4xf32>
    %17 = tpu.concatenate %16, %15, %16 in 1 : vector<16x2x4xf32>, vector<16x16x4xf32>, vector<16x2x4xf32> -> vector<16x20x4xf32>
    %18 = vector.extract_strided_slice %17 {offsets = [0, 0, 0], sizes = [16, 16, 4], strides = [1, 1, 1]} : vector<16x20x4xf32> to vector<16x16x4xf32>
    %19 = vector.extract_strided_slice %17 {offsets = [0, 1, 0], sizes = [16, 16, 4], strides = [1, 1, 1]} : vector<16x20x4xf32> to vector<16x16x4xf32>
    %20 = vector.extract_strided_slice %17 {offsets = [0, 2, 0], sizes = [16, 16, 4], strides = [1, 1, 1]} : vector<16x20x4xf32> to vector<16x16x4xf32>
    %21 = vector.extract_strided_slice %17 {offsets = [0, 3, 0], sizes = [16, 16, 4], strides = [1, 1, 1]} : vector<16x20x4xf32> to vector<16x16x4xf32>
    %22 = vector.extract_strided_slice %17 {offsets = [0, 4, 0], sizes = [16, 16, 4], strides = [1, 1, 1]} : vector<16x20x4xf32> to vector<16x16x4xf32>
    %23 = tpu.concatenate %18, %19, %20, %21, %22 in 2 : vector<16x16x4xf32>, vector<16x16x4xf32>, vector<16x16x4xf32>, vector<16x16x4xf32>, vector<16x16x4xf32> -> vector<16x16x20xf32>
    %24 = vector.shape_cast %23 : vector<16x16x20xf32> to vector<256x20xf32>
    %c0_9 = arith.constant 0 : index
    %c0_10 = arith.constant 0 : index
    %25 = vector.load %arg3[%c0_9, %c0_10] : memref<20x4xf32, #tpu.memory_space<vmem>>, vector<20x4xf32>
    %cst_11 = arith.constant dense<0.000000e+00> : vector<256x4xf32>
    %26 = tpu.matmul %24, %25, %cst_11 {dimension_numbers = #tpu.dot_dimension_numbers<[1], [0], [0], [1], [0, 0, 1, 1], [], []>} : vector<256x20xf32>, vector<20x4xf32>, vector<256x4xf32> -> vector<256x4xf32>
    %27 = vector.shape_cast %26 : vector<256x4xf32> to vector<16x16x4xf32>
    %cst_12 = arith.constant 0.000000e+00 : f32
    %28 = vector.broadcast %cst_12 : f32 to vector<2x16x4xf32>
    %29 = tpu.concatenate %28, %27, %28 in 0 : vector<2x16x4xf32>, vector<16x16x4xf32>, vector<2x16x4xf32> -> vector<20x16x4xf32>
    %30 = vector.extract_strided_slice %29 {offsets = [0, 0, 0], sizes = [16, 16, 4], strides = [1, 1, 1]} : vector<20x16x4xf32> to vector<16x16x4xf32>
    %31 = vector.extract_strided_slice %29 {offsets = [1, 0, 0], sizes = [16, 16, 4], strides = [1, 1, 1]} : vector<20x16x4xf32> to vector<16x16x4xf32>
    %32 = vector.extract_strided_slice %29 {offsets = [2, 0, 0], sizes = [16, 16, 4], strides = [1, 1, 1]} : vector<20x16x4xf32> to vector<16x16x4xf32>
    %33 = vector.extract_strided_slice %29 {offsets = [3, 0, 0], sizes = [16, 16, 4], strides = [1, 1, 1]} : vector<20x16x4xf32> to vector<16x16x4xf32>
    %34 = vector.extract_strided_slice %29 {offsets = [4, 0, 0], sizes = [16, 16, 4], strides = [1, 1, 1]} : vector<20x16x4xf32> to vector<16x16x4xf32>
    %35 = tpu.concatenate %30, %31, %32, %33, %34 in 2 : vector<16x16x4xf32>, vector<16x16x4xf32>, vector<16x16x4xf32>, vector<16x16x4xf32>, vector<16x16x4xf32> -> vector<16x16x20xf32>
    %36 = vector.shape_cast %35 : vector<16x16x20xf32> to vector<256x20xf32>
    %c0_13 = arith.constant 0 : index
    %c0_14 = arith.constant 0 : index
    %37 = vector.load %arg4[%c0_13, %c0_14] : memref<20x4xf32, #tpu.memory_space<vmem>>, vector<20x4xf32>
    %cst_15 = arith.constant dense<0.000000e+00> : vector<256x4xf32>
    %38 = tpu.matmul %36, %37, %cst_15 {dimension_numbers = #tpu.dot_dimension_numbers<[1], [0], [0], [1], [0, 0, 1, 1], [], []>} : vector<256x20xf32>, vector<20x4xf32>, vector<256x4xf32> -> vector<256x4xf32>
    %39 = vector.broadcast %5 : vector<1x4xf32> to vector<256x4xf32>
    %40 = arith.addf %38, %39 : vector<256x4xf32>
    %cst_16 = arith.constant 0.000000e+00 : f32
    %41 = vector.broadcast %cst_16 : f32 to vector<256x4xf32>
    %42 = arith.cmpf ogt, %40, %41 : vector<256x4xf32>
    %43 = vector.broadcast %1 : f32 to vector<256x4xf32>
    %44 = arith.mulf %43, %40 : vector<256x4xf32>
    %45 = arith.select %42, %40, %44 : vector<256x4xi1>, vector<256x4xf32>
    %c0_17 = arith.constant 0 : index
    %c0_18 = arith.constant 0 : index
    %46 = vector.load %arg5[%c0_17, %c0_18] : memref<4x32xf32, #tpu.memory_space<vmem>>, vector<4x32xf32>
    %cst_19 = arith.constant dense<0.000000e+00> : vector<256x32xf32>
    %47 = tpu.matmul %45, %46, %cst_19 {dimension_numbers = #tpu.dot_dimension_numbers<[1], [0], [0], [1], [0, 0, 1, 1], [], []>} : vector<256x4xf32>, vector<4x32xf32>, vector<256x32xf32> -> vector<256x32xf32>
    %c0_20 = arith.constant 0 : index
    %c0_21 = arith.constant 0 : index
    %48 = vector.load %arg7[%c0_20, %c0_21] : memref<1x32xf32, #tpu.memory_space<vmem>>, vector<1x32xf32>
    %49 = vector.broadcast %48 : vector<1x32xf32> to vector<256x32xf32>
    %50 = arith.addf %47, %49 : vector<256x32xf32>
    %51 = vector.extract_strided_slice %50 {offsets = [0, 0], sizes = [256, 16], strides = [1, 1]} : vector<256x32xf32> to vector<256x16xf32>
    %52 = arith.addf %51, %4 : vector<256x16xf32>
    %53 = vector.extract_strided_slice %50 {offsets = [0, 16], sizes = [256, 16], strides = [1, 1]} : vector<256x32xf32> to vector<256x16xf32>
    %54 = tpu.concatenate %52, %53 in 1 : vector<256x16xf32>, vector<256x16xf32> -> vector<256x32xf32>
    %cst_22 = arith.constant 0.000000e+00 : f32
    %55 = vector.broadcast %cst_22 : f32 to vector<256x32xf32>
    %56 = arith.cmpf ogt, %54, %55 : vector<256x32xf32>
    %57 = vector.broadcast %2 : f32 to vector<256x32xf32>
    %58 = arith.mulf %57, %54 : vector<256x32xf32>
    %59 = arith.select %56, %54, %58 : vector<256x32xi1>, vector<256x32xf32>
    %c0_23 = arith.constant 0 : index
    %c0_24 = arith.constant 0 : index
    %c0_25 = arith.constant 0 : index
    %60 = vector.load %arg9[%c0_23, %c0_24, %c0_25] : memref<1x256x32xf32, #tpu.memory_space<vmem>>, vector<1x256x32xf32>
    %61 = vector.shape_cast %60 : vector<1x256x32xf32> to vector<256x32xf32>
    %62 = vector.shape_cast %59 : vector<256x32xf32> to vector<1x256x32xf32>
    tpu.vector_store %arg9[%c0_23, %c0_24, %c0_25], %62 {strides = array<i32>} : memref<1x256x32xf32, #tpu.memory_space<vmem>>, vector<1x256x32xf32>,
    return
  }
  func.func @transform_0(%arg0: i32) -> (i32, i32, i32) {
    %c0_i32 = arith.constant 0 : i32
    %c0_i32_0 = arith.constant 0 : i32
    %c0_i32_1 = arith.constant 0 : i32
    return %arg0, %c0_i32, %c0_i32_0 : i32, i32, i32
  }
  func.func @transform_1(%arg0: i32) -> (i32, i32) {
    %c0_i32 = arith.constant 0 : i32
    %c0_i32_0 = arith.constant 0 : i32
    %c0_i32_1 = arith.constant 0 : i32
    return %c0_i32, %c0_i32_0 : i32, i32
  }
  func.func @transform_2(%arg0: i32) -> (i32, i32) {
    %c0_i32 = arith.constant 0 : i32
    %c0_i32_0 = arith.constant 0 : i32
    %c0_i32_1 = arith.constant 0 : i32
    return %c0_i32, %c0_i32_0 : i32, i32
  }
  func.func @transform_3(%arg0: i32) -> (i32, i32) {
    %c0_i32 = arith.constant 0 : i32
    %c0_i32_0 = arith.constant 0 : i32
    %c0_i32_1 = arith.constant 0 : i32
    return %c0_i32, %c0_i32_0 : i32, i32
  }
  func.func @transform_4(%arg0: i32) -> (i32, i32) {
    %c0_i32 = arith.constant 0 : i32
    %c0_i32_0 = arith.constant 0 : i32
    %c0_i32_1 = arith.constant 0 : i32
    return %c0_i32, %c0_i32_0 : i32, i32
  }
  func.func @transform_5(%arg0: i32) -> (i32, i32) {
    %c0_i32 = arith.constant 0 : i32
    %c0_i32_0 = arith.constant 0 : i32
    %c0_i32_1 = arith.constant 0 : i32
    return %c0_i32, %c0_i32_0 : i32, i32
  }
  func.func @transform_6(%arg0: i32) -> (i32, i32) {
    %c0_i32 = arith.constant 0 : i32
    %c0_i32_0 = arith.constant 0 : i32
    %c0_i32_1 = arith.constant 0 : i32
    return %c0_i32, %c0_i32_0 : i32, i32
  }
  func.func @transform_7(%arg0: i32) -> i32 {
    %c0_i32 = arith.constant 0 : i32
    %c0_i32_0 = arith.constant 0 : i32
    return %c0_i32 : i32
  }
  func.func @transform_8(%arg0: i32) -> (i32, i32, i32) {
    %c0_i32 = arith.constant 0 : i32
    %c0_i32_0 = arith.constant 0 : i32
    %c0_i32_1 = arith.constant 0 : i32
    return %arg0, %c0_i32, %c0_i32_0 : i32, i32, i32
  }
}

</mosaic_0001>

<bundles_post_ra>
// kernel: tpu_custom_call.1
= control target key start
LH: loop header
LB: loop body
LE: loop exit
PB: predicated region body
PF: predicated region fallthrough
CT: control target
= control target key end

     0   :  { %13 = vsyncpa [#allocation3], 0  ;;  %s4322_s27 = smov 0   ;;  %s6142_s0 = inlined_call_operand.vmem [shape: f32[2,256,16], index: 0, kind: input, shape index: {}]   ;;  %s6143_s1 = inlined_call_operand.vmem [shape: f32[16,4], index: 1, kind: input, shape index: {}]   ;;  %s6144_s2 = inlined_call_operand.vmem [shape: f32[20,4], index: 2, kind: input, shape index: {}]   ;;  %s6145_s3 = inlined_call_operand.vmem [shape: f32[20,4], index: 3, kind: input, shape index: {}]   ;;  %s6146_s4 = inlined_call_operand.vmem [shape: f32[4,32], index: 4, kind: input, shape index: {}]   ;;  %s6147_s5 = inlined_call_operand.vmem [shape: f32[1,4], index: 5, kind: input, shape index: {}]   ;;  %s6148_s6 = inlined_call_operand.vmem [shape: f32[1,32], index: 6, kind: input, shape index: {}]   ;;  %s6149_s7 = inlined_call_operand.vmem [shape: f32[3], index: 7, kind: input, shape index: {}]   ;;  %s6150_s8 = inlined_call_operand.vmem [shape: f32[2,256,32], index: 8, kind: output, shape index: {}]  }
   0x1 LB: > { %s4328_s28 = sadd.s32 4294967295, %s4269_s27   ;;  %p3691_p0 = scmp.ge.s32.totalorder %s4269_s27, 1  ;;  %s4269_s27 = sphi %s4322_s27, %s19_s27  }
   0x2   : > { %p223_p1 = scmp.lt.s32.totalorder %s4269_s27, 3  ;;  %s254_s9 = sshll.u32 %s6149_s7, 4  ;;  %s255_s9 = int_to_ptr.vmem [resolvable:$true] %s254_s9 }
   0x3   : > { %p4194_p3 = scmp.eq.s32.totalorder %s4328_s28, 0  ;;  %s4244_s11 = scalar_lea.vmem %s255_s9, 16 }
   0x4   : > { %p4335_p2 = pnand %p3691_p0, %p223_p1  ;;  %p4245_p6 = scmp.ne.s32.totalorder %s255_s9, %s4244_s11 }
   0x5   : > { %p4252_p10 = scmp.lt.s32.totalorder %s255_s9, %s255_s9  ;;  %p4253_p11 = scmp.lt.s32.totalorder %s4244_s11, %s4244_s11 }
   0x6   : > { %p4190_p4 = pneg %p4335_p2 }
   0x7   : > { %p4254_p12 = por %p4253_p11, %p4252_p10 }
   0x8   : > { %p4191_p5 = pnand %p4194_p3, %p4190_p4 }
   0xa   : > { %p4246_p7 = pneg %p4191_p5 }
   0xc   : > { %p4247_p8 = pnand %p4246_p7, %p4245_p6 }
   0xe   : > { %p4248_p9 = pneg %p4247_p8 }
  0x10   : > { %p4255_p13 = pnand %p4254_p12, %p4248_p9 }
  0x12   : > { %4258 = shalt.err (!%p4255_p13)
}
  0x13   : > { %s4271_s12 = smov [#allocation2]   ;;  %275 = sbr.rel (%p4335_p2) target bundleno = 1346 (0x542), region = 52 }
  0x14   : > { %4193 = dma.vmem_to_smem (!%p4191_p5), %s255_s9, 16, %s4271_s12, [#allocation3]  }
  0x18   : > { %4264 = dma.done.wait (%p4194_p3), [#allocation3], 16  }
  0x19   : > { %4266 = vsyncadd (%p4194_p3), [#allocation3], 4294967280 }
  0x1a   : > { %281 = sfence }
  0x1b   : > { %v357_v0 = vld [vmem:[%s6143_s1 + $0x8] sm:$0xff]  ;;  %v356_v1 = vld [vmem:[%s6143_s1] sm:$0xff]  ;;  %p310_p0 = scmp.lt.s32.totalorder %s4328_s28, 1  ;;  %vm364_vm0 = vcmask 130048   ;;  %s320_s21 = sld [smem:[#allocation2]]  ;;  %vm815_vm4 = vcmask 1041408  }
  0x1c   : > { %3976 = vmatprep.subr.mxu0 %v357_v0  ;;  %v4435_v34 = vld [vmem:[%s6147_s5] ss:$0 sm:$0xff]  ;;  %vm1153_vm6 = vcmask 1045504   ;;  %vm976_vm7 = vcmask 1046528   ;;  %vm1507_vm8 = vcmask 1043456   ;;  %s4272_s30 = smov 8  }
  0x1d   : > { %3977 = vmatpush3.msra.mxu0 %v357_v0  ;;  %s6153_s28 = smov (!%p310_p0, %s4328_s28), 1  ;;  %v1817_v60 = vld [vmem:[%s6144_s2 + $0x10] sm:$0xf]  ;;  %s4273_s9 = smov 4   ;;  %vm1330_vm9 = vcmask 1044480  }
  0x1e   : > { %3978 = vmatprep.subr.mxu0 %v356_v1  ;;  %s3837_s17 = sshll.u32 %s6153_s28, 8  ;;  %4028 = vmatprep.subr.msk.mxu1 %vm1507_vm8, %v1817_v60  ;;  %s4274_s12 = smov 12  }
  0x1f   : > { %3979 = vmatpush3.msra.mxu0 %v356_v1  ;;  %s4366_s20 = scalar_lea.vmem %s6142_s0, %s3837_s17  ;;  %4029 = vmatpush3.msk.msra.mxu1 %vm1507_vm8, %v1817_v60  ;;  %s4275_s13 = smov 16  }
  0x20   : > { %v323_v2 = vld [vmem:[%s4366_s20] sm:$0xff]  ;;  %v324_v3 = vld [vmem:[%s4366_s20 + $0x8] sm:$0xff]  ;;  %v325_v4 = vld [vmem:[%s4366_s20 + $0x10] sm:$0xff]  ;;  %s3700_s26 = sld [smem:[#allocation2 + $0x1]]  ;;  %s5932_s14 = scalar_lea.vmem %s6150_s8, %s3837_s17 }
  0x21   : > { %3980 = vmatprep.mubr.msk.f32.mxu0 %vm364_vm0, %v323_v2  ;;  %v326_v5 = vld [vmem:[%s4366_s20 + $0x18] sm:$0xff]  ;;  %v327_v6 = vld [vmem:[%s4366_s20 + $0x20] sm:$0xff]  ;;  %v328_v7 = vld [vmem:[%s4366_s20 + $0x28] sm:$0xff]  ;;  %v4437_v36 = vstv %s320_s21 }
  0x22   : > { %3981 = vmatmul.mubr.msk.f32.vlgmr.msra.gmra.mxu0 %vm364_vm0, %v324_v3  ;;  %v329_v8 = vld [vmem:[%s4366_s20 + $0x30] sm:$0xff]  ;;  %v330_v9 = vld [vmem:[%s4366_s20 + $0x38] sm:$0xff]  ;;  %v331_v10 = vld [vmem:[%s4366_s20 + $0x40] sm:$0xff] }
  0x23   : > { %3983 = vmatprep.mubr.msk.f32.mxu0 %vm364_vm0, %v325_v4  ;;  %v332_v11 = vld [vmem:[%s4366_s20 + $0x48] sm:$0xff]  ;;  %v333_v12 = vld [vmem:[%s4366_s20 + $0x50] sm:$0xff]  ;;  %v334_v13 = vld [vmem:[%s4366_s20 + $0x58] sm:$0xff] }
  0x24   : > { %v335_v14 = vld [vmem:[%s4366_s20 + $0x60] sm:$0xff]  ;;  %v336_v15 = vld [vmem:[%s4366_s20 + $0x68] sm:$0xff]  ;;  %v337_v16 = vld [vmem:[%s4366_s20 + $0x70] sm:$0xff] }
  0x25   : > { %v338_v17 = vld [vmem:[%s4366_s20 + $0x78] sm:$0xff]  ;;  %v339_v18 = vld [vmem:[%s4366_s20 + $0x80] sm:$0xff]  ;;  %v340_v19 = vld [vmem:[%s4366_s20 + $0x88] sm:$0xff] }
  0x26   : > { %3984 = vmatmul.mubr.msk.f32.gmra.mxu0 %vm364_vm0, %v326_v5  ;;  %v341_v20 = vld [vmem:[%s4366_s20 + $0x90] sm:$0xff]  ;;  %v342_v21 = vld [vmem:[%s4366_s20 + $0x98] sm:$0xff]  ;;  %v343_v22 = vld [vmem:[%s4366_s20 + $0xa0] sm:$0xff] }
  0x27   : > { %3986 = vmatprep.mubr.msk.f32.mxu0 %vm364_vm0, %v327_v6  ;;  %v344_v23 = vld [vmem:[%s4366_s20 + $0xa8] sm:$0xff]  ;;  %v345_v24 = vld [vmem:[%s4366_s20 + $0xb0] sm:$0xff]  ;;  %v346_v25 = vld [vmem:[%s4366_s20 + $0xb8] sm:$0xff] }
  0x28   : > { %v347_v26 = vld [vmem:[%s4366_s20 + $0xc0] sm:$0xff]  ;;  %v348_v27 = vld [vmem:[%s4366_s20 + $0xc8] sm:$0xff]  ;;  %v349_v28 = vld [vmem:[%s4366_s20 + $0xd0] sm:$0xff] }
  0x29   : > { %v350_v29 = vld [vmem:[%s4366_s20 + $0xd8] sm:$0xff]  ;;  %v351_v30 = vld [vmem:[%s4366_s20 + $0xe0] sm:$0xff]  ;;  %v352_v31 = vld [vmem:[%s4366_s20 + $0xe8] sm:$0xff] }
  0x2a   : > { %3987 = vmatmul.mubr.msk.f32.gmra.mxu0 %vm364_vm0, %v328_v7  ;;  %v353_v32 = vld [vmem:[%s4366_s20 + $0xf0] sm:$0xff]  ;;  %v354_v33 = vld [vmem:[%s4366_s20 + $0xf8] sm:$0xff]  ;;  %v1816_v2 = vld [vmem:[%s6144_s2 + $0x8] sm:$0xff] }
  0x2b   : > { %3989 = vmatprep.mubr.msk.f32.mxu0 %vm364_vm0, %v329_v8  ;;  %4030 = vmatprep.subr.mxu1 %v1816_v2  ;;  %v1815_v6 = vld [vmem:[%s6144_s2] sm:$0xff] }
  0x2c   : > { %4031 = vmatpush3.msra.mxu1 %v1816_v2 }
  0x2d   : > { %4032 = vmatprep.subr.mxu1 %v1815_v6 }
  0x2e   : > { %3990 = vmatmul.mubr.msk.f32.gmra.mxu0 %vm364_vm0, %v330_v9  ;;  %4033 = vmatpush3.msra.mxu1 %v1815_v6 }
  0x2f   : > { %3992 = vmatprep.mubr.msk.f32.mxu0 %vm364_vm0, %v331_v10 }
  0x32   : > { %3993 = vmatmul.mubr.msk.f32.gmra.mxu0 %vm364_vm0, %v332_v11 }
  0x33   : > { %3995 = vmatprep.mubr.msk.f32.mxu0 %vm364_vm0, %v333_v12 }
  0x36   : > { %3996 = vmatmul.mubr.msk.f32.gmra.mxu0 %vm364_vm0, %v334_v13 }
  0x37   : > { %3998 = vmatprep.mubr.msk.f32.mxu0 %vm364_vm0, %v335_v14 }
  0x3a   : > { %3999 = vmatmul.mubr.msk.f32.gmra.mxu0 %vm364_vm0, %v336_v15 }
  0x3b   : > { %4001 = vmatprep.mubr.msk.f32.mxu0 %vm364_vm0, %v337_v16 }
  0x3e   : > { %4002 = vmatmul.mubr.msk.f32.gmra.mxu0 %vm364_vm0, %v338_v17 }
  0x3f   : > { %4004 = vmatprep.mubr.msk.f32.mxu0 %vm364_vm0, %v339_v18 }
  0x42   : > { %4005 = vmatmul.mubr.msk.f32.gmra.mxu0 %vm364_vm0, %v340_v19 }
  0x43   : > { %4007 = vmatprep.mubr.msk.f32.mxu0 %vm364_vm0, %v341_v20 }
  0x46   : > { %4008 = vmatmul.mubr.msk.f32.gmra.mxu0 %vm364_vm0, %v342_v21 }
  0x47   : > { %4010 = vmatprep.mubr.msk.f32.mxu0 %vm364_vm0, %v343_v22 }
  0x4a   : > { %4011 = vmatmul.mubr.msk.f32.gmra.mxu0 %vm364_vm0, %v344_v23 }
  0x4b   : > { %4013 = vmatprep.mubr.msk.f32.mxu0 %vm364_vm0, %v345_v24 }
  0x4e   : > { %4014 = vmatmul.mubr.msk.f32.gmra.mxu0 %vm364_vm0, %v346_v25 }
  0x4f   : > { %4016 = vmatprep.mubr.msk.f32.mxu0 %vm364_vm0, %v347_v26 }
  0x52   : > { %4017 = vmatmul.mubr.msk.f32.gmra.mxu0 %vm364_vm0, %v348_v27 }
  0x53   : > { %4019 = vmatprep.mubr.msk.f32.mxu0 %vm364_vm0, %v349_v28 }
  0x56   : > { %4020 = vmatmul.mubr.msk.f32.gmra.mxu0 %vm364_vm0, %v350_v29 }
  0x57   : > { %4022 = vmatprep.mubr.msk.f32.mxu0 %vm364_vm0, %v351_v30 }
  0x5a   : > { %4023 = vmatmul.mubr.msk.f32.gmra.mxu0 %vm364_vm0, %v352_v31 }
  0x5b   : > { %4025 = vmatprep.mubr.msk.f32.mxu0 %vm364_vm0, %v353_v32 }
  0x5e   : > { %4026 = vmatmul.mubr.msk.f32.gmra.mxu0 %vm364_vm0, %v354_v33 }
  0xe2   : > { %v3982_v35 = vpop.f32.mrf.mxu0 }
  0xe3   : > { %v533_v37 = vadd.f32 %v3982_v35, %v4435_v34 }
  0xe4   : > { %v527_v38 = vpop.f32.mrf.mxu0 }
  0xe5   : > { %vm687_vm1 = vcmp.gt.f32.partialorder %v533_v37, 0.0  ;;  %v720_v39 = vmul.f32 %v4437_v36, %v533_v37  ;;  %v528_v40 = vadd.f32 %v4435_v34, %v527_v38 }
  0xe6   : > { %v3985_v41 = vpop.f32.mrf.mxu0 }
  0xe7   : > { %v752_v42 = vsel %vm687_vm1, %v533_v37, %v720_v39  ;;  %vm686_vm2 = vcmp.gt.f32.partialorder %v528_v40, 0.0  ;;  %v719_v43 = vmul.f32 %v4437_v36, %v528_v40  ;;  %v543_v44 = vadd.f32 %v3985_v41, %v4435_v34 }
  0xe8   : > { %v537_v45 = vpop.f32.mrf.mxu0  ;;  %v817_v49 = vrot.slane %v752_v42, 6 }
  0xe9   : > { %v751_v46 = vsel %vm686_vm2, %v528_v40, %v719_v43  ;;  %vm689_vm3 = vcmp.gt.f32.partialorder %v543_v44, 0.0  ;;  %v722_v47 = vmul.f32 %v4437_v36, %v543_v44  ;;  %v538_v48 = vadd.f32 %v4435_v34, %v537_v45 }
  0xea   : > { %v816_v50 = vrot.slane %v751_v46, 6  ;;  %v3988_v55 = vpop.f32.mrf.mxu0  ;;  %v4460_v61 = vsel %vm815_vm4, %v817_v49, 0.0 }
  0xeb   : > { %v754_v51 = vsel %vm689_vm3, %v543_v44, %v722_v47  ;;  %vm688_vm5 = vcmp.gt.f32.partialorder %v538_v48, 0.0  ;;  %v721_v52 = vmul.f32 %v4437_v36, %v538_v48  ;;  %v1157_v5 = vrot.slane %v4460_v61, 2 }
  0xec   : > { %v4448_v53 = vsel %vm815_vm4, %v816_v50, %v817_v49  ;;  %v4451_v54 = vsel %vm815_vm4, 0.0, %v816_v50  ;;  %v820_v62 = vrot.slane %v754_v51, 6  ;;  %v547_v4 = vpop.f32.mrf.mxu0  ;;  %v980_v9 = vrot.slane %v4460_v61, 1 }
  0xed   : > { %v753_v56 = vsel %vm688_vm5, %v538_v48, %v721_v52  ;;  %v1154_v57 = vrot.slane %v4451_v54, 2  ;;  %v1155_v58 = vrot.slane %v4448_v53, 2  ;;  %v977_v59 = vrot.slane %v4451_v54, 1 }
  0xee   : > { %v819_v63 = vrot.slane %v753_v56, 6  ;;  %v978_v0 = vrot.slane %v4448_v53, 1  ;;  %v1332_v10 = vrot.slane %v4448_v53, 3  ;;  %v1331_v12 = vrot.slane %v4451_v54, 3  ;;  %v3991_v31 = vpop.f32.mrf.mxu0 }
  0xef   : > { %v1156_v1 = vsel %vm1153_vm6, %v1154_v57, %v1155_v58  ;;  %v1158_v11 = vsel %vm1153_vm6, %v1155_v58, %v1157_v5  ;;  %v553_v13 = vadd.f32 %v3988_v55, %v4435_v34  ;;  %v548_v14 = vadd.f32 %v4435_v34, %v547_v4 }
  0xf0   : > { %1234 = vrot.lane.b32.xlu1 %v1156_v1, %s4272_s30  ;;  %v979_v3 = vsel %vm976_vm7, %v977_v59, %v978_v0  ;;  %v4477_v7 = vsel %vm815_vm4, %v819_v63, %v820_v62  ;;  %v4480_v8 = vsel %vm815_vm4, 0.0, %v819_v63  ;;  %v981_v15 = vsel %vm976_vm7, %v978_v0, %v980_v9  ;;  %v557_v42 = vpop.f32.mrf.mxu0 }
  0xf1   : > { %1057 = vrot.lane.b32.xlu0 %v979_v3, %s4273_s9  ;;  %v1334_v16 = vrot.slane %v4460_v61, 3  ;;  %v982_v17 = vrot.slane %v4480_v8, 1  ;;  %v983_v18 = vrot.slane %v4477_v7, 1  ;;  %v4495_v19 = vsel %vm815_vm4, %v820_v62, 0.0 }
  0xf2   : > { %v1333_v21 = vsel %vm1330_vm9, %v1331_v12, %v1332_v10  ;;  %v724_v22 = vmul.f32 %v4437_v36, %v553_v13  ;;  %v723_v23 = vmul.f32 %v4437_v36, %v548_v14  ;;  %v1508_v24 = vrot.slane %v4451_v54, 4  ;;  %v3994_v5 = vpop.f32.mrf.mxu0 }
  0xf3   : > { %v1335_v20 = vsel %vm1330_vm9, %v1332_v10, %v1334_v16  ;;  %v1509_v25 = vrot.slane %v4448_v53, 4  ;;  %vm691_vm10 = vcmp.gt.f32.partialorder %v553_v13, 0.0  ;;  %vm690_vm11 = vcmp.gt.f32.partialorder %v548_v14, 0.0 }
  0xf4   : > { %1236 = vrot.lane.b32.xlu1 %v1158_v11, %s4272_s30  ;;  %v984_v26 = vsel %vm976_vm7, %v982_v17, %v983_v18  ;;  %v985_v27 = vrot.slane %v4495_v19, 1  ;;  %v756_v28 = vsel %vm691_vm10, %v553_v13, %v724_v22  ;;  %v755_v29 = vsel %vm690_vm11, %v548_v14, %v723_v23 }
  0xf5   : > { %1059 = vrot.lane.b32.xlu0 %v981_v15, %s4273_s9  ;;  %v1510_v30 = vsel %vm1507_vm8, %v1508_v24, %v1509_v25  ;;  %v823_v33 = vrot.slane %v756_v28, 6  ;;  %v822_v35 = vrot.slane %v755_v29, 6  ;;  %v1511_v37 = vrot.slane %v4460_v61, 4  ;;  %v567_v15 = vpop.f32.mrf.mxu0 }
  0xf6   : > { %v986_v32 = vsel %vm976_vm7, %v983_v18, %v985_v27  ;;  %v1160_v38 = vrot.slane %v4477_v7, 2  ;;  %v1162_v39 = vrot.slane %v4495_v19, 2  ;;  %v1159_v41 = vrot.slane %v4480_v8, 2 }
  0xf7   : > { %v1512_v40 = vsel %vm1507_vm8, %v1509_v25, %v1511_v37  ;;  %v4519_v43 = vsel %vm815_vm4, %v822_v35, %v823_v33  ;;  %v4522_v44 = vsel %vm815_vm4, 0.0, %v822_v35  ;;  %v1337_v45 = vrot.slane %v4477_v7, 3 }
  0xf8   : > { %1413 = vrot.lane.b32.xlu1 %v1335_v20, %s4274_s12  ;;  %v1163_v46 = vsel %vm1153_vm6, %v1160_v38, %v1162_v39  ;;  %v1339_v47 = vrot.slane %v4495_v19, 3  ;;  %v563_v48 = vadd.f32 %v3991_v31, %v4435_v34  ;;  %v558_v49 = vadd.f32 %v4435_v34, %v557_v42  ;;  %v3997_v42 = vpop.f32.mrf.mxu0 }
  0xf9   : > { %1411 = vrot.lane.b32.xlu0 %v1333_v21, %s4274_s12  ;;  %v1161_v50 = vsel %vm1153_vm6, %v1159_v41, %v1160_v38  ;;  %v1336_v51 = vrot.slane %v4480_v8, 3  ;;  %v987_v52 = vrot.slane %v4522_v44, 1  ;;  %v988_v55 = vrot.slane %v4519_v43, 1 }
  0xfa   : > { %v4536_v56 = vsel %vm815_vm4, %v823_v33, 0.0  ;;  %v1340_v57 = vsel %vm1330_vm9, %v1337_v45, %v1339_v47  ;;  %v1513_v58 = vrot.slane %v4480_v8, 4  ;;  %v726_v59 = vmul.f32 %v4437_v36, %v563_v48 }
  0xfb   : > { %v725_v60 = vmul.f32 %v4437_v36, %v558_v49  ;;  %v1338_v61 = vsel %vm1330_vm9, %v1336_v51, %v1337_v45  ;;  %v1514_v62 = vrot.slane %v4477_v7, 4  ;;  %vm693_vm12 = vcmp.gt.f32.partialorder %v563_v48, 0.0 }
  0xfc   : > { %1061 = vrot.lane.b32.xlu1 %v984_v26, %s4273_s9  ;;  %vm692_vm13 = vcmp.gt.f32.partialorder %v558_v49, 0.0  ;;  %v989_v63 = vsel %vm976_vm7, %v987_v52, %v988_v55  ;;  %v990_v0 = vrot.slane %v4536_v56, 1  ;;  %v758_v1 = vsel %vm693_vm12, %v563_v48, %v726_v59  ;;  %v577_v52 = vpop.f32.mrf.mxu0 }
  0xfd   : > { %1588 = vrot.lane.b32.xlu0 %v1510_v30, %s4275_s13  ;;  %v757_v2 = vsel %vm692_vm13, %v558_v49, %v725_v60  ;;  %v1515_v3 = vsel %vm1507_vm8, %v1513_v58, %v1514_v62  ;;  %v1516_v4 = vrot.slane %v4495_v19, 4  ;;  %v826_v9 = vrot.slane %v758_v1, 6 }
  0xfe   : > { %v991_v6 = vsel %vm976_vm7, %v988_v55, %v990_v0  ;;  %v825_v10 = vrot.slane %v757_v2, 6  ;;  %v1165_v11 = vrot.slane %v4519_v43, 2  ;;  %v1167_v12 = vrot.slane %v4536_v56, 2 }
  0xff   : > { %v1517_v13 = vsel %vm1507_vm8, %v1514_v62, %v1516_v4  ;;  %v1164_v14 = vrot.slane %v4522_v44, 2  ;;  %v1342_v19 = vrot.slane %v4519_v43, 3  ;;  %v1344_v20 = vrot.slane %v4536_v56, 3 }
 0x100   : > { %1063 = vrot.lane.b32.xlu1 %v986_v32, %s4273_s9  ;;  %v4560_v16 = vsel %vm815_vm4, %v825_v10, %v826_v9  ;;  %v4563_v17 = vsel %vm815_vm4, 0.0, %v825_v10  ;;  %v1168_v18 = vsel %vm1153_vm6, %v1165_v11, %v1167_v12  ;;  %v573_v21 = vadd.f32 %v3994_v5, %v4435_v34 }
 0x101   : > { %1590 = vrot.lane.b32.xlu0 %v1512_v40, %s4275_s13  ;;  %v568_v22 = vadd.f32 %v4435_v34, %v567_v15  ;;  %v1166_v23 = vsel %vm1153_vm6, %v1164_v14, %v1165_v11  ;;  %v1341_v24 = vrot.slane %v4522_v44, 3  ;;  %v992_v25 = vrot.slane %v4563_v17, 1 }
 0x102   : > { %v993_v26 = vrot.slane %v4560_v16, 1  ;;  %v4577_v27 = vsel %vm815_vm4, %v826_v9, 0.0  ;;  %v1345_v28 = vsel %vm1330_vm9, %v1342_v19, %v1344_v20  ;;  %v1518_v29 = vrot.slane %v4522_v44, 4 }
 0x103   : > { %v728_v30 = vmul.f32 %v4437_v36, %v573_v21  ;;  %v727_v31 = vmul.f32 %v4437_v36, %v568_v22  ;;  %v1343_v32 = vsel %vm1330_vm9, %v1341_v24, %v1342_v19  ;;  %v1519_v33 = vrot.slane %v4519_v43, 4  ;;  %v4000_v19 = vpop.f32.mrf.mxu0 }
 0x104   : > { %1240 = vrot.lane.b32.xlu1 %v1163_v46, %s4272_s30  ;;  %vm695_vm14 = vcmp.gt.f32.partialorder %v573_v21, 0.0  ;;  %vm694_vm15 = vcmp.gt.f32.partialorder %v568_v22, 0.0  ;;  %v994_v35 = vsel %vm976_vm7, %v992_v25, %v993_v26  ;;  %v995_v37 = vrot.slane %v4577_v27, 1 }
 0x105   : > { %1238 = vrot.lane.b32.xlu0 %v1161_v50, %s4272_s30  ;;  %v760_v38 = vsel %vm695_vm14, %v573_v21, %v728_v30  ;;  %v759_v39 = vsel %vm694_vm15, %v568_v22, %v727_v31  ;;  %v1520_v40 = vsel %vm1507_vm8, %v1518_v29, %v1519_v33  ;;  %v1521_v41 = vrot.slane %v4536_v56, 4 }
 0x106   : > { %v996_v45 = vsel %vm976_vm7, %v993_v26, %v995_v37  ;;  %v829_v46 = vrot.slane %v760_v38, 6  ;;  %v828_v47 = vrot.slane %v759_v39, 6  ;;  %v1170_v48 = vrot.slane %v4560_v16, 2 }
 0x107   : > { %v1172_v49 = vrot.slane %v4577_v27, 2  ;;  %v1522_v50 = vsel %vm1507_vm8, %v1519_v33, %v1521_v41  ;;  %v1169_v51 = vrot.slane %v4563_v17, 2  ;;  %v1347_v58 = vrot.slane %v4560_v16, 3 }
 0x108   : > { %1417 = vrot.lane.b32.xlu1 %v1340_v57, %s4274_s12  ;;  %v4601_v55 = vsel %vm815_vm4, %v828_v47, %v829_v46  ;;  %v4604_v56 = vsel %vm815_vm4, 0.0, %v828_v47  ;;  %v1349_v59 = vrot.slane %v4577_v27, 3  ;;  %v583_v60 = vadd.f32 %v3997_v42, %v4435_v34 }
 0x109   : > { %1415 = vrot.lane.b32.xlu0 %v1338_v61, %s4274_s12  ;;  %v1173_v57 = vsel %vm1153_vm6, %v1170_v48, %v1172_v49  ;;  %v578_v61 = vadd.f32 %v4435_v34, %v577_v52  ;;  %v1171_v62 = vsel %vm1153_vm6, %v1169_v51, %v1170_v48  ;;  %v997_v0 = vrot.slane %v4604_v56, 1 }
 0x10a   : > { %v998_v1 = vrot.slane %v4601_v55, 1  ;;  %v4618_v2 = vsel %vm815_vm4, %v829_v46, 0.0  ;;  %v1523_v4 = vrot.slane %v4563_v17, 4  ;;  %v730_v5 = vmul.f32 %v4437_v36, %v583_v60 }
 0x10b   : > { %v1524_v10 = vrot.slane %v4560_v16, 4  ;;  %vm697_vm1 = vcmp.gt.f32.partialorder %v583_v60, 0.0  ;;  %vm696_vm2 = vcmp.gt.f32.partialorder %v578_v61, 0.0  ;;  %v1000_v12 = vrot.slane %v4618_v2, 1 }
 0x10c   : > { %1065 = vrot.lane.b32.xlu1 %v989_v63, %s4273_s9  ;;  %v1346_v63 = vrot.slane %v4563_v17, 3  ;;  %v999_v11 = vsel %vm976_vm7, %v997_v0, %v998_v1  ;;  %v1177_v24 = vrot.slane %v4618_v2, 2  ;;  %v1174_v26 = vrot.slane %v4604_v56, 2 }
 0x10d   : > { %1592 = vrot.lane.b32.xlu0 %v1515_v3, %s4275_s13  ;;  %v1350_v3 = vsel %vm1330_vm9, %v1347_v58, %v1349_v59  ;;  %v1525_v15 = vsel %vm1507_vm8, %v1523_v4, %v1524_v10  ;;  %v1001_v20 = vsel %vm976_vm7, %v998_v1, %v1000_v12  ;;  %v1352_v31 = vrot.slane %v4601_v55, 3 }
 0x10e   : > { %v1348_v9 = vsel %vm1330_vm9, %v1346_v63, %v1347_v58  ;;  %v593_v33 = vadd.f32 %v4000_v19, %v4435_v34  ;;  %v1351_v38 = vrot.slane %v4604_v56, 3  ;;  %v1529_v49 = vrot.slane %v4601_v55, 4 }
 0x10f   : > { %v1531_v59 = vrot.slane %v4618_v2, 4  ;;  %vm1684_vm14 = vcmask 31744  }
 0x110   : > { %1067 = vrot.lane.b32.xlu1 %v991_v6, %s4273_s9  ;;  %v729_v6 = vmul.f32 %v4437_v36, %v578_v61  ;;  %v732_v46 = vmul.f32 %v4437_v36, %v593_v33  ;;  %v1353_v48 = vsel %vm1330_vm9, %v1351_v38, %v1352_v31  ;;  %vm699_vm3 = vcmp.gt.f32.partialorder %v593_v33, 0.0 }
 0x111   : > { %1594 = vrot.lane.b32.xlu0 %v1517_v13, %s4275_s13  ;;  %v762_v13 = vsel %vm697_vm1, %v583_v60, %v730_v5 }
 0x112   : > { %v761_v14 = vsel %vm696_vm2, %v578_v61, %v729_v6  ;;  %v832_v21 = vrot.slane %v762_v13, 6  ;;  %v764_v52 = vsel %vm699_vm3, %v593_v33, %v732_v46  ;;  %vm1717_vm2 = vcmask 64512  }
 0x113   : > { %v831_v22 = vrot.slane %v761_v14, 6  ;;  %vm1750_vm3 = vcmask 97280  }
 0x114   : > { %1244 = vrot.lane.b32.xlu1 %v1168_v18, %s4272_s30  ;;  %v1526_v18 = vrot.slane %v4577_v27, 4  ;;  %v4659_v41 = vsel %vm815_vm4, %v832_v21, 0.0 }
 0x115   : > { %1242 = vrot.lane.b32.xlu0 %v1166_v23, %s4272_s30  ;;  %v1175_v23 = vrot.slane %v4601_v55, 2  ;;  %v4642_v27 = vsel %vm815_vm4, %v831_v22, %v832_v21  ;;  %v4645_v29 = vsel %vm815_vm4, 0.0, %v831_v22  ;;  %v1005_v51 = vrot.slane %v4659_v41, 1 }
 0x116   : > { %v1527_v25 = vsel %vm1507_vm8, %v1524_v10, %v1526_v18  ;;  %v1002_v39 = vrot.slane %v4645_v29, 1  ;;  %v1180_v0 = vrot.slane %v4642_v27, 2  ;;  %v1182_v1 = vrot.slane %v4659_v41, 2 }
 0x117   : > { %v1178_v30 = vsel %vm1153_vm6, %v1175_v23, %v1177_v24  ;;  %v1176_v37 = vsel %vm1153_vm6, %v1174_v26, %v1175_v23  ;;  %v1179_v4 = vrot.slane %v4645_v29, 2  ;;  %v1357_v10 = vrot.slane %v4642_v27, 3 }
 0x118   : > { %1421 = vrot.lane.b32.xlu1 %v1345_v28, %s4274_s12  ;;  %v587_v28 = vpop.f32.mrf.mxu0  ;;  %v1533_v22 = vrot.slane %v4645_v29, 4  ;;  %v1534_v26 = vrot.slane %v4642_v27, 4 }
 0x119   : > { %1419 = vrot.lane.b32.xlu0 %v1343_v32, %s4274_s12  ;;  %v1354_v32 = vrot.slane %v4618_v2, 3  ;;  %v1181_v14 = vsel %vm1153_vm6, %v1179_v4, %v1180_v0 }
 0x11a   : > { %v4003_v60 = vpop.f32.mrf.mxu0  ;;  %v1535_v33 = vsel %vm1507_vm8, %v1533_v22, %v1534_v26 }
 0x11b   : > { %v1355_v42 = vsel %vm1330_vm9, %v1352_v31, %v1354_v32  ;;  %v603_v12 = vadd.f32 %v4003_v60, %v4435_v34 }
 0x11c   : > { %1069 = vrot.lane.b32.xlu1 %v994_v35, %s4273_s9  ;;  %v588_v35 = vadd.f32 %v4435_v34, %v587_v28  ;;  %v597_v5 = vpop.f32.mrf.mxu0 }
 0x11d   : > { %1596 = vrot.lane.b32.xlu0 %v1520_v40, %s4275_s13  ;;  %v1003_v40 = vrot.slane %v4642_v27, 1  ;;  %v598_v13 = vadd.f32 %v4435_v34, %v597_v5  ;;  %v734_v23 = vmul.f32 %v4437_v36, %v603_v12  ;;  %vm701_vm10 = vcmp.gt.f32.partialorder %v603_v12, 0.0 }
 0x11e   : > { %v731_v47 = vmul.f32 %v4437_v36, %v588_v35  ;;  %vm698_vm5 = vcmp.gt.f32.partialorder %v588_v35, 0.0 }
 0x11f   : > { %v1006_v61 = vsel %vm976_vm7, %v1003_v40, %v1005_v51  ;;  %v733_v24 = vmul.f32 %v4437_v36, %v598_v13  ;;  %vm700_vm11 = vcmp.gt.f32.partialorder %v598_v13, 0.0  ;;  %v766_v31 = vsel %vm701_vm10, %v603_v12, %v734_v23 }
 0x120   : > { %1071 = vrot.lane.b32.xlu1 %v996_v45, %s4273_s9  ;;  %v1528_v45 = vrot.slane %v4604_v56, 4 }
 0x121   : > { %1598 = vrot.lane.b32.xlu0 %v1522_v50, %s4275_s13  ;;  %v1004_v50 = vsel %vm976_vm7, %v1002_v39, %v1003_v40  ;;  %v765_v32 = vsel %vm700_vm11, %v598_v13, %v733_v24  ;;  %v838_v39 = vrot.slane %v766_v31, 6 }
 0x122   : > { %v1530_v58 = vsel %vm1507_vm8, %v1528_v45, %v1529_v49  ;;  %v837_v40 = vrot.slane %v765_v32, 6 }
 0x124   : > { %1248 = vrot.lane.b32.xlu1 %v1173_v57, %s4272_s30  ;;  %v763_v57 = vsel %vm698_vm5, %v588_v35, %v731_v47  ;;  %v1536_v35 = vrot.slane %v4659_v41, 4  ;;  %vm1818_vm5 = vcmask 162816  }
 0x125   : > { %1246 = vrot.lane.b32.xlu0 %v1171_v62, %s4272_s30  ;;  %v835_v62 = vrot.slane %v764_v52, 6  ;;  %v834_v63 = vrot.slane %v763_v57, 6 }
 0x126   : > { %v1537_v46 = vsel %vm1507_vm8, %v1534_v26, %v1536_v35 }
 0x127   : > { %v4683_v2 = vsel %vm815_vm4, %v834_v63, %v835_v62  ;;  %v4686_v6 = vsel %vm815_vm4, 0.0, %v834_v63  ;;  %v4741_v63 = vsel %vm815_vm4, %v838_v39, 0.0 }
 0x128   : > { %1425 = vrot.lane.b32.xlu1 %v1350_v3, %s4274_s12  ;;  %v1532_v3 = vsel %vm1507_vm8, %v1529_v49, %v1531_v59  ;;  %v1007_v18 = vrot.slane %v4686_v6, 1  ;;  %v1008_v19 = vrot.slane %v4683_v2, 1  ;;  %v1184_v47 = vrot.slane %v4686_v6, 2 }
 0x129   : > { %1423 = vrot.lane.b32.xlu0 %v1348_v9, %s4274_s12  ;;  %v1183_v9 = vsel %vm1153_vm6, %v1180_v0, %v1182_v1  ;;  %v4727_v49 = vsel %vm815_vm4, 0.0, %v837_v40  ;;  %v1361_v60 = vrot.slane %v4686_v6, 3  ;;  %v1538_v1 = vrot.slane %v4686_v6, 4 }
 0x12a   : > { %v1009_v28 = vsel %vm976_vm7, %v1007_v18, %v1008_v19  ;;  %v1192_v24 = vrot.slane %v4741_v63, 2  ;;  %v1189_v26 = vrot.slane %v4727_v49, 2 }
 0x12c   : > { %1073 = vrot.lane.b32.xlu1 %v999_v11, %s4273_s9  ;;  %v1359_v11 = vrot.slane %v4659_v41, 3  ;;  %v4724_v41 = vsel %vm815_vm4, %v837_v40, %v838_v39 }
 0x12d   : > { %1600 = vrot.lane.b32.xlu0 %v1525_v15, %s4275_s13  ;;  %v1356_v15 = vrot.slane %v4645_v29, 3  ;;  %v1190_v23 = vrot.slane %v4724_v41, 2  ;;  %v1367_v32 = vrot.slane %v4724_v41, 3 }
 0x12e   : > { %v1360_v21 = vsel %vm1330_vm9, %v1357_v10, %v1359_v11  ;;  %v1015_v11 = vrot.slane %v4741_v63, 1 }
 0x12f   : > { %v1193_v35 = vsel %vm1153_vm6, %v1190_v23, %v1192_v24  ;;  %v1191_v40 = vsel %vm1153_vm6, %v1189_v26, %v1190_v23 }
 0x130   : > { %1075 = vrot.lane.b32.xlu1 %v1001_v20, %s4273_s9  ;;  %v4700_v20 = vsel %vm815_vm4, %v835_v62, 0.0  ;;  %v1013_v62 = vrot.slane %v4724_v41, 1 }
 0x131   : > { %1602 = vrot.lane.b32.xlu0 %v1527_v25, %s4275_s13  ;;  %v1358_v25 = vsel %vm1330_vm9, %v1356_v15, %v1357_v10  ;;  %v1187_v45 = vrot.slane %v4700_v20, 2  ;;  %v1364_v52 = vrot.slane %v4700_v20, 3  ;;  %v1541_v15 = vrot.slane %v4700_v20, 4 }
 0x134   : > { %1252 = vrot.lane.b32.xlu1 %v1178_v30, %s4272_s30  ;;  %v1010_v30 = vrot.slane %v4700_v20, 1 }
 0x135   : > { %1250 = vrot.lane.b32.xlu0 %v1176_v37, %s4272_s30  ;;  %v4006_v37 = vpop.f32.mrf.mxu0 }
 0x136   : > { %v1011_v38 = vsel %vm976_vm7, %v1008_v19, %v1010_v30  ;;  %v613_v57 = vadd.f32 %v4006_v37, %v4435_v34  ;;  %v1016_v19 = vsel %vm976_vm7, %v1013_v62, %v1015_v11  ;;  %v1369_v37 = vrot.slane %v4741_v63, 3 }
 0x138   : > { %1429 = vrot.lane.b32.xlu1 %v1355_v42, %s4274_s12  ;;  %v1185_v42 = vrot.slane %v4683_v2, 2  ;;  %vm703_vm12 = vcmp.gt.f32.partialorder %v613_v57, 0.0 }
 0x139   : > { %1427 = vrot.lane.b32.xlu0 %v1353_v48, %s4274_s12  ;;  %v607_v48 = vpop.f32.mrf.mxu0 }
 0x13a   : > { %v1188_v51 = vsel %vm1153_vm6, %v1185_v42, %v1187_v45  ;;  %v1186_v59 = vsel %vm1153_vm6, %v1184_v47, %v1185_v42  ;;  %v1366_v42 = vrot.slane %v4727_v49, 3 }
 0x13b   : > { %v4009_v18 = vpop.f32.mrf.mxu0 }
 0x13c   : > { %1077 = vrot.lane.b32.xlu1 %v1004_v50, %s4273_s9  ;;  %v1362_v50 = vrot.slane %v4683_v2, 3 }
 0x13d   : > { %1604 = vrot.lane.b32.xlu0 %v1530_v58, %s4275_s13  ;;  %v608_v58 = vadd.f32 %v4435_v34, %v607_v48 }
 0x13e   : > { %v1365_v0 = vsel %vm1330_vm9, %v1362_v50, %v1364_v52  ;;  %v1363_v5 = vsel %vm1330_vm9, %v1361_v60, %v1362_v50  ;;  %v1543_v52 = vrot.slane %v4727_v49, 4  ;;  %v1544_v60 = vrot.slane %v4724_v41, 4 }
 0x13f   : > { %v735_v4 = vmul.f32 %v4437_v36, %v608_v58  ;;  %vm702_vm13 = vcmp.gt.f32.partialorder %v608_v58, 0.0 }
 0x140   : > { %1079 = vrot.lane.b32.xlu1 %v1006_v61, %s4273_s9  ;;  %v1012_v61 = vrot.slane %v4727_v49, 1 }
 0x141   : > { %1606 = vrot.lane.b32.xlu0 %v1532_v3, %s4275_s13  ;;  %v736_v3 = vmul.f32 %v4437_v36, %v613_v57  ;;  %v767_v13 = vsel %vm702_vm13, %v608_v58, %v735_v4 }
 0x142   : > { %v1014_v10 = vsel %vm976_vm7, %v1012_v61, %v1013_v62  ;;  %v840_v22 = vrot.slane %v767_v13, 6 }
 0x143   : > { %v768_v12 = vsel %vm703_vm12, %v613_v57, %v736_v3 }
 0x144   : > { %1256 = vrot.lane.b32.xlu1 %v1183_v9, %s4272_s30  ;;  %v1539_v9 = vrot.slane %v4683_v2, 4  ;;  %v4768_v30 = vsel %vm815_vm4, 0.0, %v840_v22 }
 0x145   : > { %1254 = vrot.lane.b32.xlu0 %v1181_v14, %s4272_s30  ;;  %v1017_v45 = vrot.slane %v4768_v30, 1 }
 0x146   : > { %v1540_v14 = vsel %vm1507_vm8, %v1538_v1, %v1539_v9 }
 0x148   : > { %1433 = vrot.lane.b32.xlu1 %v1360_v21, %s4274_s12  ;;  %v841_v21 = vrot.slane %v768_v12, 6 }
 0x149   : > { %1431 = vrot.lane.b32.xlu0 %v1358_v25, %s4274_s12  ;;  %v1542_v25 = vsel %vm1507_vm8, %v1539_v9, %v1541_v15  ;;  %v1545_v9 = vsel %vm1507_vm8, %v1543_v52, %v1544_v60 }
 0x14a   : > { %v4765_v20 = vsel %vm815_vm4, %v840_v22, %v841_v21  ;;  %v4782_v47 = vsel %vm815_vm4, %v841_v21, 0.0 }
 0x14b   : > { %v1020_v62 = vrot.slane %v4782_v47, 1  ;;  %v1195_v22 = vrot.slane %v4765_v20, 2 }
 0x14c   : > { %1081 = vrot.lane.b32.xlu1 %v1009_v28, %s4273_s9  ;;  %v617_v28 = vpop.f32.mrf.mxu0 }
 0x14d   : > { %1608 = vrot.lane.b32.xlu0 %v1535_v33, %s4275_s13  ;;  %v618_v39 = vadd.f32 %v4435_v34, %v617_v28 }
 0x14e   : > { %v4012_v11 = vpop.f32.mrf.mxu0 }
 0x14f   : > { %v737_v58 = vmul.f32 %v4437_v36, %v618_v39  ;;  %vm704_vm1 = vcmp.gt.f32.partialorder %v618_v39, 0.0 }
 0x150   : > { %1083 = vrot.lane.b32.xlu1 %v1011_v38, %s4273_s9  ;;  %v623_v38 = vadd.f32 %v4009_v18, %v4435_v34  ;;  %v627_v26 = vpop.f32.mrf.mxu0 }
 0x151   : > { %1610 = vrot.lane.b32.xlu0 %v1537_v46, %s4275_s13  ;;  %v1018_v46 = vrot.slane %v4765_v20, 1 }
 0x152   : > { %v738_v57 = vmul.f32 %v4437_v36, %v623_v38  ;;  %vm705_vm15 = vcmp.gt.f32.partialorder %v623_v38, 0.0 }
 0x153   : > { %v1019_v61 = vsel %vm976_vm7, %v1017_v45, %v1018_v46  ;;  %v1021_v12 = vsel %vm976_vm7, %v1018_v46, %v1020_v62 }
 0x154   : > { %1260 = vrot.lane.b32.xlu1 %v1188_v51, %s4272_s30  ;;  %v1370_v51 = vsel %vm1330_vm9, %v1367_v32, %v1369_v37  ;;  %v770_v4 = vsel %vm705_vm15, %v623_v38, %v738_v57 }
 0x155   : > { %1258 = vrot.lane.b32.xlu0 %v1186_v59, %s4272_s30  ;;  %v1368_v59 = vsel %vm1330_vm9, %v1366_v42, %v1367_v32  ;;  %v628_v42 = vadd.f32 %v4435_v34, %v627_v26 }
 0x157   : > { %v739_v62 = vmul.f32 %v4437_v36, %v628_v42  ;;  %vm706_vm11 = vcmp.gt.f32.partialorder %v628_v42, 0.0 }
 0x158   : > { %1437 = vrot.lane.b32.xlu1 %v1365_v0, %s4274_s12 }
 0x159   : > { %1435 = vrot.lane.b32.xlu0 %v1363_v5, %s4274_s12  ;;  %v769_v5 = vsel %vm704_vm1, %v618_v39, %v737_v58 }
 0x15a   : > { %v843_v15 = vrot.slane %v769_v5, 6 }
 0x15c   : > { %1085 = vrot.lane.b32.xlu1 %v1014_v10, %s4273_s9  ;;  %v1546_v10 = vrot.slane %v4741_v63, 4  ;;  %v1197_v63 = vrot.slane %v4782_v47, 2  ;;  %v4819_v32 = vsel %vm815_vm4, 0.0, %v843_v15 }
 0x15d   : > { %1612 = vrot.lane.b32.xlu0 %v1540_v14, %s4275_s13  ;;  %v844_v14 = vrot.slane %v770_v4, 6 }
 0x15e   : > { %v1547_v23 = vsel %vm1507_vm8, %v1544_v60, %v1546_v10  ;;  %v1198_v39 = vsel %vm1153_vm6, %v1195_v22, %v1197_v63  ;;  %v1548_v60 = vrot.slane %v4768_v30, 4 }
 0x15f   : > { %v4835_v52 = vsel %vm815_vm4, %v844_v14, 0.0 }
 0x160   : > { %1087 = vrot.lane.b32.xlu1 %v1016_v19, %s4273_s9  ;;  %v1025_v4 = vrot.slane %v4835_v52, 1 }
 0x161   : > { %1614 = vrot.lane.b32.xlu0 %v1542_v25, %s4275_s13  ;;  %v1194_v25 = vrot.slane %v4768_v30, 2 }
 0x162   : > { %v1235_v31 = vpop.permute.xlu1 %1234 }
 0x163   : > { %v1058_v33 = vpop.permute.xlu0 %1057  ;;  %v1196_v46 = vsel %vm1153_vm6, %v1194_v25, %v1195_v22 }
 0x164   : > { %1264 = vrot.lane.b32.xlu1 %v1193_v35, %s4272_s30  ;;  %v1685_v1 = vsel %vm1684_vm14, %v4451_v54, %v1058_v33  ;;  %v1374_v35 = vrot.slane %v4782_v47, 3 }
 0x165   : > { %1262 = vrot.lane.b32.xlu0 %v1191_v40, %s4272_s30  ;;  %v1718_v13 = vsel %vm1717_vm2, %v1685_v1, %v1235_v31  ;;  %v4816_v31 = vsel %vm815_vm4, %v843_v15, %v844_v14  ;;  %v633_v40 = vadd.f32 %v4012_v11, %v4435_v34  ;;  %v1549_v1 = vrot.slane %v4765_v20, 4  ;;  %v4015_v14 = vpop.f32.mrf.mxu0 }
 0x166   : > { %v1237_v48 = vpop.permute.xlu1 %1236  ;;  %v771_v11 = vsel %vm706_vm11, %v628_v42, %v739_v62  ;;  %v1377_v42 = vrot.slane %v4816_v31, 3 }
 0x167   : > { %v1060_v50 = vpop.permute.xlu0 %1059  ;;  %vm707_vm10 = vcmp.gt.f32.partialorder %v633_v40, 0.0 }
 0x168   : > { %1441 = vrot.lane.b32.xlu1 %v1370_v51, %s4274_s12  ;;  %v1686_v18 = vsel %vm1684_vm14, %v4448_v53, %v1060_v50  ;;  %v1372_v53 = vrot.slane %v4765_v20, 3  ;;  %v1022_v50 = vrot.slane %v4819_v32, 1  ;;  %v1023_v51 = vrot.slane %v4816_v31, 1 }
 0x169   : > { %1439 = vrot.lane.b32.xlu0 %v1368_v59, %s4274_s12  ;;  %v1719_v28 = vsel %vm1717_vm2, %v1686_v18, %v1237_v48  ;;  %v1371_v48 = vrot.slane %v4768_v30, 3 }
 0x16a   : > { %v1414_v0 = vpop.permute.xlu1 %1413  ;;  %v1375_v59 = vsel %vm1330_vm9, %v1372_v53, %v1374_v35  ;;  %v1026_v18 = vsel %vm976_vm7, %v1023_v51, %v1025_v4 }
 0x16b   : > { %v1412_v3 = vpop.permute.xlu0 %1411  ;;  %v1752_v37 = vsel %vm1750_vm3, %v1719_v28, %v1414_v0  ;;  %v1373_v0 = vsel %vm1330_vm9, %v1371_v48, %v1372_v53  ;;  %v637_v53 = vpop.f32.mrf.mxu0 }
 0x16c   : > { %1089 = vrot.lane.b32.xlu1 %v1019_v61, %s4273_s9  ;;  %v1751_v19 = vsel %vm1750_vm3, %v1718_v13, %v1412_v3  ;;  %v740_v61 = vmul.f32 %v4437_v36, %v633_v40  ;;  %v1024_v3 = vsel %vm976_vm7, %v1022_v50, %v1023_v51  ;;  %v1551_v13 = vrot.slane %v4782_v47, 4 }
 0x16d   : > { %1616 = vrot.lane.b32.xlu0 %v1545_v9, %s4275_s13  ;;  %v638_v48 = vadd.f32 %v4435_v34, %v637_v53 }
 0x16e   : > { %v1062_v54 = vpop.permute.xlu1 %1061  ;;  %v772_v10 = vsel %vm707_vm10, %v633_v40, %v740_v61 }
 0x16f   : > { %v1589_v21 = vpop.permute.xlu0 %1588  ;;  %v1687_v15 = vsel %vm1684_vm14, %v4480_v8, %v1062_v54  ;;  %v847_v63 = vrot.slane %v772_v10, 6  ;;  %v1552_v8 = vsel %vm1507_vm8, %v1549_v1, %v1551_v13  ;;  %v1199_v54 = vrot.slane %v4819_v32, 2 }
 0x170   : > { %1091 = vrot.lane.b32.xlu1 %v1021_v12, %s4273_s9  ;;  %v1783_v24 = vsel %vm364_vm0, %v1751_v19, %v1589_v21  ;;  %v1550_v12 = vsel %vm1507_vm8, %v1548_v60, %v1549_v1  ;;  %v1200_v19 = vrot.slane %v4816_v31, 2  ;;  %v1202_v21 = vrot.slane %v4835_v52, 2 }
 0x171   : > { %1618 = vrot.lane.b32.xlu0 %v1547_v23, %s4275_s13  ;;  %4034 = vmatprep.mubr.msk.f32.mxu1 %vm1818_vm5, %v1783_v24  ;;  %v846_v24 = vrot.slane %v771_v11, 6  ;;  %v4888_v60 = vsel %vm815_vm4, %v847_v63, 0.0  ;;  %vm708_vm13 = vcmp.gt.f32.partialorder %v638_v48, 0.0 }
 0x172   : > { %v1064_v33 = vpop.permute.xlu1 %1063  ;;  %v1203_v35 = vsel %vm1153_vm6, %v1200_v19, %v1202_v21  ;;  %v1201_v51 = vsel %vm1153_vm6, %v1199_v54, %v1200_v19  ;;  %v1030_v10 = vrot.slane %v4888_v60, 1  ;;  %v4018_v19 = vpop.f32.mrf.mxu0 }
 0x173   : > { %v1591_v38 = vpop.permute.xlu0 %1590  ;;  %v1688_v28 = vsel %vm1684_vm14, %v4477_v7, %v1064_v33  ;;  %v1379_v33 = vrot.slane %v4835_v52, 3 }
 0x174   : > { %v1784_v45 = vsel %vm364_vm0, %v1752_v37, %v1591_v38  ;;  %1268 = vrot.lane.b32.xlu1 %v1198_v39, %s4272_s30  ;;  %v4869_v38 = vsel %vm815_vm4, %v846_v24, %v847_v63  ;;  %v4872_v39 = vsel %vm815_vm4, 0.0, %v846_v24  ;;  %v1207_v24 = vrot.slane %v4888_v60, 2 }
 0x175   : > { %1266 = vrot.lane.b32.xlu0 %v1196_v46, %s4272_s30  ;;  %4035 = vmatmul.mubr.msk.f32.vlgmr.msra.gmra.mxu1 %vm1818_vm5, %v1784_v45  ;;  %v643_v46 = vadd.f32 %v4015_v14, %v4435_v34  ;;  %v1380_v62 = vsel %vm1330_vm9, %v1377_v42, %v1379_v33  ;;  %v1205_v63 = vrot.slane %v4869_v38, 2 }
 0x176   : > { %v1241_v57 = vpop.permute.xlu1 %1240 }
 0x177   : > { %v1239_v58 = vpop.permute.xlu0 %1238  ;;  %v1721_v37 = vsel %vm1717_vm2, %v1688_v28, %v1241_v57  ;;  %v1376_v57 = vrot.slane %v4819_v32, 3  ;;  %v742_v1 = vmul.f32 %v4437_v36, %v643_v46  ;;  %vm709_vm12 = vcmp.gt.f32.partialorder %v643_v46, 0.0  ;;  %v647_v28 = vpop.f32.mrf.mxu0 }
 0x178   : > { %1445 = vrot.lane.b32.xlu1 %v1375_v59, %s4274_s12  ;;  %v1720_v22 = vsel %vm1717_vm2, %v1687_v15, %v1239_v58  ;;  %v1027_v58 = vrot.slane %v4872_v39, 1  ;;  %v1028_v59 = vrot.slane %v4869_v38, 1 }
 0x179   : > { %1443 = vrot.lane.b32.xlu0 %v1373_v0, %s4274_s12  ;;  %v1553_v0 = vrot.slane %v4819_v32, 4  ;;  %v1378_v4 = vsel %vm1330_vm9, %v1376_v57, %v1377_v42  ;;  %v774_v13 = vsel %vm709_vm12, %v643_v46, %v742_v1  ;;  %v1382_v46 = vrot.slane %v4869_v38, 3 }
 0x17a   : > { %v1418_v5 = vpop.permute.xlu1 %1417 }
 0x17b   : > { %v1416_v9 = vpop.permute.xlu0 %1415  ;;  %v1754_v45 = vsel %vm1750_vm3, %v1721_v37, %v1418_v5  ;;  %v1554_v5 = vrot.slane %v4816_v31, 4  ;;  %v1208_v37 = vsel %vm1153_vm6, %v1205_v63, %v1207_v24  ;;  %v4021_v24 = vpop.f32.mrf.mxu0 }
 0x17c   : > { %1093 = vrot.lane.b32.xlu1 %v1024_v3, %s4273_s9  ;;  %v1753_v25 = vsel %vm1750_vm3, %v1720_v22, %v1416_v9  ;;  %v741_v3 = vmul.f32 %v4437_v36, %v638_v48  ;;  %v1029_v9 = vsel %vm976_vm7, %v1027_v58, %v1028_v59  ;;  %v1031_v22 = vsel %vm976_vm7, %v1028_v59, %v1030_v10 }
 0x17d   : > { %1620 = vrot.lane.b32.xlu0 %v1550_v12, %s4275_s13  ;;  %v1555_v15 = vsel %vm1507_vm8, %v1553_v0, %v1554_v5 }
 0x17e   : > { %v1066_v23 = vpop.permute.xlu1 %1065  ;;  %v773_v14 = vsel %vm708_vm13, %v638_v48, %v741_v3 }
 0x17f   : > { %v1593_v47 = vpop.permute.xlu0 %1592  ;;  %v1689_v21 = vsel %vm1684_vm14, %v4522_v44, %v1066_v23  ;;  %v1204_v23 = vrot.slane %v4872_v39, 2 }
 0x180   : > { %v1785_v26 = vsel %vm364_vm0, %v1753_v25, %v1593_v47  ;;  %1095 = vrot.lane.b32.xlu1 %v1026_v18, %s4273_s9  ;;  %v1556_v18 = vrot.slane %v4835_v52, 4  ;;  %v850_v47 = vrot.slane %v774_v13, 6 }
 0x181   : > { %1622 = vrot.lane.b32.xlu0 %v1552_v8, %s4275_s13  ;;  %4037 = vmatprep.mubr.msk.f32.mxu1 %vm1818_vm5, %v1785_v26  ;;  %v849_v8 = vrot.slane %v773_v14, 6  ;;  %v1206_v59 = vsel %vm1153_vm6, %v1204_v23, %v1205_v63  ;;  %v1561_v63 = vrot.slane %v4888_v60, 4 }
 0x182   : > { %v1068_v40 = vpop.permute.xlu1 %1067  ;;  %v1557_v44 = vsel %vm1507_vm8, %v1554_v5, %v1556_v18  ;;  %v4946_v0 = vsel %vm815_vm4, %v850_v47, 0.0  ;;  %v1558_v5 = vrot.slane %v4872_v39, 4 }
 0x183   : > { %v1595_v7 = vpop.permute.xlu0 %1594  ;;  %v1035_v14 = vrot.slane %v4946_v0, 1 }
 0x184   : > { %v1786_v50 = vsel %vm364_vm0, %v1754_v45, %v1595_v7  ;;  %1272 = vrot.lane.b32.xlu1 %v1203_v35, %s4272_s30  ;;  %v1690_v35 = vsel %vm1684_vm14, %v4519_v43, %v1068_v40  ;;  %v4922_v45 = vsel %vm815_vm4, %v849_v8, %v850_v47  ;;  %v4925_v7 = vsel %vm815_vm4, 0.0, %v849_v8 }
 0x185   : > { %1270 = vrot.lane.b32.xlu0 %v1201_v51, %s4272_s30  ;;  %4038 = vmatmul.mubr.msk.f32.gmra.mxu1 %vm1818_vm5, %v1786_v50  ;;  %v1384_v40 = vrot.slane %v4888_v60, 3  ;;  %v4933_v50 = vld [vmem:[%s6147_s5] ss:$0 sm:$0xff]  ;;  %v1210_v8 = vrot.slane %v4922_v45, 2 }
 0x186   : > { %v1245_v34 = vpop.permute.xlu1 %1244  ;;  %v653_v51 = vadd.f32 %v4933_v50, %v4018_v19  ;;  %v648_v57 = vadd.f32 %v4933_v50, %v647_v28 }
 0x187   : > { %v1243_v61 = vpop.permute.xlu0 %1242  ;;  %v1723_v42 = vsel %vm1717_vm2, %v1690_v35, %v1245_v34  ;;  %v1381_v34 = vrot.slane %v4872_v39, 3 }
 0x188   : > { %1449 = vrot.lane.b32.xlu1 %v1380_v62, %s4274_s12  ;;  %v1722_v25 = vsel %vm1717_vm2, %v1689_v21, %v1243_v61  ;;  %v1032_v61 = vrot.slane %v4925_v7, 1  ;;  %v1033_v62 = vrot.slane %v4922_v45, 1  ;;  %v743_v10 = vmul.f32 %v4437_v36, %v648_v57 }
 0x189   : > { %1447 = vrot.lane.b32.xlu0 %v1378_v4, %s4274_s12  ;;  %v1385_v4 = vsel %vm1330_vm9, %v1382_v46, %v1384_v40  ;;  %vm711_vm15 = vcmp.gt.f32.partialorder %v653_v51, 0.0  ;;  %vm710_vm1 = vcmp.gt.f32.partialorder %v648_v57, 0.0 }
 0x18a   : > { %v1422_v11 = vpop.permute.xlu1 %1421  ;;  %v1034_v13 = vsel %vm976_vm7, %v1032_v61, %v1033_v62  ;;  %v775_v21 = vsel %vm710_vm1, %v648_v57, %v743_v10  ;;  %v1036_v47 = vsel %vm976_vm7, %v1033_v62, %v1035_v14  ;;  %v1387_v57 = vrot.slane %v4922_v45, 3 }
 0x18b   : > { %v1420_v12 = vpop.permute.xlu0 %1419  ;;  %v1756_v48 = vsel %vm1750_vm3, %v1723_v42, %v1422_v11  ;;  %v1383_v11 = vsel %vm1330_vm9, %v1381_v34, %v1382_v46  ;;  %v852_v23 = vrot.slane %v775_v21, 6 }
 0x18c   : > { %1097 = vrot.lane.b32.xlu1 %v1029_v9, %s4273_s9  ;;  %v1755_v54 = vsel %vm1750_vm3, %v1722_v25, %v1420_v12  ;;  %v744_v9 = vmul.f32 %v4437_v36, %v653_v51  ;;  %v1559_v12 = vrot.slane %v4869_v38, 4 }
 0x18d   : > { %1624 = vrot.lane.b32.xlu0 %v1555_v15, %s4275_s13  ;;  %v4983_v40 = vsel %vm815_vm4, 0.0, %v852_v23 }
 0x18e   : > { %v1070_v26 = vpop.permute.xlu1 %1069  ;;  %v776_v19 = vsel %vm711_vm15, %v653_v51, %v744_v9 }
 0x18f   : > { %v1597_v52 = vpop.permute.xlu0 %1596  ;;  %v1691_v25 = vsel %vm1684_vm14, %v4563_v17, %v1070_v26  ;;  %v1562_v17 = vsel %vm1507_vm8, %v1559_v12, %v1561_v63  ;;  %v1209_v26 = vrot.slane %v4925_v7, 2 }
 0x190   : > { %v1787_v53 = vsel %vm364_vm0, %v1755_v54, %v1597_v52  ;;  %1099 = vrot.lane.b32.xlu1 %v1031_v22, %s4273_s9  ;;  %v1560_v22 = vsel %vm1507_vm8, %v1558_v5, %v1559_v12  ;;  %v1212_v54 = vrot.slane %v4946_v0, 2  ;;  %v1563_v12 = vrot.slane %v4925_v7, 4 }
 0x191   : > { %1626 = vrot.lane.b32.xlu0 %v1557_v44, %s4275_s13  ;;  %4040 = vmatprep.mubr.msk.f32.mxu1 %vm1818_vm5, %v1787_v53  ;;  %v853_v53 = vrot.slane %v776_v19, 6  ;;  %v1211_v62 = vsel %vm1153_vm6, %v1209_v26, %v1210_v8 }
 0x192   : > { %v1072_v33 = vpop.permute.xlu1 %1071  ;;  %v1213_v46 = vsel %vm1153_vm6, %v1210_v8, %v1212_v54  ;;  %v1566_v8 = vrot.slane %v4946_v0, 4 }
 0x193   : > { %v1599_v43 = vpop.permute.xlu0 %1598  ;;  %v1692_v42 = vsel %vm1684_vm14, %v4560_v16, %v1072_v33  ;;  %v1389_v33 = vrot.slane %v4946_v0, 3  ;;  %v4999_v5 = vsel %vm815_vm4, %v853_v53, 0.0 }
 0x194   : > { %v1788_v58 = vsel %vm364_vm0, %v1756_v48, %v1599_v43  ;;  %1276 = vrot.lane.b32.xlu1 %v1208_v37, %s4272_s30  ;;  %v657_v37 = vpop.f32.mrf.mxu0  ;;  %v4980_v43 = vsel %vm815_vm4, %v852_v23, %v853_v53  ;;  %v1040_v21 = vrot.slane %v4999_v5, 1 }
 0x195   : > { %1274 = vrot.lane.b32.xlu0 %v1206_v59, %s4272_s30  ;;  %4041 = vmatmul.mubr.msk.f32.gmra.mxu1 %vm1818_vm5, %v1788_v58  ;;  %v663_v59 = vadd.f32 %v4933_v50, %v4021_v24  ;;  %v658_v34 = vadd.f32 %v4933_v50, %v657_v37  ;;  %v1215_v23 = vrot.slane %v4980_v43, 2 }
 0x196   : > { %v1249_v1 = vpop.permute.xlu1 %1248  ;;  %v4024_v54 = vpop.f32.mrf.mxu0 }
 0x197   : > { %v1247_v3 = vpop.permute.xlu0 %1246  ;;  %v1725_v48 = vsel %vm1717_vm2, %v1692_v42, %v1249_v1  ;;  %v1386_v1 = vrot.slane %v4925_v7, 3  ;;  %v745_v14 = vmul.f32 %v4437_v36, %v658_v34  ;;  %vm713_vm10 = vcmp.gt.f32.partialorder %v663_v59, 0.0 }
 0x198   : > { %1453 = vrot.lane.b32.xlu1 %v1385_v4, %s4274_s12  ;;  %v1724_v52 = vsel %vm1717_vm2, %v1691_v25, %v1247_v3  ;;  %v1037_v3 = vrot.slane %v4983_v40, 1  ;;  %v1038_v4 = vrot.slane %v4980_v43, 1  ;;  %vm712_vm11 = vcmp.gt.f32.partialorder %v658_v34, 0.0 }
 0x199   : > { %1451 = vrot.lane.b32.xlu0 %v1383_v11, %s4274_s12  ;;  %v1390_v11 = vsel %vm1330_vm9, %v1387_v57, %v1389_v33  ;;  %v777_v25 = vsel %vm712_vm11, %v658_v34, %v745_v14  ;;  %v1392_v34 = vrot.slane %v4980_v43, 3 }
 0x19a   : > { %v1426_v15 = vpop.permute.xlu1 %1425  ;;  %v1039_v19 = vsel %vm976_vm7, %v1037_v3, %v1038_v4  ;;  %v1041_v53 = vsel %vm976_vm7, %v1038_v4, %v1040_v21  ;;  %v855_v26 = vrot.slane %v777_v25, 6 }
 0x19b   : > { %v1424_v18 = vpop.permute.xlu0 %1423  ;;  %v1758_v58 = vsel %vm1750_vm3, %v1725_v48, %v1426_v15  ;;  %v1388_v15 = vsel %vm1330_vm9, %v1386_v1, %v1387_v57 }
 0x19c   : > { %1101 = vrot.lane.b32.xlu1 %v1034_v13, %s4273_s9  ;;  %v1757_v28 = vsel %vm1750_vm3, %v1724_v52, %v1424_v18  ;;  %v746_v13 = vmul.f32 %v4437_v36, %v663_v59  ;;  %v1564_v18 = vrot.slane %v4922_v45, 4  ;;  %v5036_v33 = vsel %vm815_vm4, 0.0, %v855_v26 }
 0x19d   : > { %1628 = vrot.lane.b32.xlu0 %v1560_v22, %s4275_s13 }
 0x19e   : > { %v1074_v44 = vpop.permute.xlu1 %1073  ;;  %v778_v24 = vsel %vm713_vm10, %v663_v59, %v746_v13 }
 0x19f   : > { %v1601_v60 = vpop.permute.xlu0 %1600  ;;  %v1693_v52 = vsel %vm1684_vm14, %v4604_v56, %v1074_v44  ;;  %v1567_v56 = vsel %vm1507_vm8, %v1564_v18, %v1566_v8  ;;  %v1214_v44 = vrot.slane %v4983_v40, 2 }
 0x1a0   : > { %v1789_v35 = vsel %vm364_vm0, %v1757_v28, %v1601_v60  ;;  %1103 = vrot.lane.b32.xlu1 %v1036_v47, %s4273_s9  ;;  %v1565_v47 = vsel %vm1507_vm8, %v1563_v12, %v1564_v18  ;;  %v1217_v28 = vrot.slane %v4999_v5, 2  ;;  %v1568_v18 = vrot.slane %v4983_v40, 4 }
 0x1a1   : > { %1630 = vrot.lane.b32.xlu0 %v1562_v17, %s4275_s13  ;;  %4043 = vmatprep.mubr.msk.f32.mxu1 %vm1818_vm5, %v1789_v35  ;;  %v856_v35 = vrot.slane %v778_v24, 6  ;;  %v1216_v4 = vsel %vm1153_vm6, %v1214_v44, %v1215_v23 }
 0x1a2   : > { %v1076_v51 = vpop.permute.xlu1 %1075  ;;  %v1218_v57 = vsel %vm1153_vm6, %v1215_v23, %v1217_v28  ;;  %v1571_v23 = vrot.slane %v4999_v5, 4 }
 0x1a3   : > { %v1603_v16 = vpop.permute.xlu0 %1602  ;;  %v1694_v48 = vsel %vm1684_vm14, %v4601_v55, %v1076_v51  ;;  %v1394_v51 = vrot.slane %v4999_v5, 3  ;;  %v5052_v12 = vsel %vm815_vm4, %v856_v35, 0.0 }
 0x1a4   : > { %v1790_v61 = vsel %vm364_vm0, %v1758_v58, %v1603_v16  ;;  %1280 = vrot.lane.b32.xlu1 %v1213_v46, %s4272_s30  ;;  %v667_v46 = vpop.f32.mrf.mxu0  ;;  %v5033_v16 = vsel %vm815_vm4, %v855_v26, %v856_v35  ;;  %v1045_v25 = vrot.slane %v5052_v12, 1  ;;  %v1222_v5 = vrot.slane %v5052_v12, 2 }
 0x1a5   : > { %1278 = vrot.lane.b32.xlu0 %v1211_v62, %s4272_s30  ;;  %4044 = vmatmul.mubr.msk.f32.gmra.mxu1 %vm1818_vm5, %v1790_v61  ;;  %v673_v62 = vadd.f32 %v4933_v50, %v4024_v54  ;;  %v668_v1 = vadd.f32 %v4933_v50, %v667_v46  ;;  %v1220_v46 = vrot.slane %v5033_v16, 2 }
 0x1a6   : > { %v1253_v9 = vpop.permute.xlu1 %1252  ;;  %v4027_v28 = vpop.f32.mrf.mxu0 }
 0x1a7   : > { %v1251_v10 = vpop.permute.xlu0 %1250  ;;  %v1727_v58 = vsel %vm1717_vm2, %v1694_v48, %v1253_v9  ;;  %v1391_v9 = vrot.slane %v4983_v40, 3  ;;  %v747_v21 = vmul.f32 %v4437_v36, %v668_v1  ;;  %vm715_vm12 = vcmp.gt.f32.partialorder %v673_v62, 0.0 }
 0x1a8   : > { %1457 = vrot.lane.b32.xlu1 %v1390_v11, %s4274_s12  ;;  %v1726_v60 = vsel %vm1717_vm2, %v1693_v52, %v1251_v10  ;;  %v1042_v10 = vrot.slane %v5036_v33, 1  ;;  %v1043_v11 = vrot.slane %v5033_v16, 1  ;;  %vm714_vm13 = vcmp.gt.f32.partialorder %v668_v1, 0.0 }
 0x1a9   : > { %1455 = vrot.lane.b32.xlu0 %v1388_v15, %s4274_s12  ;;  %v1395_v15 = vsel %vm1330_vm9, %v1392_v34, %v1394_v51  ;;  %v779_v52 = vsel %vm714_vm13, %v668_v1, %v747_v21  ;;  %v1399_v1 = vrot.slane %v5052_v12, 3 }
 0x1aa   : > { %v1430_v22 = vpop.permute.xlu1 %1429  ;;  %v1044_v24 = vsel %vm976_vm7, %v1042_v10, %v1043_v11  ;;  %v1046_v35 = vsel %vm976_vm7, %v1043_v11, %v1045_v25 }
 0x1ab   : > { %v1428_v63 = vpop.permute.xlu0 %1427  ;;  %v1760_v61 = vsel %vm1750_vm3, %v1727_v58, %v1430_v22  ;;  %v1393_v22 = vsel %vm1330_vm9, %v1391_v9, %v1392_v34  ;;  %v1397_v34 = vrot.slane %v5033_v16, 3 }
 0x1ac   : > { %1105 = vrot.lane.b32.xlu1 %v1039_v19, %s4273_s9  ;;  %v1759_v37 = vsel %vm1750_vm3, %v1726_v60, %v1428_v63  ;;  %v748_v19 = vmul.f32 %v4437_v36, %v673_v62  ;;  %v1569_v63 = vrot.slane %v4980_v43, 4 }
 0x1ad   : > { %1632 = vrot.lane.b32.xlu0 %v1565_v47, %s4275_s13  ;;  %v1400_v21 = vsel %vm1330_vm9, %v1397_v34, %v1399_v1 }
 0x1ae   : > { %v1078_v17 = vpop.permute.xlu1 %1077  ;;  %v780_v54 = vsel %vm715_vm12, %v673_v62, %v748_v19 }
 0x1af   : > { %v1605_v0 = vpop.permute.xlu0 %1604  ;;  %v1695_v60 = vsel %vm1684_vm14, %v4645_v29, %v1078_v17  ;;  %v1572_v29 = vsel %vm1507_vm8, %v1569_v63, %v1571_v23  ;;  %v1219_v17 = vrot.slane %v5036_v33, 2 }
 0x1b0   : > { %v1791_v42 = vsel %vm364_vm0, %v1759_v37, %v1605_v0  ;;  %1107 = vrot.lane.b32.xlu1 %v1041_v53, %s4273_s9  ;;  %v1570_v53 = vsel %vm1507_vm8, %v1568_v18, %v1569_v63  ;;  %v859_v37 = vrot.slane %v780_v54, 6 }
 0x1b1   : > { %1634 = vrot.lane.b32.xlu0 %v1567_v56, %s4275_s13  ;;  %4046 = vmatprep.mubr.msk.f32.mxu1 %vm1818_vm5, %v1791_v42  ;;  %v858_v42 = vrot.slane %v779_v52, 6  ;;  %v1221_v11 = vsel %vm1153_vm6, %v1219_v17, %v1220_v46 }
 0x1b2   : > { %v1080_v59 = vpop.permute.xlu1 %1079  ;;  %v5105_v18 = vsel %vm815_vm4, %v859_v37, 0.0 }
 0x1b3   : > { %v1607_v55 = vpop.permute.xlu0 %1606  ;;  %v1696_v58 = vsel %vm1684_vm14, %v4642_v27, %v1080_v59  ;;  %v5089_v51 = vsel %vm815_vm4, 0.0, %v858_v42  ;;  %v1223_v59 = vsel %vm1153_vm6, %v1220_v46, %v1222_v5  ;;  %v1050_v54 = vrot.slane %v5105_v18, 1 }
 0x1b4   : > { %v1792_v3 = vsel %vm364_vm0, %v1760_v61, %v1607_v55  ;;  %1284 = vrot.lane.b32.xlu1 %v1218_v57, %s4272_s30  ;;  %v677_v57 = vpop.f32.mrf.mxu0  ;;  %v5086_v55 = vsel %vm815_vm4, %v858_v42, %v859_v37 }
 0x1b5   : > { %1282 = vrot.lane.b32.xlu0 %v1216_v4, %s4272_s30  ;;  %4047 = vmatmul.mubr.msk.f32.gmra.mxu1 %vm1818_vm5, %v1792_v3  ;;  %v683_v4 = vadd.f32 %v4933_v50, %v4027_v28  ;;  %v678_v9 = vadd.f32 %v4933_v50, %v677_v57 }
 0x1b6   : > { %v1257_v13 = vpop.permute.xlu1 %1256 }
 0x1b7   : > { %v1255_v14 = vpop.permute.xlu0 %1254  ;;  %v1729_v61 = vsel %vm1717_vm2, %v1696_v58, %v1257_v13  ;;  %v1396_v13 = vrot.slane %v5036_v33, 3  ;;  %v750_v63 = vmul.f32 %v4437_v36, %v683_v4  ;;  %vm717_vm15 = vcmp.gt.f32.partialorder %v683_v4, 0.0 }
 0x1b8   : > { %1461 = vrot.lane.b32.xlu1 %v1395_v15, %s4274_s12  ;;  %v1728_v26 = vsel %vm1717_vm2, %v1695_v60, %v1255_v14  ;;  %v1047_v14 = vrot.slane %v5089_v51, 1  ;;  %v1048_v15 = vrot.slane %v5086_v55, 1  ;;  %vm716_vm1 = vcmp.gt.f32.partialorder %v678_v9, 0.0 }
 0x1b9   : > { %1459 = vrot.lane.b32.xlu0 %v1393_v22, %s4274_s12  ;;  %v1573_v22 = vrot.slane %v5036_v33, 4  ;;  %v1398_v25 = vsel %vm1330_vm9, %v1396_v13, %v1397_v34  ;;  %v782_v23 = vsel %vm717_vm15, %v683_v4, %v750_v63  ;;  %v1576_v60 = vrot.slane %v5052_v12, 4 }
 0x1ba   : > { %v1434_v47 = vpop.permute.xlu1 %1433  ;;  %v862_v42 = vrot.slane %v782_v23, 6 }
 0x1bb   : > { %v1432_v8 = vpop.permute.xlu0 %1431  ;;  %v1762_v3 = vsel %vm1750_vm3, %v1729_v61, %v1434_v47  ;;  %v1574_v47 = vrot.slane %v5033_v16, 4 }
 0x1bc   : > { %1109 = vrot.lane.b32.xlu1 %v1044_v24, %s4273_s9  ;;  %v1761_v56 = vsel %vm1750_vm3, %v1728_v26, %v1432_v8  ;;  %v749_v24 = vmul.f32 %v4437_v36, %v678_v9  ;;  %v1049_v8 = vsel %vm976_vm7, %v1047_v14, %v1048_v15  ;;  %v1051_v26 = vsel %vm976_vm7, %v1048_v15, %v1050_v54 }
 0x1bd   : > { %1636 = vrot.lane.b32.xlu0 %v1570_v53, %s4275_s13  ;;  %v1575_v36 = vsel %vm1507_vm8, %v1573_v22, %v1574_v47  ;;  %v943_v13 = vsel %vm815_vm4, %v862_v42, 0.0  ;;  %v1579_v22 = vrot.slane %v5086_v55, 4  ;;  %v1581_v54 = vrot.slane %v5105_v18, 4 }
 0x1be   : > { %v1082_v0 = vpop.permute.xlu1 %1081  ;;  %v781_v28 = vsel %vm716_vm1, %v678_v9, %v749_v24  ;;  %v1401_v9 = vrot.slane %v5089_v51, 3  ;;  %v1055_v24 = vrot.slane %v943_v13, 1 }
 0x1bf   : > { %v1609_v44 = vpop.permute.xlu0 %1608 }
 0x1c0   : > { %v1793_v48 = vsel %vm364_vm0, %v1761_v56, %v1609_v44  ;;  %1111 = vrot.lane.b32.xlu1 %v1046_v35, %s4273_s9  ;;  %v1697_v35 = vsel %vm1684_vm14, %v4686_v6, %v1082_v0  ;;  %v861_v44 = vrot.slane %v781_v28, 6  ;;  %v1577_v6 = vsel %vm1507_vm8, %v1574_v47, %v1576_v60 }
 0x1c1   : > { %1638 = vrot.lane.b32.xlu0 %v1572_v29, %s4275_s13  ;;  %4049 = vmatprep.mubr.msk.f32.mxu1 %vm1818_vm5, %v1793_v48  ;;  %v1225_v48 = vrot.slane %v5086_v55, 2  ;;  %v1227_v29 = vrot.slane %v5105_v18, 2  ;;  %v1224_v0 = vrot.slane %v5089_v51, 2 }
 0x1c2   : > { %v1084_v62 = vpop.permute.xlu1 %1083  ;;  %v5138_v58 = vsel %vm815_vm4, %v861_v44, %v862_v42  ;;  %v5141_v34 = vsel %vm815_vm4, 0.0, %v861_v44 }
 0x1c3   : > { %v1611_v27 = vpop.permute.xlu0 %1610  ;;  %v1698_v17 = vsel %vm1684_vm14, %v4683_v2, %v1084_v62  ;;  %v1402_v2 = vrot.slane %v5086_v55, 3  ;;  %v1404_v62 = vrot.slane %v5105_v18, 3  ;;  %v1226_v4 = vsel %vm1153_vm6, %v1224_v0, %v1225_v48 }
 0x1c4   : > { %v1794_v10 = vsel %vm364_vm0, %v1762_v3, %v1611_v27  ;;  %1288 = vrot.lane.b32.xlu1 %v1223_v59, %s4272_s30  ;;  %v1228_v27 = vsel %vm1153_vm6, %v1225_v48, %v1227_v29  ;;  %v1582_v18 = vsel %vm1507_vm8, %v1579_v22, %v1581_v54  ;;  %v1407_v29 = vrot.slane %v5138_v58, 3 }
 0x1c5   : > { %1286 = vrot.lane.b32.xlu0 %v1221_v11, %s4272_s30  ;;  %4050 = vmatmul.mubr.msk.f32.gmra.mxu1 %vm1818_vm5, %v1794_v10  ;;  %v1052_v10 = vrot.slane %v5141_v34, 1  ;;  %v1053_v11 = vrot.slane %v5138_v58, 1  ;;  %v1406_v0 = vrot.slane %v5141_v34, 3 }
 0x1c6   : > { %v1261_v50 = vpop.permute.xlu1 %1260 }
 0x1c7   : > { %v1259_v19 = vpop.permute.xlu0 %1258  ;;  %v1731_v57 = vsel %vm1717_vm2, %v1698_v17, %v1261_v50  ;;  %v1405_v50 = vsel %vm1330_vm9, %v1402_v2, %v1404_v62  ;;  %v1054_v63 = vsel %vm976_vm7, %v1052_v10, %v1053_v11 }
 0x1c8   : > { %1465 = vrot.lane.b32.xlu1 %v1400_v21, %s4274_s12  ;;  %v1730_v37 = vsel %vm1717_vm2, %v1697_v35, %v1259_v19  ;;  %v1403_v19 = vsel %vm1330_vm9, %v1401_v9, %v1402_v2  ;;  %v1578_v21 = vrot.slane %v5089_v51, 4  ;;  %v1230_v35 = vrot.slane %v5138_v58, 2 }
 0x1c9   : > { %1463 = vrot.lane.b32.xlu0 %v1398_v25, %s4274_s12  ;;  %v1583_v2 = vrot.slane %v5141_v34, 4 }
 0x1ca   : > { %v1438_v52 = vpop.permute.xlu1 %1437 }
 0x1cb   : > { %v1436_v53 = vpop.permute.xlu0 %1435  ;;  %v1764_v1 = vsel %vm1750_vm3, %v1731_v57, %v1438_v52 }
 0x1cc   : > { %1113 = vrot.lane.b32.xlu1 %v1049_v8, %s4273_s9  ;;  %v1763_v46 = vsel %vm1750_vm3, %v1730_v37, %v1436_v53  ;;  %v1580_v8 = vsel %vm1507_vm8, %v1578_v21, %v1579_v22  ;;  %v1056_v53 = vsel %vm976_vm7, %v1053_v11, %v1055_v24 }
 0x1cd   : > { %1640 = vrot.lane.b32.xlu0 %v1575_v36, %s4275_s13 }
 0x1ce   : > { %v1086_v56 = vpop.permute.xlu1 %1085 }
 0x1cf   : > { %v1613_v5 = vpop.permute.xlu0 %1612  ;;  %v1699_v52 = vsel %vm1684_vm14, %v4727_v49, %v1086_v56  ;;  %v1229_v49 = vrot.slane %v5141_v34, 2 }
 0x1d0   : > { %v1795_v12 = vsel %vm364_vm0, %v1763_v46, %v1613_v5  ;;  %1115 = vrot.lane.b32.xlu1 %v1051_v26, %s4273_s9  ;;  %v1232_v26 = vrot.slane %v943_v13, 2 }
 0x1d1   : > { %1642 = vrot.lane.b32.xlu0 %v1577_v6, %s4275_s13  ;;  %4052 = vmatprep.mubr.msk.f32.mxu1 %vm1818_vm5, %v1795_v12  ;;  %v1409_v12 = vrot.slane %v943_v13, 3 }
 0x1d2   : > { %v1088_v61 = vpop.permute.xlu1 %1087  ;;  %v1233_v48 = vsel %vm1153_vm6, %v1230_v35, %v1232_v26 }
 0x1d3   : > { %v1615_v3 = vpop.permute.xlu0 %1614  ;;  %v1700_v42 = vsel %vm1684_vm14, %v4724_v41, %v1088_v61  ;;  %v1231_v41 = vsel %vm1153_vm6, %v1229_v49, %v1230_v35  ;;  %v1410_v61 = vsel %vm1330_vm9, %v1407_v29, %v1409_v12 }
 0x1d4   : > { %v1796_v59 = vsel %vm364_vm0, %v1764_v1, %v1615_v3  ;;  %1292 = vrot.lane.b32.xlu1 %v1228_v27, %s4272_s30  ;;  %v1584_v1 = vrot.slane %v5138_v58, 4  ;;  %v1586_v3 = vrot.slane %v943_v13, 4  ;;  %v1408_v27 = vsel %vm1330_vm9, %v1406_v0, %v1407_v29 }
 0x1d5   : > { %1290 = vrot.lane.b32.xlu0 %v1226_v4, %s4272_s30  ;;  %4053 = vmatmul.mubr.msk.f32.gmra.mxu1 %vm1818_vm5, %v1796_v59 }
 0x1d6   : > { %v1265_v14 = vpop.permute.xlu1 %1264  ;;  %v1587_v4 = vsel %vm1507_vm8, %v1584_v1, %v1586_v3  ;;  %v1585_v9 = vsel %vm1507_vm8, %v1583_v2, %v1584_v1 }
 0x1d7   : > { %v1263_v15 = vpop.permute.xlu0 %1262  ;;  %v1733_v56 = vsel %vm1717_vm2, %v1700_v42, %v1265_v14 }
 0x1d8   : > { %1469 = vrot.lane.b32.xlu1 %v1405_v50, %s4274_s12  ;;  %v1732_v23 = vsel %vm1717_vm2, %v1699_v52, %v1263_v15 }
 0x1d9   : > { %1467 = vrot.lane.b32.xlu0 %v1403_v19, %s4274_s12  ;;  %v4276_v19 = vmov 0.0  }
 0x1da   : > { %v1442_v25 = vpop.permute.xlu1 %1441 }
 0x1db   : > { %v1440_v47 = vpop.permute.xlu0 %1439  ;;  %v1766_v46 = vsel %vm1750_vm3, %v1733_v56, %v1442_v25 }
 0x1dc   : > { %1117 = vrot.lane.b32.xlu1 %v1054_v63, %s4273_s9  ;;  %v1765_v36 = vsel %vm1750_vm3, %v1732_v23, %v1440_v47 }
 0x1dd   : > { %1644 = vrot.lane.b32.xlu0 %v1580_v8, %s4275_s13 }
 0x1de   : > { %v1090_v28 = vpop.permute.xlu1 %1089 }
 0x1df   : > { %v1617_v60 = vpop.permute.xlu0 %1616  ;;  %v1701_v10 = vsel %vm1684_vm14, %v4768_v30, %v1090_v28 }
 0x1e0   : > { %v1797_v37 = vsel %vm364_vm0, %v1765_v36, %v1617_v60  ;;  %1119 = vrot.lane.b32.xlu1 %v1056_v53, %s4273_s9 }
 0x1e1   : > { %1646 = vrot.lane.b32.xlu0 %v1582_v18, %s4275_s13  ;;  %4055 = vmatprep.mubr.msk.f32.mxu1 %vm1818_vm5, %v1797_v37 }
 0x1e2   : > { %v1092_v44 = vpop.permute.xlu1 %1091 }
 0x1e3   : > { %v1619_v5 = vpop.permute.xlu0 %1618  ;;  %v1702_v21 = vsel %vm1684_vm14, %v4765_v20, %v1092_v44 }
 0x1e4   : > { %v1798_v6 = vsel %vm364_vm0, %v1766_v46, %v1619_v5  ;;  %1296 = vrot.lane.b32.xlu1 %v1233_v48, %s4272_s30 }
 0x1e5   : > { %1294 = vrot.lane.b32.xlu0 %v1231_v41, %s4272_s30  ;;  %4056 = vmatmul.mubr.msk.f32.gmra.mxu1 %vm1818_vm5, %v1798_v6 }
 0x1e6   : > { %v1269_v17 = vpop.permute.xlu1 %1268 }
 0x1e7   : > { %v1267_v57 = vpop.permute.xlu0 %1266  ;;  %v1735_v30 = vsel %vm1717_vm2, %v1702_v21, %v1269_v17 }
 0x1e8   : > { %1473 = vrot.lane.b32.xlu1 %v1410_v61, %s4274_s12  ;;  %v1734_v11 = vsel %vm1717_vm2, %v1701_v10, %v1267_v57 }
 0x1e9   : > { %1471 = vrot.lane.b32.xlu0 %v1408_v27, %s4274_s12 }
 0x1ea   : > { %v1446_v62 = vpop.permute.xlu1 %1445 }
 0x1eb   : > { %v1444_v59 = vpop.permute.xlu0 %1443  ;;  %v1768_v63 = vsel %vm1750_vm3, %v1735_v30, %v1446_v62 }
 0x1ec   : > { %1650 = vrot.lane.b32.xlu1 %v1587_v4, %s4275_s13  ;;  %v1767_v14 = vsel %vm1750_vm3, %v1734_v11, %v1444_v59 }
 0x1ed   : > { %1648 = vrot.lane.b32.xlu0 %v1585_v9, %s4275_s13 }
 0x1ee   : > { %v1094_v13 = vpop.permute.xlu1 %1093 }
 0x1ef   : > { %v1621_v15 = vpop.permute.xlu0 %1620  ;;  %v1703_v20 = vsel %vm1684_vm14, %v4819_v32, %v1094_v13 }
 0x1f0   : > { %v1799_v50 = vsel %vm364_vm0, %v1767_v14, %v1621_v15  ;;  %2514 = vrot.lane.b32.xlu1 %v4276_v19, %s4275_s13 }
 0x1f1   : > { %4058 = vmatprep.mubr.msk.f32.mxu1 %vm1818_vm5, %v1799_v50  ;;  %2174 = vrot.lane.b32.xlu0 %v4276_v19, %s4273_s9 }
 0x1f2   : > { %v1096_v22 = vpop.permute.xlu1 %1095 }
 0x1f3   : > { %v1623_v24 = vpop.permute.xlu0 %1622  ;;  %v1704_v35 = vsel %vm1684_vm14, %v4816_v31, %v1096_v22 }
 0x1f4   : > { %v1800_v25 = vsel %vm364_vm0, %v1768_v63, %v1623_v24 }
 0x1f5   : > { %4059 = vmatmul.mubr.msk.f32.gmra.mxu1 %vm1818_vm5, %v1800_v25 }
 0x1f6   : > { %v1273_v47 = vpop.permute.xlu1 %1272 }
 0x1f7   : > { %v1271_v8 = vpop.permute.xlu0 %1270  ;;  %v1737_v26 = vsel %vm1717_vm2, %v1704_v35, %v1273_v47 }
 0x1f8   : > { %v1736_v53 = vsel %vm1717_vm2, %v1703_v20, %v1271_v8 }
 0x1fa   : > { %v1450_v54 = vpop.permute.xlu1 %1449 }
 0x1fb   : > { %v1448_v52 = vpop.permute.xlu0 %1447  ;;  %v1770_v18 = vsel %vm1750_vm3, %v1737_v26, %v1450_v54 }
 0x1fc   : > { %v1769_v28 = vsel %vm1750_vm3, %v1736_v53, %v1448_v52 }
 0x1fe   : > { %v1098_v23 = vpop.permute.xlu1 %1097 }
 0x1ff   : > { %v1625_v36 = vpop.permute.xlu0 %1624  ;;  %v1705_v5 = vsel %vm1684_vm14, %v4872_v39, %v1098_v23 }
 0x200   : > { %v1801_v60 = vsel %vm364_vm0, %v1769_v28, %v1625_v36 }
 0x201   : > { %4061 = vmatprep.mubr.msk.f32.mxu1 %vm1818_vm5, %v1801_v60 }
 0x202   : > { %v1100_v37 = vpop.permute.xlu1 %1099 }
 0x203   : > { %v1627_v49 = vpop.permute.xlu0 %1626  ;;  %v1706_v41 = vsel %vm1684_vm14, %v4869_v38, %v1100_v37 }
 0x204   : > { %v1802_v32 = vsel %vm364_vm0, %v1770_v18, %v1627_v49 }
 0x205   : > { %4062 = vmatmul.mubr.msk.f32.gmra.mxu1 %vm1818_vm5, %v1802_v32 }
 0x206   : > { %v1277_v42 = vpop.permute.xlu1 %1276 }
 0x207   : > { %v1275_v56 = vpop.permute.xlu0 %1274  ;;  %v1739_v0 = vsel %vm1717_vm2, %v1706_v41, %v1277_v42 }
 0x208   : > { %v1738_v31 = vsel %vm1717_vm2, %v1705_v5, %v1275_v56 }
 0x20a   : > { %v1454_v44 = vpop.permute.xlu1 %1453 }
 0x20b   : > { %v1452_v46 = vpop.permute.xlu0 %1451  ;;  %v1772_v57 = vsel %vm1750_vm3, %v1739_v0, %v1454_v44  ;;  %v2674_v0 = vld [vmem:[%s6145_s3 + $0x10] sm:$0xf] }
 0x20c   : > { %v1771_v29 = vsel %vm1750_vm3, %v1738_v31, %v1452_v46  ;;  %4082 = vmatprep.subr.msk.mxu0 %vm1507_vm8, %v2674_v0 }
 0x20d   : > { %4083 = vmatpush3.msk.msra.mxu0 %vm1507_vm8, %v2674_v0 }
 0x20e   : > { %v1102_v48 = vpop.permute.xlu1 %1101 }
 0x20f   : > { %v1629_v12 = vpop.permute.xlu0 %1628  ;;  %v1707_v62 = vsel %vm1684_vm14, %v4925_v7, %v1102_v48 }
 0x210   : > { %v1803_v6 = vsel %vm364_vm0, %v1771_v29, %v1629_v12 }
 0x211   : > { %4064 = vmatprep.mubr.msk.f32.mxu1 %vm1818_vm5, %v1803_v6 }
 0x212   : > { %v1104_v17 = vpop.permute.xlu1 %1103 }
 0x213   : > { %v1631_v61 = vpop.permute.xlu0 %1630  ;;  %v1708_v11 = vsel %vm1684_vm14, %v4922_v45, %v1104_v17 }
 0x214   : > { %v1804_v39 = vsel %vm364_vm0, %v1772_v57, %v1631_v61  ;;  %v2673_v57 = vld [vmem:[%s6145_s3 + $0x8] sm:$0xff] }
 0x215   : > { %4065 = vmatmul.mubr.msk.f32.gmra.mxu1 %vm1818_vm5, %v1804_v39  ;;  %4084 = vmatprep.subr.mxu0 %v2673_v57 }
 0x216   : > { %v1281_v1 = vpop.permute.xlu1 %1280  ;;  %4085 = vmatpush3.msra.mxu0 %v2673_v57 }
 0x217   : > { %v1279_v3 = vpop.permute.xlu0 %1278  ;;  %v1741_v13 = vsel %vm1717_vm2, %v1708_v11, %v1281_v1  ;;  %v2672_v1 = vld [vmem:[%s6145_s3] sm:$0xff] }
 0x218   : > { %v1740_v38 = vsel %vm1717_vm2, %v1707_v62, %v1279_v3  ;;  %4086 = vmatprep.subr.mxu0 %v2672_v1 }
 0x219   : > { %4087 = vmatpush3.msra.mxu0 %v2672_v1 }
 0x21a   : > { %v1458_v27 = vpop.permute.xlu1 %1457 }
 0x21b   : > { %v1456_v2 = vpop.permute.xlu0 %1455  ;;  %v1774_v15 = vsel %vm1750_vm3, %v1741_v13, %v1458_v27 }
 0x21c   : > { %v1773_v4 = vsel %vm1750_vm3, %v1740_v38, %v1456_v2 }
 0x21e   : > { %v1106_v59 = vpop.permute.xlu1 %1105 }
 0x21f   : > { %v1633_v9 = vpop.permute.xlu0 %1632  ;;  %v1709_v24 = vsel %vm1684_vm14, %v4983_v40, %v1106_v59 }
 0x220   : > { %v1805_v10 = vsel %vm364_vm0, %v1773_v4, %v1633_v9 }
 0x221   : > { %4067 = vmatprep.mubr.msk.f32.mxu1 %vm1818_vm5, %v1805_v10 }
 0x222   : > { %v1108_v14 = vpop.permute.xlu1 %1107 }
 0x223   : > { %v1635_v50 = vpop.permute.xlu0 %1634  ;;  %v1710_v52 = vsel %vm1684_vm14, %v4980_v43, %v1108_v14 }
 0x224   : > { %v1806_v7 = vsel %vm364_vm0, %v1774_v15, %v1635_v50 }
 0x225   : > { %4068 = vmatmul.mubr.msk.f32.gmra.mxu1 %vm1818_vm5, %v1806_v7 }
 0x226   : > { %v1285_v21 = vpop.permute.xlu1 %1284 }
 0x227   : > { %v1283_v30 = vpop.permute.xlu0 %1282  ;;  %v1743_v20 = vsel %vm1717_vm2, %v1710_v52, %v1285_v21 }
 0x228   : > { %v1742_v45 = vsel %vm1717_vm2, %v1709_v24, %v1283_v30 }
 0x22a   : > { %v1462_v22 = vpop.permute.xlu1 %1461 }
 0x22b   : > { %v1460_v63 = vpop.permute.xlu0 %1459  ;;  %v1776_v23 = vsel %vm1750_vm3, %v1743_v20, %v1462_v22 }
 0x22c   : > { %v1775_v47 = vsel %vm1750_vm3, %v1742_v45, %v1460_v63 }
 0x22e   : > { %v1110_v25 = vpop.permute.xlu1 %1109 }
 0x22f   : > { %v1637_v8 = vpop.permute.xlu0 %1636  ;;  %v1711_v18 = vsel %vm1684_vm14, %v5036_v33, %v1110_v25 }
 0x230   : > { %v1807_v54 = vsel %vm364_vm0, %v1775_v47, %v1637_v8 }
 0x231   : > { %4070 = vmatprep.mubr.msk.f32.mxu1 %vm1818_vm5, %v1807_v54 }
 0x232   : > { %v1112_v53 = vpop.permute.xlu1 %1111 }
 0x233   : > { %v1639_v28 = vpop.permute.xlu0 %1638  ;;  %v1712_v46 = vsel %vm1684_vm14, %v5033_v16, %v1112_v53 }
 0x234   : > { %v1808_v40 = vsel %vm364_vm0, %v1776_v23, %v1639_v28 }
 0x235   : > { %v5264_v36 = vpop.f32.mrf.mxu1  ;;  %4071 = vmatmul.mubr.msk.f32.gmra.mxu1 %vm1818_vm5, %v1808_v40 }
 0x236   : > { %2271 = vrot.lane.b32.xlu0 %v5264_v36, %s4272_s30  ;;  %v1289_v60 = vpop.permute.xlu1 %1288 }
 0x237   : > { %v5269_v35 = vpop.f32.mrf.mxu1  ;;  %v1287_v43 = vpop.permute.xlu0 %1286  ;;  %v1745_v5 = vsel %vm1717_vm2, %v1712_v46, %v1289_v60 }
 0x238   : > { %2269 = vrot.lane.b32.xlu1 %v5269_v35, %s4272_s30  ;;  %v1744_v49 = vsel %vm1717_vm2, %v1711_v18, %v1287_v43 }
 0x23a   : > { %2178 = vrot.lane.b32.xlu0 %v5264_v36, %s4273_s9  ;;  %v1466_v26 = vpop.permute.xlu1 %1465 }
 0x23b   : > { %v1464_v37 = vpop.permute.xlu0 %1463  ;;  %v1778_v33 = vsel %vm1750_vm3, %v1745_v5, %v1466_v26 }
 0x23c   : > { %v1777_v42 = vsel %vm1750_vm3, %v1744_v49, %v1464_v37 }
 0x23e   : > { %2176 = vrot.lane.b32.xlu0 %v5269_v35, %s4273_s9  ;;  %v1114_v32 = vpop.permute.xlu1 %1113 }
 0x23f   : > { %v1641_v56 = vpop.permute.xlu0 %1640  ;;  %v1713_v39 = vsel %vm1684_vm14, %v5089_v51, %v1114_v32 }
 0x240   : > { %v1809_v44 = vsel %vm364_vm0, %v1777_v42, %v1641_v56 }
 0x241   : > { %4073 = vmatprep.mubr.msk.f32.mxu1 %vm1818_vm5, %v1809_v44 }
 0x242   : > { %v1116_v31 = vpop.permute.xlu1 %1115 }
 0x243   : > { %v1643_v48 = vpop.permute.xlu0 %1642  ;;  %v1714_v51 = vsel %vm1684_vm14, %v5086_v55, %v1116_v31 }
 0x244   : > { %v1810_v29 = vsel %vm364_vm0, %v1778_v33, %v1643_v48 }
 0x245   : > { %v5288_v12 = vpop.f32.mrf.mxu1  ;;  %4074 = vmatmul.mubr.msk.f32.gmra.mxu1 %vm1818_vm5, %v1810_v29 }
 0x246   : > { %2367 = vrot.lane.b32.xlu0 %v5288_v12, %s4274_s12  ;;  %v1293_v6 = vpop.permute.xlu1 %1292 }
 0x247   : > { %v5293_v41 = vpop.f32.mrf.mxu1  ;;  %v1291_v16 = vpop.permute.xlu0 %1290  ;;  %v1747_v59 = vsel %vm1717_vm2, %v1714_v51, %v1293_v6 }
 0x248   : > { %2365 = vrot.lane.b32.xlu1 %v5293_v41, %s4274_s12  ;;  %v1746_v3 = vsel %vm1717_vm2, %v1713_v39, %v1291_v16 }
 0x24a   : > { %2275 = vrot.lane.b32.xlu0 %v5288_v12, %s4272_s30  ;;  %v1470_v17 = vpop.permute.xlu1 %1469 }
 0x24b   : > { %v1468_v61 = vpop.permute.xlu0 %1467  ;;  %v1780_v9 = vsel %vm1750_vm3, %v1747_v59, %v1470_v17 }
 0x24c   : > { %2273 = vrot.lane.b32.xlu1 %v5293_v41, %s4272_s30  ;;  %v1779_v2 = vsel %vm1750_vm3, %v1746_v3, %v1468_v61 }
 0x24e   : > { %2182 = vrot.lane.b32.xlu0 %v5288_v12, %s4273_s9  ;;  %v1118_v27 = vpop.permute.xlu1 %1117 }
 0x24f   : > { %v1645_v62 = vpop.permute.xlu0 %1644  ;;  %v1715_v21 = vsel %vm1684_vm14, %v5141_v34, %v1118_v27 }
 0x250   : > { %v1811_v38 = vsel %vm364_vm0, %v1779_v2, %v1645_v62 }
 0x251   : > { %4076 = vmatprep.mubr.msk.f32.mxu1 %vm1818_vm5, %v1811_v38 }
 0x252   : > { %2180 = vrot.lane.b32.xlu0 %v5293_v41, %s4273_s9  ;;  %v1120_v4 = vpop.permute.xlu1 %1119 }
 0x253   : > { %v1647_v10 = vpop.permute.xlu0 %1646  ;;  %v1716_v30 = vsel %vm1684_vm14, %v5138_v58, %v1120_v4 }
 0x254   : > { %v1812_v11 = vsel %vm364_vm0, %v1780_v9, %v1647_v10 }
 0x255   : > { %v5327_v13 = vpop.f32.mrf.mxu1  ;;  %4077 = vmatmul.mubr.msk.f32.gmra.mxu1 %vm1818_vm5, %v1812_v11 }
 0x256   : > { %2460 = vrot.lane.b32.xlu1 %v5327_v13, %s4275_s13  ;;  %2371 = vrot.lane.b32.xlu0 %v5327_v13, %s4274_s12  ;;  %v1297_v55 = vpop.permute.xlu1 %1296 }
 0x257   : > { %v1295_v14 = vpop.permute.xlu0 %1294  ;;  %v5334_v15 = vpop.f32.mrf.mxu1  ;;  %v1749_v22 = vsel %vm1717_vm2, %v1716_v30, %v1297_v55 }
 0x258   : > { %v1748_v63 = vsel %vm1717_vm2, %v1715_v21, %v1295_v14 }
 0x25a   : > { %2458 = vrot.lane.b32.xlu1 %v5334_v15, %s4275_s13  ;;  %2279 = vrot.lane.b32.xlu0 %v5327_v13, %s4272_s30  ;;  %v1474_v50 = vpop.permute.xlu1 %1473 }
 0x25b   : > { %v1472_v7 = vpop.permute.xlu0 %1471  ;;  %v1782_v45 = vsel %vm1750_vm3, %v1749_v22, %v1474_v50 }
 0x25c   : > { %v1781_v25 = vsel %vm1750_vm3, %v1748_v63, %v1472_v7 }
 0x25e   : > { %2369 = vrot.lane.b32.xlu1 %v5334_v15, %s4274_s12  ;;  %2186 = vrot.lane.b32.xlu0 %v5327_v13, %s4273_s9  ;;  %v1651_v24 = vpop.permute.xlu1 %1650 }
 0x25f   : > { %v1649_v47 = vpop.permute.xlu0 %1648  ;;  %v1814_v34 = vsel %vm364_vm0, %v1782_v45, %v1651_v24 }
 0x260   : > { %v1813_v58 = vsel %vm364_vm0, %v1781_v25, %v1649_v47 }
 0x261   : > { %4079 = vmatprep.mubr.msk.f32.mxu1 %vm1818_vm5, %v1813_v58 }
 0x262   : > { %2277 = vrot.lane.b32.xlu1 %v5334_v15, %s4272_s30  ;;  %2184 = vrot.lane.b32.xlu0 %v5334_v15, %s4273_s9  ;;  %v5460_v49 = vpop.permute.xlu1 %2514 }
 0x263   : > { %4080 = vmatmul.mubr.msk.f32.gmra.mxu1 %vm1818_vm5, %v1814_v34  ;;  %v2175_v60 = vpop.permute.xlu0 %2174 }
 0x264   : > { %v2545_v57 = vsel %vm1684_vm14, 0.0, %v2175_v60 }
 0x265   : > { %v5360_v8 = vpop.f32.mrf.mxu1 }
 0x266   : > { %2464 = vrot.lane.b32.xlu1 %v5360_v8, %s4275_s13  ;;  %2375 = vrot.lane.b32.xlu0 %v5360_v8, %s4274_s12 }
 0x267   : > { %v5366_v54 = vpop.f32.mrf.mxu1 }
 0x26a   : > { %2462 = vrot.lane.b32.xlu1 %v5366_v54, %s4275_s13  ;;  %2283 = vrot.lane.b32.xlu0 %v5360_v8, %s4272_s30 }
 0x26e   : > { %2373 = vrot.lane.b32.xlu1 %v5366_v54, %s4274_s12  ;;  %2190 = vrot.lane.b32.xlu0 %v5360_v8, %s4273_s9 }
 0x272   : > { %2281 = vrot.lane.b32.xlu1 %v5366_v54, %s4272_s30  ;;  %2188 = vrot.lane.b32.xlu0 %v5366_v54, %s4273_s9 }
 0x275   : > { %v5380_v52 = vpop.f32.mrf.mxu1 }
 0x276   : > { %2468 = vrot.lane.b32.xlu1 %v5380_v52, %s4275_s13  ;;  %2379 = vrot.lane.b32.xlu0 %v5380_v52, %s4274_s12 }
 0x277   : > { %v5386_v20 = vpop.f32.mrf.mxu1 }
 0x27a   : > { %2466 = vrot.lane.b32.xlu1 %v5386_v20, %s4275_s13  ;;  %2287 = vrot.lane.b32.xlu0 %v5380_v52, %s4272_s30 }
 0x27e   : > { %2377 = vrot.lane.b32.xlu1 %v5386_v20, %s4274_s12  ;;  %2194 = vrot.lane.b32.xlu0 %v5380_v52, %s4273_s9 }
 0x282   : > { %2285 = vrot.lane.b32.xlu1 %v5386_v20, %s4272_s30  ;;  %2192 = vrot.lane.b32.xlu0 %v5386_v20, %s4273_s9 }
 0x285   : > { %v5400_v53 = vpop.f32.mrf.mxu1 }
 0x286   : > { %2472 = vrot.lane.b32.xlu1 %v5400_v53, %s4275_s13  ;;  %2383 = vrot.lane.b32.xlu0 %v5400_v53, %s4274_s12 }
 0x287   : > { %v5406_v23 = vpop.f32.mrf.mxu1 }
 0x28a   : > { %2470 = vrot.lane.b32.xlu1 %v5406_v23, %s4275_s13  ;;  %2291 = vrot.lane.b32.xlu0 %v5400_v53, %s4272_s30 }
 0x28e   : > { %2381 = vrot.lane.b32.xlu1 %v5406_v23, %s4274_s12  ;;  %2198 = vrot.lane.b32.xlu0 %v5400_v53, %s4273_s9 }
 0x292   : > { %2289 = vrot.lane.b32.xlu1 %v5406_v23, %s4272_s30  ;;  %2196 = vrot.lane.b32.xlu0 %v5406_v23, %s4273_s9 }
 0x295   : > { %v5420_v28 = vpop.f32.mrf.mxu1 }
 0x296   : > { %2476 = vrot.lane.b32.xlu1 %v5420_v28, %s4275_s13  ;;  %2387 = vrot.lane.b32.xlu0 %v5420_v28, %s4274_s12 }
 0x297   : > { %v5426_v40 = vpop.f32.mrf.mxu1 }
 0x29a   : > { %2474 = vrot.lane.b32.xlu1 %v5426_v40, %s4275_s13  ;;  %2295 = vrot.lane.b32.xlu0 %v5420_v28, %s4272_s30 }
 0x29e   : > { %2385 = vrot.lane.b32.xlu1 %v5426_v40, %s4274_s12  ;;  %2202 = vrot.lane.b32.xlu0 %v5420_v28, %s4273_s9 }
 0x2a2   : > { %2293 = vrot.lane.b32.xlu1 %v5426_v40, %s4272_s30  ;;  %2200 = vrot.lane.b32.xlu0 %v5426_v40, %s4273_s9 }
 0x2a5   : > { %v5440_v43 = vpop.f32.mrf.mxu1 }
 0x2a6   : > { %2480 = vrot.lane.b32.xlu1 %v5440_v43, %s4275_s13  ;;  %2391 = vrot.lane.b32.xlu0 %v5440_v43, %s4274_s12 }
 0x2a7   : > { %v5446_v37 = vpop.f32.mrf.mxu1 }
 0x2a8   : > { %v2272_v26 = vpop.permute.xlu0 %2271 }
 0x2a9   : > { %v2577_v27 = vsel %vm1717_vm2, %v2545_v57, %v2272_v26 }
 0x2aa   : > { %2478 = vrot.lane.b32.xlu1 %v5446_v37, %s4275_s13  ;;  %2299 = vrot.lane.b32.xlu0 %v5440_v43, %s4272_s30  ;;  %v2270_v46 = vpop.permute.xlu1 %2269 }
 0x2ab   : > { %v2576_v61 = vsel %vm1717_vm2, %v2545_v57, %v2270_v46 }
 0x2ac   : > { %v2179_v18 = vpop.permute.xlu0 %2178 }
 0x2ad   : > { %v2547_v21 = vsel %vm1684_vm14, 0.0, %v2179_v18 }
 0x2ae   : > { %2389 = vrot.lane.b32.xlu1 %v5446_v37, %s4274_s12  ;;  %2206 = vrot.lane.b32.xlu0 %v5440_v43, %s4273_s9 }
 0x2b0   : > { %v2177_v32 = vpop.permute.xlu0 %2176 }
 0x2b1   : > { %v2546_v50 = vsel %vm1684_vm14, 0.0, %v2177_v32 }
 0x2b2   : > { %2297 = vrot.lane.b32.xlu1 %v5446_v37, %s4272_s30  ;;  %2204 = vrot.lane.b32.xlu0 %v5446_v37, %s4273_s9 }
 0x2b5   : > { %v5462_v42 = vpop.f32.mrf.mxu1 }
 0x2b6   : > { %2484 = vrot.lane.b32.xlu1 %v5462_v42, %s4275_s13  ;;  %2395 = vrot.lane.b32.xlu0 %v5462_v42, %s4274_s12 }
 0x2b7   : > { %v5468_v44 = vpop.f32.mrf.mxu1 }
 0x2b8   : > { %v2368_v56 = vpop.permute.xlu0 %2367 }
 0x2b9   : > { %v2609_v62 = vsel %vm1750_vm3, %v2577_v27, %v2368_v56 }
 0x2ba   : > { %2482 = vrot.lane.b32.xlu1 %v5468_v44, %s4275_s13  ;;  %2303 = vrot.lane.b32.xlu0 %v5462_v42, %s4272_s30  ;;  %v2366_v31 = vpop.permute.xlu1 %2365 }
 0x2bb   : > { %v2608_v39 = vsel %vm1750_vm3, %v2576_v61, %v2366_v31 }
 0x2bc   : > { %v2276_v5 = vpop.permute.xlu0 %2275 }
 0x2bd   : > { %v2579_v24 = vsel %vm1717_vm2, %v2547_v21, %v2276_v5 }
 0x2be   : > { %2393 = vrot.lane.b32.xlu1 %v5468_v44, %s4274_s12  ;;  %2210 = vrot.lane.b32.xlu0 %v5462_v42, %s4273_s9  ;;  %v2274_v48 = vpop.permute.xlu1 %2273 }
 0x2bf   : > { %v2578_v7 = vsel %vm1717_vm2, %v2546_v50, %v2274_v48 }
 0x2c0   : > { %v5478_v33 = vpop.permute.xlu0 %2182 }
 0x2c1   : > { %v2549_v48 = vsel %vm1684_vm14, %v5264_v36, %v5478_v33 }
 0x2c2   : > { %2301 = vrot.lane.b32.xlu1 %v5468_v44, %s4272_s30  ;;  %2208 = vrot.lane.b32.xlu0 %v5468_v44, %s4273_s9 }
 0x2c4   : > { %v5484_v29 = vpop.permute.xlu0 %2180 }
 0x2c5   : > { %v5486_v6 = vpop.f32.mrf.mxu1  ;;  %v2548_v5 = vsel %vm1684_vm14, %v5269_v35, %v5484_v29 }
 0x2c6   : > { %2488 = vrot.lane.b32.xlu1 %v5486_v6, %s4275_s13  ;;  %2399 = vrot.lane.b32.xlu0 %v5486_v6, %s4274_s12 }
 0x2c7   : > { %v5492_v17 = vpop.f32.mrf.mxu1 }
 0x2c8   : > { %v2461_v16 = vpop.permute.xlu1 %2460  ;;  %v2372_v0 = vpop.permute.xlu0 %2371 }
 0x2c9   : > { %v2641_v38 = vsel %vm364_vm0, %v2609_v62, %v2461_v16  ;;  %v2611_v25 = vsel %vm1750_vm3, %v2579_v24, %v2372_v0 }
 0x2ca   : > { %2486 = vrot.lane.b32.xlu1 %v5492_v17, %s4275_s13  ;;  %2307 = vrot.lane.b32.xlu0 %v5486_v6, %s4272_s30 }
 0x2cc   : > { %v2459_v1 = vpop.permute.xlu1 %2458  ;;  %v2280_v3 = vpop.permute.xlu0 %2279 }
 0x2cd   : > { %v2640_v2 = vsel %vm364_vm0, %v2608_v39, %v2459_v1  ;;  %v2581_v61 = vsel %vm1717_vm2, %v2549_v48, %v2280_v3 }
 0x2ce   : > { %2397 = vrot.lane.b32.xlu1 %v5492_v17, %s4274_s12  ;;  %2214 = vrot.lane.b32.xlu0 %v5486_v6, %s4273_s9 }
 0x2cf   : > { %4088 = vmatprep.mubr.msk.f32.mxu0 %vm1818_vm5, %v2640_v2 }
 0x2d0   : > { %4089 = vmatmul.mubr.msk.f32.vlgmr.msra.gmra.mxu0 %vm1818_vm5, %v2641_v38  ;;  %v2370_v51 = vpop.permute.xlu1 %2369  ;;  %v5511_v59 = vpop.permute.xlu0 %2186 }
 0x2d1   : > { %v2610_v30 = vsel %vm1750_vm3, %v2578_v7, %v2370_v51 }
 0x2d2   : > { %2305 = vrot.lane.b32.xlu1 %v5492_v17, %s4272_s30  ;;  %2212 = vrot.lane.b32.xlu0 %v5492_v17, %s4273_s9 }
 0x2d4   : > { %v2278_v4 = vpop.permute.xlu1 %2277  ;;  %v5517_v9 = vpop.permute.xlu0 %2184 }
 0x2d5   : > { %v5519_v10 = vpop.f32.mrf.mxu1  ;;  %v2580_v31 = vsel %vm1717_vm2, %v2548_v5, %v2278_v4  ;;  %v2550_v51 = vsel %vm1684_vm14, %v5293_v41, %v5517_v9 }
 0x2d6   : > { %2492 = vrot.lane.b32.xlu1 %v5519_v10, %s4275_s13  ;;  %2403 = vrot.lane.b32.xlu0 %v5519_v10, %s4274_s12 }
 0x2d7   : > { %v5525_v14 = vpop.f32.mrf.mxu1 }
 0x2d8   : > { %v2465_v11 = vpop.permute.xlu1 %2464  ;;  %v2376_v55 = vpop.permute.xlu0 %2375 }
 0x2d9   : > { %v2643_v47 = vsel %vm364_vm0, %v2611_v25, %v2465_v11  ;;  %v2613_v29 = vsel %vm1750_vm3, %v2581_v61, %v2376_v55  ;;  %v2551_v11 = vsel %vm1684_vm14, %v5288_v12, %v5511_v59 }
 0x2da   : > { %2490 = vrot.lane.b32.xlu1 %v5525_v14, %s4275_s13  ;;  %2311 = vrot.lane.b32.xlu0 %v5519_v10, %s4272_s30 }
 0x2dc   : > { %v2463_v22 = vpop.permute.xlu1 %2462  ;;  %v2284_v63 = vpop.permute.xlu0 %2283 }
 0x2dd   : > { %v2642_v45 = vsel %vm364_vm0, %v2610_v30, %v2463_v22  ;;  %v2583_v21 = vsel %vm1717_vm2, %v2551_v11, %v2284_v63 }
 0x2de   : > { %2401 = vrot.lane.b32.xlu1 %v5525_v14, %s4274_s12  ;;  %2218 = vrot.lane.b32.xlu0 %v5519_v10, %s4273_s9 }
 0x2df   : > { %4091 = vmatprep.mubr.msk.f32.mxu0 %vm1818_vm5, %v2642_v45 }
 0x2e0   : > { %4092 = vmatmul.mubr.msk.f32.gmra.mxu0 %vm1818_vm5, %v2643_v47  ;;  %v2374_v34 = vpop.permute.xlu1 %2373  ;;  %v5545_v58 = vpop.permute.xlu0 %2190 }
 0x2e1   : > { %v2612_v16 = vsel %vm1750_vm3, %v2580_v31, %v2374_v34 }
 0x2e2   : > { %2309 = vrot.lane.b32.xlu1 %v5525_v14, %s4272_s30  ;;  %2216 = vrot.lane.b32.xlu0 %v5525_v14, %s4273_s9 }
 0x2e4   : > { %v2282_v60 = vpop.permute.xlu1 %2281  ;;  %v5551_v26 = vpop.permute.xlu0 %2188 }
 0x2e5   : > { %v5553_v18 = vpop.f32.mrf.mxu1  ;;  %v2582_v4 = vsel %vm1717_vm2, %v2550_v51, %v2282_v60  ;;  %v2552_v34 = vsel %vm1684_vm14, %v5334_v15, %v5551_v26 }
 0x2e6   : > { %2496 = vrot.lane.b32.xlu1 %v5553_v18, %s4275_s13  ;;  %2407 = vrot.lane.b32.xlu0 %v5553_v18, %s4274_s12 }
 0x2e7   : > { %v5559_v46 = vpop.f32.mrf.mxu1 }
 0x2e8   : > { %v2469_v32 = vpop.permute.xlu1 %2468  ;;  %v2380_v56 = vpop.permute.xlu0 %2379 }
 0x2e9   : > { %v2645_v39 = vsel %vm364_vm0, %v2613_v29, %v2469_v32  ;;  %v2615_v9 = vsel %vm1750_vm3, %v2583_v21, %v2380_v56  ;;  %v2553_v32 = vsel %vm1684_vm14, %v5327_v13, %v5545_v58 }
 0x2ea   : > { %2494 = vrot.lane.b32.xlu1 %v5559_v46, %s4275_s13  ;;  %2315 = vrot.lane.b32.xlu0 %v5553_v18, %s4272_s30 }
 0x2ec   : > { %v2467_v0 = vpop.permute.xlu1 %2466  ;;  %v2288_v57 = vpop.permute.xlu0 %2287 }
 0x2ed   : > { %v2644_v35 = vsel %vm364_vm0, %v2612_v16, %v2467_v0  ;;  %v2585_v48 = vsel %vm1717_vm2, %v2553_v32, %v2288_v57 }
 0x2ee   : > { %2405 = vrot.lane.b32.xlu1 %v5559_v46, %s4274_s12  ;;  %2222 = vrot.lane.b32.xlu0 %v5553_v18, %s4273_s9 }
 0x2ef   : > { %4094 = vmatprep.mubr.msk.f32.mxu0 %vm1818_vm5, %v2644_v35  ;;  %v3096_v35 = vld [vmem:[%s6146_s4] sm:$0xf] }
 0x2f0   : > { %4095 = vmatmul.mubr.msk.f32.gmra.mxu0 %vm1818_vm5, %v2645_v39  ;;  %v2378_v36 = vpop.permute.xlu1 %2377  ;;  %v5583_v33 = vpop.permute.xlu0 %2194  ;;  %4136 = vmatprep.subr.msk.mxu1 %vm1507_vm8, %v3096_v35 }
 0x2f1   : > { %v2614_v55 = vsel %vm1750_vm3, %v2582_v4, %v2378_v36  ;;  %4137 = vmatpush3.msk.msra.mxu1 %vm1507_vm8, %v3096_v35 }
 0x2f2   : > { %2313 = vrot.lane.b32.xlu1 %v5559_v46, %s4272_s30  ;;  %2220 = vrot.lane.b32.xlu0 %v5559_v46, %s4273_s9 }
 0x2f4   : > { %v2286_v1 = vpop.permute.xlu1 %2285  ;;  %v5589_v3 = vpop.permute.xlu0 %2192 }
 0x2f5   : > { %v5591_v27 = vpop.f32.mrf.mxu1  ;;  %v2584_v60 = vsel %vm1717_vm2, %v2552_v34, %v2286_v1  ;;  %v2554_v36 = vsel %vm1684_vm14, %v5366_v54, %v5589_v3 }
 0x2f6   : > { %2500 = vrot.lane.b32.xlu1 %v5591_v27, %s4275_s13  ;;  %2411 = vrot.lane.b32.xlu0 %v5591_v27, %s4274_s12 }
 0x2f7   : > { %v5597_v38 = vpop.f32.mrf.mxu1 }
 0x2f8   : > { %v2473_v2 = vpop.permute.xlu1 %2472  ;;  %v2384_v62 = vpop.permute.xlu0 %2383 }
 0x2f9   : > { %v2647_v30 = vsel %vm364_vm0, %v2615_v9, %v2473_v2  ;;  %v2617_v26 = vsel %vm1750_vm3, %v2585_v48, %v2384_v62  ;;  %v2555_v2 = vsel %vm1684_vm14, %v5360_v8, %v5583_v33 }
 0x2fa   : > { %2498 = vrot.lane.b32.xlu1 %v5597_v38, %s4275_s13  ;;  %2319 = vrot.lane.b32.xlu0 %v5591_v27, %s4272_s30 }
 0x2fc   : > { %v2471_v50 = vpop.permute.xlu1 %2470  ;;  %v2292_v7 = vpop.permute.xlu0 %2291 }
 0x2fd   : > { %v2646_v41 = vsel %vm364_vm0, %v2614_v55, %v2471_v50  ;;  %v2587_v11 = vsel %vm1717_vm2, %v2555_v2, %v2292_v7 }
 0x2fe   : > { %2409 = vrot.lane.b32.xlu1 %v5597_v38, %s4274_s12  ;;  %2226 = vrot.lane.b32.xlu0 %v5591_v27, %s4273_s9 }
 0x2ff   : > { %4097 = vmatprep.mubr.msk.f32.mxu0 %vm1818_vm5, %v2646_v41 }
 0x300   : > { %4098 = vmatmul.mubr.msk.f32.gmra.mxu0 %vm1818_vm5, %v2647_v30  ;;  %v2382_v12 = vpop.permute.xlu1 %2381  ;;  %v5621_v59 = vpop.permute.xlu0 %2198 }
 0x301   : > { %v2616_v56 = vsel %vm1750_vm3, %v2584_v60, %v2382_v12 }
 0x302   : > { %2317 = vrot.lane.b32.xlu1 %v5597_v38, %s4272_s30  ;;  %2224 = vrot.lane.b32.xlu0 %v5597_v38, %s4273_s9 }
 0x304   : > { %v2290_v22 = vpop.permute.xlu1 %2289  ;;  %v5627_v63 = vpop.permute.xlu0 %2196 }
 0x305   : > { %v5629_v24 = vpop.f32.mrf.mxu1  ;;  %v2586_v1 = vsel %vm1717_vm2, %v2554_v36, %v2290_v22  ;;  %v2556_v22 = vsel %vm1684_vm14, %v5386_v20, %v5627_v63 }
 0x306   : > { %2504 = vrot.lane.b32.xlu1 %v5629_v24, %s4275_s13  ;;  %2415 = vrot.lane.b32.xlu0 %v5629_v24, %s4274_s12 }
 0x307   : > { %v5635_v47 = vpop.f32.mrf.mxu1 }
 0x308   : > { %v2477_v45 = vpop.permute.xlu1 %2476  ;;  %v2388_v25 = vpop.permute.xlu0 %2387 }
 0x309   : > { %v2649_v16 = vsel %vm364_vm0, %v2617_v26, %v2477_v45  ;;  %v2619_v54 = vsel %vm1750_vm3, %v2587_v11, %v2388_v25  ;;  %v2557_v45 = vsel %vm1684_vm14, %v5380_v52, %v5621_v59 }
 0x30a   : > { %2502 = vrot.lane.b32.xlu1 %v5635_v47, %s4275_s13  ;;  %2323 = vrot.lane.b32.xlu0 %v5629_v24, %s4272_s30 }
 0x30c   : > { %v2475_v5 = vpop.permute.xlu1 %2474  ;;  %v2296_v31 = vpop.permute.xlu0 %2295 }
 0x30d   : > { %v2648_v15 = vsel %vm364_vm0, %v2616_v56, %v2475_v5  ;;  %v2589_v34 = vsel %vm1717_vm2, %v2557_v45, %v2296_v31 }
 0x30e   : > { %2413 = vrot.lane.b32.xlu1 %v5635_v47, %s4274_s12  ;;  %2230 = vrot.lane.b32.xlu0 %v5629_v24, %s4273_s9 }
 0x30f   : > { %4100 = vmatprep.mubr.msk.f32.mxu0 %vm1818_vm5, %v2648_v15 }
 0x310   : > { %4101 = vmatmul.mubr.msk.f32.gmra.mxu0 %vm1818_vm5, %v2649_v16  ;;  %v2386_v13 = vpop.permute.xlu1 %2385  ;;  %v5659_v58 = vpop.permute.xlu0 %2202 }
 0x311   : > { %v2618_v62 = vsel %vm1750_vm3, %v2586_v1, %v2386_v13  ;;  %v2559_v16 = vsel %vm1684_vm14, %v5400_v53, %v5659_v58 }
 0x312   : > { %2321 = vrot.lane.b32.xlu1 %v5635_v47, %s4272_s30  ;;  %2228 = vrot.lane.b32.xlu0 %v5635_v47, %s4273_s9 }
 0x314   : > { %v2294_v0 = vpop.permute.xlu1 %2293  ;;  %v2201_v57 = vpop.permute.xlu0 %2200 }
 0x315   : > { %v4078_v61 = vpop.f32.mrf.mxu1  ;;  %v2588_v25 = vsel %vm1717_vm2, %v2556_v22, %v2294_v0  ;;  %v2558_v26 = vsel %vm1684_vm14, %v5406_v23, %v2201_v57 }
 0x316   : > { %2508 = vrot.lane.b32.xlu1 %v4078_v61, %s4275_s13  ;;  %2419 = vrot.lane.b32.xlu0 %v4078_v61, %s4274_s12 }
 0x317   : > { %v2124_v55 = vpop.f32.mrf.mxu1 }
 0x318   : > { %v2481_v29 = vpop.permute.xlu1 %2480  ;;  %v2392_v39 = vpop.permute.xlu0 %2391 }
 0x319   : > { %v2651_v3 = vsel %vm364_vm0, %v2619_v54, %v2481_v29  ;;  %v2621_v5 = vsel %vm1750_vm3, %v2589_v34, %v2392_v39 }
 0x31a   : > { %2234 = vrot.lane.b32.xlu1 %v4078_v61, %s4273_s9  ;;  %2327 = vrot.lane.b32.xlu0 %v4078_v61, %s4272_s30 }
 0x31c   : > { %v2479_v51 = vpop.permute.xlu1 %2478  ;;  %v2300_v4 = vpop.permute.xlu0 %2299 }
 0x31d   : > { %v2650_v50 = vsel %vm364_vm0, %v2618_v62, %v2479_v51  ;;  %v2591_v0 = vsel %vm1717_vm2, %v2559_v16, %v2300_v4 }
 0x31e   : > { %2506 = vrot.lane.b32.xlu1 %v2124_v55, %s4275_s13  ;;  %2232 = vrot.lane.b32.xlu0 %v2124_v55, %s4273_s9  ;;  %s3701_s9 = sld [smem:[#allocation2 + $0x2]] }
 0x31f   : > { %4103 = vmatprep.mubr.msk.f32.mxu0 %vm1818_vm5, %v2650_v50 }
 0x320   : > { %4104 = vmatmul.mubr.msk.f32.gmra.mxu0 %vm1818_vm5, %v2651_v3  ;;  %v2390_v8 = vpop.permute.xlu1 %2389  ;;  %v2207_v33 = vpop.permute.xlu0 %2206 }
 0x321   : > { %v2620_v60 = vsel %vm1750_vm3, %v2588_v25, %v2390_v8  ;;  %v2561_v4 = vsel %vm1684_vm14, %v5420_v28, %v2207_v33 }
 0x322   : > { %2417 = vrot.lane.b32.xlu1 %v2124_v55, %s4274_s12 }
 0x323   : > { %v4081_v7 = vpop.f32.mrf.mxu1 }
 0x324   : > { %2423 = vrot.lane.b32.xlu0 %v4081_v7, %s4274_s12  ;;  %v2298_v21 = vpop.permute.xlu1 %2297  ;;  %v2205_v41 = vpop.permute.xlu0 %2204 }
 0x325   : > { %v2134_v9 = vpop.f32.mrf.mxu1  ;;  %v2590_v13 = vsel %vm1717_vm2, %v2558_v26, %v2298_v21  ;;  %v2560_v51 = vsel %vm1684_vm14, %v5426_v40, %v2205_v41 }
 0x326   : > { %2325 = vrot.lane.b32.xlu1 %v2124_v55, %s4272_s30 }
 0x328   : > { %2329 = vrot.lane.b32.xlu0 %v2134_v9, %s4272_s30  ;;  %v2485_v30 = vpop.permute.xlu1 %2484  ;;  %v2396_v12 = vpop.permute.xlu0 %2395 }
 0x329   : > { %v2653_v63 = vsel %vm364_vm0, %v2621_v5, %v2485_v30  ;;  %v2623_v39 = vsel %vm1750_vm3, %v2591_v0, %v2396_v12 }
 0x32a   : > { %2512 = vrot.lane.b32.xlu1 %v4081_v7, %s4275_s13 }
 0x32c   : > { %2425 = vrot.lane.b32.xlu0 %v4276_v19, %s4274_s12  ;;  %v2483_v32 = vpop.permute.xlu1 %2482  ;;  %v2304_v56 = vpop.permute.xlu0 %2303 }
 0x32d   : > { %v2652_v20 = vsel %vm364_vm0, %v2620_v60, %v2483_v32  ;;  %v2593_v55 = vsel %vm1717_vm2, %v2561_v4, %v2304_v56 }
 0x32e   : > { %2510 = vrot.lane.b32.xlu1 %v2134_v9, %s4275_s13  ;;  %4106 = vmatprep.mubr.msk.f32.mxu0 %vm1818_vm5, %v2652_v20 }
 0x32f   : > { %4107 = vmatmul.mubr.msk.f32.gmra.mxu0 %vm1818_vm5, %v2653_v63 }
 0x330   : > { %v2394_v52 = vpop.permute.xlu1 %2393  ;;  %v2211_v59 = vpop.permute.xlu0 %2210 }
 0x331   : > { %v2622_v61 = vsel %vm1750_vm3, %v2590_v13, %v2394_v52  ;;  %v2563_v22 = vsel %vm1684_vm14, %v5440_v43, %v2211_v59 }
 0x332   : > { %2421 = vrot.lane.b32.xlu1 %v2134_v9, %s4274_s12 }
 0x334   : > { %v2302_v31 = vpop.permute.xlu1 %2301  ;;  %v2209_v19 = vpop.permute.xlu0 %2208 }
 0x335   : > { %v2592_v11 = vsel %vm1717_vm2, %v2560_v51, %v2302_v31  ;;  %v2562_v12 = vsel %vm1684_vm14, %v5446_v37, %v2209_v19 }
 0x336   : > { %2331 = vrot.lane.b32.xlu1 %v4081_v7, %s4272_s30 }
 0x338   : > { %v2489_v48 = vpop.permute.xlu1 %2488  ;;  %v2400_v15 = vpop.permute.xlu0 %2399 }
 0x339   : > { %v2655_v1 = vsel %vm364_vm0, %v2623_v39, %v2489_v48  ;;  %v2625_v8 = vsel %vm1750_vm3, %v2593_v55, %v2400_v15 }
 0x33c   : > { %v2487_v35 = vpop.permute.xlu1 %2486  ;;  %v2308_v29 = vpop.permute.xlu0 %2307 }
 0x33d   : > { %v2654_v36 = vsel %vm364_vm0, %v2622_v61, %v2487_v35  ;;  %v2595_v25 = vsel %vm1717_vm2, %v2563_v22, %v2308_v29 }
 0x33e   : > { %4109 = vmatprep.mubr.msk.f32.mxu0 %vm1818_vm5, %v2654_v36 }
 0x33f   : > { %4110 = vmatmul.mubr.msk.f32.gmra.mxu0 %vm1818_vm5, %v2655_v1 }
 0x340   : > { %v2398_v23 = vpop.permute.xlu1 %2397  ;;  %v2215_v53 = vpop.permute.xlu0 %2214 }
 0x341   : > { %v2624_v50 = vsel %vm1750_vm3, %v2592_v11, %v2398_v23  ;;  %v2565_v48 = vsel %vm1684_vm14, %v5462_v42, %v2215_v53 }
 0x344   : > { %v2306_v58 = vpop.permute.xlu1 %2305  ;;  %v2213_v57 = vpop.permute.xlu0 %2212 }
 0x345   : > { %v2594_v45 = vsel %vm1717_vm2, %v2562_v12, %v2306_v58  ;;  %v2564_v19 = vsel %vm1684_vm14, %v5468_v44, %v2213_v57 }
 0x348   : > { %v2493_v2 = vpop.permute.xlu1 %2492  ;;  %v2404_v62 = vpop.permute.xlu0 %2403 }
 0x349   : > { %v2657_v21 = vsel %vm364_vm0, %v2625_v8, %v2493_v2  ;;  %v2627_v56 = vsel %vm1750_vm3, %v2595_v25, %v2404_v62  ;;  %v5788_v25 = vld [vmem:[%s6147_s5] ss:$0 sm:$0xff] }
 0x34c   : > { %v2491_v54 = vpop.permute.xlu1 %2490  ;;  %v2312_v3 = vpop.permute.xlu0 %2311 }
 0x34d   : > { %v2656_v7 = vsel %vm364_vm0, %v2624_v50, %v2491_v54  ;;  %v2597_v26 = vsel %vm1717_vm2, %v2565_v48, %v2312_v3 }
 0x34e   : > { %4112 = vmatprep.mubr.msk.f32.mxu0 %vm1818_vm5, %v2656_v7 }
 0x34f   : > { %4113 = vmatmul.mubr.msk.f32.gmra.mxu0 %vm1818_vm5, %v2657_v21 }
 0x350   : > { %v2402_v40 = vpop.permute.xlu1 %2401  ;;  %v2219_v28 = vpop.permute.xlu0 %2218 }
 0x351   : > { %v2626_v34 = vsel %vm1750_vm3, %v2594_v45, %v2402_v40  ;;  %v2567_v58 = vsel %vm1684_vm14, %v5486_v6, %v2219_v28 }
 0x354   : > { %v2310_v33 = vpop.permute.xlu1 %2309  ;;  %v2217_v41 = vpop.permute.xlu0 %2216 }
 0x355   : > { %v2596_v15 = vsel %vm1717_vm2, %v2564_v19, %v2310_v33  ;;  %v2566_v53 = vsel %vm1684_vm14, %v5492_v17, %v2217_v41 }
 0x358   : > { %v2497_v9 = vpop.permute.xlu1 %2496  ;;  %v2408_v30 = vpop.permute.xlu0 %2407 }
 0x359   : > { %v2659_v20 = vsel %vm364_vm0, %v2627_v56, %v2497_v9  ;;  %v2629_v61 = vsel %vm1750_vm3, %v2597_v26, %v2408_v30 }
 0x35c   : > { %v2495_v60 = vpop.permute.xlu1 %2494  ;;  %v2316_v32 = vpop.permute.xlu0 %2315 }
 0x35d   : > { %v2658_v5 = vsel %vm364_vm0, %v2626_v34, %v2495_v60  ;;  %v2599_v2 = vsel %vm1717_vm2, %v2567_v58, %v2316_v32  ;;  %v5791_v34 = vstv %s3700_s26 }
 0x35e   : > { %4115 = vmatprep.mubr.msk.f32.mxu0 %vm1818_vm5, %v2658_v5 }
 0x35f   : > { %4116 = vmatmul.mubr.msk.f32.gmra.mxu0 %vm1818_vm5, %v2659_v20 }
 0x360   : > { %v2406_v37 = vpop.permute.xlu1 %2405  ;;  %v2223_v43 = vpop.permute.xlu0 %2222 }
 0x361   : > { %v2628_v16 = vsel %vm1750_vm3, %v2596_v15, %v2406_v37  ;;  %v2569_v33 = vsel %vm1684_vm14, %v5519_v10, %v2223_v43 }
 0x364   : > { %v2314_v63 = vpop.permute.xlu1 %2313  ;;  %v2221_v52 = vpop.permute.xlu0 %2220 }
 0x365   : > { %v2598_v57 = vsel %vm1717_vm2, %v2566_v53, %v2314_v63  ;;  %v2568_v28 = vsel %vm1684_vm14, %v5525_v14, %v2221_v52 }
 0x368   : > { %v2501_v59 = vpop.permute.xlu1 %2500  ;;  %v2412_v31 = vpop.permute.xlu0 %2411 }
 0x369   : > { %v2661_v29 = vsel %vm364_vm0, %v2629_v61, %v2501_v59  ;;  %v2631_v11 = vsel %vm1750_vm3, %v2599_v2, %v2412_v31 }
 0x36c   : > { %v2499_v13 = vpop.permute.xlu1 %2498  ;;  %v2320_v0 = vpop.permute.xlu0 %2319 }
 0x36d   : > { %v2660_v35 = vsel %vm364_vm0, %v2628_v16, %v2499_v13  ;;  %v2601_v9 = vsel %vm1717_vm2, %v2569_v33, %v2320_v0 }
 0x36e   : > { %4118 = vmatprep.mubr.msk.f32.mxu0 %vm1818_vm5, %v2660_v35 }
 0x36f   : > { %4119 = vmatmul.mubr.msk.f32.gmra.mxu0 %vm1818_vm5, %v2661_v29 }
 0x370   : > { %v2410_v44 = vpop.permute.xlu1 %2409  ;;  %v2227_v42 = vpop.permute.xlu0 %2226 }
 0x371   : > { %v2630_v62 = vsel %vm1750_vm3, %v2598_v57, %v2410_v44  ;;  %v2571_v26 = vsel %vm1684_vm14, %v5553_v18, %v2227_v42 }
 0x374   : > { %v2318_v39 = vpop.permute.xlu1 %2317  ;;  %v2225_v36 = vpop.permute.xlu0 %2224 }
 0x375   : > { %v2600_v41 = vsel %vm1717_vm2, %v2568_v28, %v2318_v39  ;;  %v2570_v15 = vsel %vm1684_vm14, %v5559_v46, %v2225_v36 }
 0x378   : > { %v2505_v1 = vpop.permute.xlu1 %2504  ;;  %v2416_v23 = vpop.permute.xlu0 %2415 }
 0x379   : > { %v2663_v50 = vsel %vm364_vm0, %v2631_v11, %v2505_v1  ;;  %v2633_v45 = vsel %vm1750_vm3, %v2601_v9, %v2416_v23 }
 0x37c   : > { %v2503_v51 = vpop.permute.xlu1 %2502  ;;  %v2324_v4 = vpop.permute.xlu0 %2323 }
 0x37d   : > { %v2662_v55 = vsel %vm364_vm0, %v2630_v62, %v2503_v51  ;;  %v2603_v13 = vsel %vm1717_vm2, %v2571_v26, %v2324_v4 }
 0x37e   : > { %4121 = vmatprep.mubr.msk.f32.mxu0 %vm1818_vm5, %v2662_v55 }
 0x37f   : > { %4122 = vmatmul.mubr.msk.f32.gmra.mxu0 %vm1818_vm5, %v2663_v50 }
 0x380   : > { %v2414_v17 = vpop.permute.xlu1 %2413  ;;  %v2231_v6 = vpop.permute.xlu0 %2230 }
 0x381   : > { %v2632_v30 = vsel %vm1750_vm3, %v2600_v41, %v2414_v17  ;;  %v2573_v46 = vsel %vm1684_vm14, %v5591_v27, %v2231_v6 }
 0x384   : > { %v2322_v54 = vpop.permute.xlu1 %2321  ;;  %v2229_v3 = vpop.permute.xlu0 %2228 }
 0x385   : > { %v2602_v16 = vsel %vm1717_vm2, %v2570_v15, %v2322_v54  ;;  %v2572_v23 = vsel %vm1684_vm14, %v5597_v38, %v2229_v3 }
 0x388   : > { %v2509_v8 = vpop.permute.xlu1 %2508  ;;  %v2420_v7 = vpop.permute.xlu0 %2419 }
 0x389   : > { %v2665_v32 = vsel %vm364_vm0, %v2633_v45, %v2509_v8  ;;  %v2635_v29 = vsel %vm1750_vm3, %v2603_v13, %v2420_v7 }
 0x38c   : > { %v5775_v21 = vpop.permute.xlu1 %2234  ;;  %v2328_v40 = vpop.permute.xlu0 %2327 }
 0x38d   : > { %v2605_v53 = vsel %vm1717_vm2, %v2573_v46, %v2328_v40  ;;  %v2575_v17 = vsel %vm1684_vm14, %v5629_v24, %v5775_v21 }
 0x390   : > { %v4090_v12 = vpop.f32.mrf.mxu0  ;;  %v2507_v22 = vpop.permute.xlu1 %2506 }
 0x391   : > { %v2846_v14 = vadd.f32 %v5788_v25, %v4090_v12  ;;  %v2664_v10 = vsel %vm364_vm0, %v2632_v30, %v2507_v22  ;;  %v2233_v60 = vpop.permute.xlu0 %2232 }
 0x392   : > { %v2840_v56 = vpop.f32.mrf.mxu0  ;;  %4124 = vmatprep.mubr.msk.f32.mxu0 %vm1818_vm5, %v2664_v10  ;;  %v2574_v18 = vsel %vm1684_vm14, %v5635_v47, %v2233_v60 }
 0x393   : > { %v2841_v5 = vadd.f32 %v5788_v25, %v2840_v56  ;;  %4125 = vmatmul.mubr.msk.f32.gmra.mxu0 %vm1818_vm5, %v2665_v32  ;;  %v3033_v20 = vmul.f32 %v5791_v34, %v2846_v14  ;;  %vm3000_vm4 = vcmp.gt.f32.partialorder %v2846_v14, 0.0 }
 0x394   : > { %v2418_v37 = vpop.permute.xlu1 %2417 }
 0x395   : > { %vm2999_vm6 = vcmp.gt.f32.partialorder %v2841_v5, 0.0  ;;  %v3032_v43 = vmul.f32 %v5791_v34, %v2841_v5  ;;  %v3065_v59 = vsel %vm3000_vm4, %v2846_v14, %v3033_v20  ;;  %v2634_v0 = vsel %vm1750_vm3, %v2602_v16, %v2418_v37 }
 0x396   : > { %v2424_v63 = vpop.permute.xlu0 %2423 }
 0x397   : > { %v3064_v52 = vsel %vm2999_vm6, %v2841_v5, %v3032_v43  ;;  %v2637_v27 = vsel %vm1750_vm3, %v2605_v53, %v2424_v63 }
 0x398   : > { %4138 = vmatprep.mubr.msk.f32.mxu1 %vm1684_vm14, %v3064_v52  ;;  %v2326_v31 = vpop.permute.xlu1 %2325  ;;  %v2669_v50 = vsel %vm364_vm0, %v2637_v27, %v5460_v49 }
 0x399   : > { %4139 = vmatmul.mubr.msk.f32.vlgmr.msra.gmra.mxu1 %vm1684_vm14, %v3065_v59  ;;  %v2604_v47 = vsel %vm1717_vm2, %v2572_v23, %v2326_v31 }
 0x39a   : > { %v2330_v19 = vpop.permute.xlu0 %2329 }
 0x39b   : > { %v2606_v58 = vsel %vm1717_vm2, %v2574_v18, %v2330_v19 }
 0x39c   : > { %v2513_v48 = vpop.permute.xlu1 %2512 }
 0x39d   : > { %v2667_v42 = vsel %vm364_vm0, %v2635_v29, %v2513_v48 }
 0x39e   : > { %v2426_v44 = vpop.permute.xlu0 %2425 }
 0x39f   : > { %v2638_v2 = vsel %vm1750_vm3, %v2606_v58, %v2426_v44 }
 0x3a0   : > { %v4093_v61 = vpop.f32.mrf.mxu0  ;;  %v2511_v35 = vpop.permute.xlu1 %2510  ;;  %v2670_v3 = vsel %vm364_vm0, %v2638_v2, %v5460_v49 }
 0x3a1   : > { %v2856_v39 = vadd.f32 %v5788_v25, %v4093_v61  ;;  %v2666_v1 = vsel %vm364_vm0, %v2634_v0, %v2511_v35 }
 0x3a2   : > { %v2850_v36 = vpop.f32.mrf.mxu0  ;;  %4127 = vmatprep.mubr.msk.f32.mxu0 %vm1818_vm5, %v2666_v1 }
 0x3a3   : > { %v2851_v57 = vadd.f32 %v5788_v25, %v2850_v36  ;;  %4128 = vmatmul.mubr.msk.f32.gmra.mxu0 %vm1818_vm5, %v2667_v42  ;;  %v3035_v62 = vmul.f32 %v5791_v34, %v2856_v39  ;;  %vm3002_vm7 = vcmp.gt.f32.partialorder %v2856_v39, 0.0 }
 0x3a4   : > { %v2422_v51 = vpop.permute.xlu1 %2421 }
 0x3a5   : > { %vm3001_vm8 = vcmp.gt.f32.partialorder %v2851_v57, 0.0  ;;  %v3034_v38 = vmul.f32 %v5791_v34, %v2851_v57  ;;  %v2636_v4 = vsel %vm1750_vm3, %v2604_v47, %v2422_v51  ;;  %v3067_v54 = vsel %vm3002_vm7, %v2856_v39, %v3035_v62 }
 0x3a6   : > { %v2668_v11 = vsel %vm364_vm0, %v2636_v4, %v5460_v49 }
 0x3a7   : > { %4130 = vmatprep.mubr.msk.f32.mxu0 %vm1818_vm5, %v2668_v11  ;;  %v3066_v55 = vsel %vm3001_vm8, %v2851_v57, %v3034_v38 }
 0x3a8   : > { %4141 = vmatprep.mubr.msk.f32.mxu1 %vm1684_vm14, %v3066_v55  ;;  %v2332_v6 = vpop.permute.xlu1 %2331  ;;  %4131 = vmatmul.mubr.msk.f32.gmra.mxu0 %vm1818_vm5, %v2669_v50 }
 0x3a9   : > { %v2607_v8 = vsel %vm1717_vm2, %v2575_v17, %v2332_v6  ;;  %4142 = vmatmul.mubr.msk.f32.gmra.mxu1 %vm1684_vm14, %v3067_v54  ;;  %4133 = vmatprep.mubr.msk.f32.mxu0 %vm1818_vm5, %v2670_v3 }
 0x3aa   : > { %v2639_v7 = vsel %vm1750_vm3, %v2607_v8, %v2426_v44 }
 0x3ab   : > { %v2671_v24 = vsel %vm364_vm0, %v2639_v7, %v5460_v49 }
 0x3ac   : > { %4134 = vmatmul.mubr.msk.f32.gmra.mxu0 %vm1818_vm5, %v2671_v24 }
 0x3b0   : > { %v4096_v21 = vpop.f32.mrf.mxu0 }
 0x3b1   : > { %v2866_v40 = vadd.f32 %v5788_v25, %v4096_v21 }
 0x3b2   : > { %v2860_v28 = vpop.f32.mrf.mxu0 }
 0x3b3   : > { %v2861_v33 = vadd.f32 %v5788_v25, %v2860_v28  ;;  %v3037_v41 = vmul.f32 %v5791_v34, %v2866_v40  ;;  %vm3004_vm9 = vcmp.gt.f32.partialorder %v2866_v40, 0.0 }
 0x3b5   : > { %vm3003_vm2 = vcmp.gt.f32.partialorder %v2861_v33, 0.0  ;;  %v3036_v9 = vmul.f32 %v5791_v34, %v2861_v33  ;;  %v3069_v12 = vsel %vm3004_vm9, %v2866_v40, %v3037_v41 }
 0x3b7   : > { %v3068_v30 = vsel %vm3003_vm2, %v2861_v33, %v3036_v9 }
 0x3b8   : > { %4144 = vmatprep.mubr.msk.f32.mxu1 %vm1684_vm14, %v3068_v30 }
 0x3b9   : > { %4145 = vmatmul.mubr.msk.f32.gmra.mxu1 %vm1684_vm14, %v3069_v12 }
 0x3c0   : > { %v4099_v49 = vpop.f32.mrf.mxu0 }
 0x3c1   : > { %v2876_v22 = vadd.f32 %v5788_v25, %v4099_v49 }
 0x3c2   : > { %v2870_v45 = vpop.f32.mrf.mxu0 }
 0x3c3   : > { %v2871_v14 = vadd.f32 %v5788_v25, %v2870_v45  ;;  %v3039_v10 = vmul.f32 %v5791_v34, %v2876_v22  ;;  %vm3006_vm3 = vcmp.gt.f32.partialorder %v2876_v22, 0.0 }
 0x3c5   : > { %vm3005_vm5 = vcmp.gt.f32.partialorder %v2871_v14, 0.0  ;;  %v3038_v60 = vmul.f32 %v5791_v34, %v2871_v14  ;;  %v3071_v56 = vsel %vm3006_vm3, %v2876_v22, %v3039_v10 }
 0x3c7   : > { %v3070_v32 = vsel %vm3005_vm5, %v2871_v14, %v3038_v60 }
 0x3c8   : > { %4147 = vmatprep.mubr.msk.f32.mxu1 %vm1684_vm14, %v3070_v32 }
 0x3c9   : > { %4148 = vmatmul.mubr.msk.f32.gmra.mxu1 %vm1684_vm14, %v3071_v56 }
 0x3d0   : > { %v4102_v5 = vpop.f32.mrf.mxu0 }
 0x3d1   : > { %v2886_v20 = vadd.f32 %v5788_v25, %v4102_v5 }
 0x3d2   : > { %v2880_v37 = vpop.f32.mrf.mxu0 }
 0x3d3   : > { %v2881_v43 = vadd.f32 %v5788_v25, %v2880_v37  ;;  %v3041_v63 = vmul.f32 %v5791_v34, %v2886_v20  ;;  %vm3008_vm10 = vcmp.gt.f32.partialorder %v2886_v20, 0.0 }
 0x3d5   : > { %vm3007_vm11 = vcmp.gt.f32.partialorder %v2881_v43, 0.0  ;;  %v3040_v52 = vmul.f32 %v5791_v34, %v2881_v43  ;;  %v3073_v31 = vsel %vm3008_vm10, %v2886_v20, %v3041_v63 }
 0x3d7   : > { %v3072_v59 = vsel %vm3007_vm11, %v2881_v43, %v3040_v52 }
 0x3d8   : > { %4150 = vmatprep.mubr.msk.f32.mxu1 %vm1684_vm14, %v3072_v59 }
 0x3d9   : > { %4151 = vmatmul.mubr.msk.f32.gmra.mxu1 %vm1684_vm14, %v3073_v31  ;;  %v5915_v31 = vld [vmem:[%s6148_s6] ss:$0 sm:$0xff] }
 0x3e0   : > { %v4105_v19 = vpop.f32.mrf.mxu0 }
 0x3e1   : > { %v2896_v48 = vadd.f32 %v5788_v25, %v4105_v19 }
 0x3e2   : > { %v2890_v15 = vpop.f32.mrf.mxu0 }
 0x3e3   : > { %v2891_v26 = vadd.f32 %v5788_v25, %v2890_v15  ;;  %v3043_v16 = vmul.f32 %v5791_v34, %v2896_v48  ;;  %vm3010_vm12 = vcmp.gt.f32.partialorder %v2896_v48, 0.0 }
 0x3e5   : > { %vm3009_vm13 = vcmp.gt.f32.partialorder %v2891_v26, 0.0  ;;  %v3042_v13 = vmul.f32 %v5791_v34, %v2891_v26  ;;  %v3075_v61 = vsel %vm3010_vm12, %v2896_v48, %v3043_v16 }
 0x3e7   : > { %v3074_v0 = vsel %vm3009_vm13, %v2891_v26, %v3042_v13 }
 0x3e8   : > { %4153 = vmatprep.mubr.msk.f32.mxu1 %vm1684_vm14, %v3074_v0  ;;  %v4212_v0 = vld [vmem:[%s4366_s20 + $0x8] sm:$0xff] }
 0x3e9   : > { %4154 = vmatmul.mubr.msk.f32.gmra.mxu1 %vm1684_vm14, %v3075_v61 }
 0x3ef   : > { %v4108_v35 = vpop.f32.mrf.mxu0 }
 0x3f0   : > { %v2906_v29 = vadd.f32 %v5788_v25, %v4108_v35  ;;  %v5921_v35 = vstv %s3701_s9 }
 0x3f1   : > { %v2900_v44 = vpop.f32.mrf.mxu0 }
 0x3f2   : > { %v2901_v39 = vadd.f32 %v5788_v25, %v2900_v44  ;;  %v3045_v1 = vmul.f32 %v5791_v34, %v2906_v29  ;;  %vm3012_vm15 = vcmp.gt.f32.partialorder %v2906_v29, 0.0 }
 0x3f4   : > { %vm3011_vm1 = vcmp.gt.f32.partialorder %v2901_v39, 0.0  ;;  %v3044_v46 = vmul.f32 %v5791_v34, %v2901_v39  ;;  %v3077_v42 = vsel %vm3012_vm15, %v2906_v29, %v3045_v1 }
 0x3f6   : > { %v3076_v18 = vsel %vm3011_vm1, %v2901_v39, %v3044_v46  ;;  %v4213_v39 = vld [vmem:[%s4366_s20] sm:$0xff]  ;;  %vm3589_vm1 = vcmask 261120  }
 0x3f7   : > { %4156 = vmatprep.mubr.msk.f32.mxu1 %vm1684_vm14, %v3076_v18 }
 0x3f8   : > { %4157 = vmatmul.mubr.msk.f32.gmra.mxu1 %vm1684_vm14, %v3077_v42 }
 0x3ff   : > { %v4111_v36 = vpop.f32.mrf.mxu0 }
 0x400   : > { %v2916_v23 = vadd.f32 %v5788_v25, %v4111_v36 }
 0x401   : > { %v2910_v53 = vpop.f32.mrf.mxu0 }
 0x402   : > { %v2911_v58 = vadd.f32 %v5788_v25, %v2910_v53  ;;  %v3047_v57 = vmul.f32 %v5791_v34, %v2916_v23  ;;  %vm3014_vm4 = vcmp.gt.f32.partialorder %v2916_v23, 0.0 }
 0x404   : > { %vm3013_vm6 = vcmp.gt.f32.partialorder %v2911_v58, 0.0  ;;  %v3046_v27 = vmul.f32 %v5791_v34, %v2911_v58  ;;  %v3079_v2 = vsel %vm3014_vm4, %v2916_v23, %v3047_v57 }
 0x406   : > { %v3078_v47 = vsel %vm3013_vm6, %v2911_v58, %v3046_v27 }
 0x407   : > { %4159 = vmatprep.mubr.msk.f32.mxu1 %vm1684_vm14, %v3078_v47 }
 0x408   : > { %4160 = vmatmul.mubr.msk.f32.gmra.mxu1 %vm1684_vm14, %v3079_v2 }
 0x40f   : > { %v4114_v62 = vpop.f32.mrf.mxu0 }
 0x410   : > { %v2926_v51 = vadd.f32 %v5788_v25, %v4114_v62 }
 0x411   : > { %v2920_v38 = vpop.f32.mrf.mxu0 }
 0x412   : > { %v2921_v4 = vadd.f32 %v5788_v25, %v2920_v38  ;;  %v3049_v11 = vmul.f32 %v5791_v34, %v2926_v51  ;;  %vm3016_vm7 = vcmp.gt.f32.partialorder %v2926_v51, 0.0 }
 0x414   : > { %vm3015_vm8 = vcmp.gt.f32.partialorder %v2921_v4, 0.0  ;;  %v3048_v55 = vmul.f32 %v5791_v34, %v2921_v4  ;;  %v3081_v17 = vsel %vm3016_vm7, %v2926_v51, %v3049_v11 }
 0x416   : > { %v3080_v50 = vsel %vm3015_vm8, %v2921_v4, %v3048_v55 }
 0x417   : > { %4162 = vmatprep.mubr.msk.f32.mxu1 %vm1684_vm14, %v3080_v50 }
 0x418   : > { %4163 = vmatmul.mubr.msk.f32.gmra.mxu1 %vm1684_vm14, %v3081_v17 }
 0x41f   : > { %v4117_v6 = vpop.f32.mrf.mxu0 }
 0x420   : > { %v2936_v54 = vadd.f32 %v5788_v25, %v4117_v6 }
 0x421   : > { %v2930_v3 = vpop.f32.mrf.mxu0 }
 0x422   : > { %v2931_v8 = vadd.f32 %v5788_v25, %v2930_v3  ;;  %v3051_v7 = vmul.f32 %v5791_v34, %v2936_v54  ;;  %vm3018_vm9 = vcmp.gt.f32.partialorder %v2936_v54, 0.0  ;;  %v4214_v3 = vld [vmem:[%s4366_s20 + $0x18] sm:$0xff] }
 0x424   : > { %vm3017_vm2 = vcmp.gt.f32.partialorder %v2931_v8, 0.0  ;;  %v3050_v24 = vmul.f32 %v5791_v34, %v2931_v8  ;;  %v3083_v40 = vsel %vm3018_vm9, %v2936_v54, %v3051_v7 }
 0x426   : > { %v3082_v21 = vsel %vm3017_vm2, %v2931_v8, %v3050_v24 }
 0x427   : > { %4165 = vmatprep.mubr.msk.f32.mxu1 %vm1684_vm14, %v3082_v21 }
 0x428   : > { %4166 = vmatmul.mubr.msk.f32.gmra.mxu1 %vm1684_vm14, %v3083_v40 }
 0x42f   : > { %v4120_v28 = vpop.f32.mrf.mxu0 }
 0x430   : > { %v2946_v33 = vadd.f32 %v5788_v25, %v4120_v28 }
 0x431   : > { %v2940_v41 = vpop.f32.mrf.mxu0 }
 0x432   : > { %v2941_v9 = vadd.f32 %v5788_v25, %v2940_v41  ;;  %v3053_v30 = vmul.f32 %v5791_v34, %v2946_v33  ;;  %vm3020_vm3 = vcmp.gt.f32.partialorder %v2946_v33, 0.0 }
 0x434   : > { %vm3019_vm5 = vcmp.gt.f32.partialorder %v2941_v9, 0.0  ;;  %v3052_v12 = vmul.f32 %v5791_v34, %v2941_v9  ;;  %v3085_v22 = vsel %vm3020_vm3, %v2946_v33, %v3053_v30  ;;  %v4215_v33 = vld [vmem:[%s4366_s20 + $0x10] sm:$0xff] }
 0x436   : > { %v3084_v49 = vsel %vm3019_vm5, %v2941_v9, %v3052_v12 }
 0x437   : > { %4168 = vmatprep.mubr.msk.f32.mxu1 %vm1684_vm14, %v3084_v49 }
 0x438   : > { %4169 = vmatmul.mubr.msk.f32.gmra.mxu1 %vm1684_vm14, %v3085_v22 }
 0x43f   : > { %v4123_v45 = vpop.f32.mrf.mxu0 }
 0x440   : > { %v2956_v14 = vadd.f32 %v5788_v25, %v4123_v45 }
 0x441   : > { %v2950_v10 = vpop.f32.mrf.mxu0 }
 0x442   : > { %v2951_v60 = vadd.f32 %v5788_v25, %v2950_v10  ;;  %v3055_v32 = vmul.f32 %v5791_v34, %v2956_v14  ;;  %vm3022_vm10 = vcmp.gt.f32.partialorder %v2956_v14, 0.0 }
 0x444   : > { %vm3021_vm11 = vcmp.gt.f32.partialorder %v2951_v60, 0.0  ;;  %v3054_v56 = vmul.f32 %v5791_v34, %v2951_v60  ;;  %v3087_v20 = vsel %vm3022_vm10, %v2956_v14, %v3055_v32 }
 0x446   : > { %v3086_v5 = vsel %vm3021_vm11, %v2951_v60, %v3054_v56 }
 0x447   : > { %4171 = vmatprep.mubr.msk.f32.mxu1 %vm1684_vm14, %v3086_v5 }
 0x448   : > { %4172 = vmatmul.mubr.msk.f32.gmra.mxu1 %vm1684_vm14, %v3087_v20 }
 0x453   : > { %v4126_v37 = vpop.f32.mrf.mxu0 }
 0x454   : > { %v2966_v43 = vadd.f32 %v5788_v25, %v4126_v37 }
 0x455   : > { %v2960_v63 = vpop.f32.mrf.mxu0 }
 0x456   : > { %v2961_v52 = vadd.f32 %v5788_v25, %v2960_v63  ;;  %v3057_v59 = vmul.f32 %v5791_v34, %v2966_v43  ;;  %vm3024_vm12 = vcmp.gt.f32.partialorder %v2966_v43, 0.0  ;;  %v4216_v63 = vld [vmem:[%s4366_s20 + $0x28] sm:$0xff] }
 0x458   : > { %vm3023_vm13 = vcmp.gt.f32.partialorder %v2961_v52, 0.0  ;;  %v3056_v19 = vmul.f32 %v5791_v34, %v2961_v52  ;;  %v3089_v13 = vsel %vm3024_vm12, %v2966_v43, %v3057_v59 }
 0x459   : > { %v4140_v48 = vpop.f32.mrf.mxu1 }
 0x45a   : > { %v3275_v15 = vadd.f32 %v4140_v48, %v5915_v31  ;;  %v3088_v26 = vsel %vm3023_vm13, %v2961_v52, %v3056_v19  ;;  %v4217_v19 = vld [vmem:[%s4366_s20 + $0x20] sm:$0xff] }
 0x45b   : > { %v3269_v16 = vpop.f32.mrf.mxu1  ;;  %4174 = vmatprep.mubr.msk.f32.mxu1 %vm1684_vm14, %v3088_v26 }
 0x45c   : > { %v3429_v61 = vadd.f32 %v4212_v0, %v3275_v15  ;;  %v3270_v29 = vadd.f32 %v5915_v31, %v3269_v16  ;;  %4175 = vmatmul.mubr.msk.f32.gmra.mxu1 %vm1684_vm14, %v3089_v13 }
 0x45e   : > { %v3461_v44 = vsel %vm364_vm0, %v3429_v61, %v3275_v15  ;;  %v3428_v1 = vadd.f32 %v4213_v39, %v3270_v29  ;;  %v4218_v39 = vld [vmem:[%s4366_s20 + $0x38] sm:$0xff] }
 0x45f   : > { %vm3493_vm15 = vcmp.gt.f32.partialorder %v3461_v44, 0.0  ;;  %v3526_v46 = vmul.f32 %v5921_v35, %v3461_v44 }
 0x460   : > { %v3460_v18 = vsel %vm364_vm0, %v3428_v1, %v3270_v29 }
 0x461   : > { %v3558_v42 = vsel %vm3493_vm15, %v3461_v44, %v3526_v46  ;;  %vm3492_vm4 = vcmp.gt.f32.partialorder %v3460_v18, 0.0  ;;  %v3525_v36 = vmul.f32 %v5921_v35, %v3460_v18 }
 0x462   : > { %3591 = vst.msk [vmem:[%s5932_s14 + $0x8] sm:$0xff] %vm3589_vm1, %v3558_v42  ;;  %v4219_v42 = vld [vmem:[%s4366_s20 + $0x30] sm:$0xff] }
 0x463   : > { %v3557_v23 = vsel %vm3492_vm4, %v3460_v18, %v3525_v36  ;;  %v4129_v53 = vpop.f32.mrf.mxu0 }
 0x464   : > { %3590 = vst.msk [vmem:[%s5932_s14] sm:$0xff] %vm3589_vm1, %v3557_v23  ;;  %v2976_v58 = vadd.f32 %v5788_v25, %v4129_v53 }
 0x465   : > { %v2970_v57 = vpop.f32.mrf.mxu0 }
 0x466   : > { %v2971_v27 = vadd.f32 %v5788_v25, %v2970_v57  ;;  %v3059_v47 = vmul.f32 %v5791_v34, %v2976_v58  ;;  %vm3026_vm6 = vcmp.gt.f32.partialorder %v2976_v58, 0.0 }
 0x468   : > { %vm3025_vm7 = vcmp.gt.f32.partialorder %v2971_v27, 0.0  ;;  %v3058_v2 = vmul.f32 %v5791_v34, %v2971_v27  ;;  %v4132_v62 = vpop.f32.mrf.mxu0  ;;  %v3091_v6 = vsel %vm3026_vm6, %v2976_v58, %v3059_v47 }
 0x469   : > { %v2986_v51 = vadd.f32 %v5788_v25, %v4132_v62  ;;  %v4143_v38 = vpop.f32.mrf.mxu1 }
 0x46a   : > { %v3285_v4 = vadd.f32 %v4143_v38, %v5915_v31  ;;  %v2980_v11 = vpop.f32.mrf.mxu0  ;;  %v3090_v55 = vsel %vm3025_vm7, %v2971_v27, %v3058_v2 }
 0x46b   : > { %v2981_v50 = vadd.f32 %v5788_v25, %v2980_v11  ;;  %v3279_v17 = vpop.f32.mrf.mxu1  ;;  %4177 = vmatprep.mubr.msk.f32.mxu1 %vm1684_vm14, %v3090_v55  ;;  %v3061_v54 = vmul.f32 %v5791_v34, %v2986_v51  ;;  %vm3028_vm8 = vcmp.gt.f32.partialorder %v2986_v51, 0.0  ;;  %v4221_v55 = vld [vmem:[%s4366_s20 + $0x40] sm:$0xff] }
 0x46c   : > { %v3431_v8 = vadd.f32 %v4214_v3, %v3285_v4  ;;  %v3280_v7 = vadd.f32 %v5915_v31, %v3279_v17  ;;  %v4135_v24 = vpop.f32.mrf.mxu0  ;;  %4178 = vmatmul.mubr.msk.f32.gmra.mxu1 %vm1684_vm14, %v3091_v6 }
 0x46d   : > { %vm3027_vm9 = vcmp.gt.f32.partialorder %v2981_v50, 0.0  ;;  %v3060_v21 = vmul.f32 %v5791_v34, %v2981_v50  ;;  %v2996_v40 = vadd.f32 %v5788_v25, %v4135_v24  ;;  %v3093_v45 = vsel %vm3028_vm8, %v2986_v51, %v3061_v54  ;;  %v4220_v51 = vld [vmem:[%s4366_s20 + $0x48] sm:$0xff] }
 0x46e   : > { %v3463_v28 = vsel %vm364_vm0, %v3431_v8, %v3285_v4  ;;  %v3430_v41 = vadd.f32 %v4215_v33, %v3280_v7  ;;  %v2990_v9 = vpop.f32.mrf.mxu0 }
 0x46f   : > { %vm3495_vm2 = vcmp.gt.f32.partialorder %v3463_v28, 0.0  ;;  %v3528_v30 = vmul.f32 %v5921_v35, %v3463_v28  ;;  %v2991_v49 = vadd.f32 %v5788_v25, %v2990_v9  ;;  %v3092_v22 = vsel %vm3027_vm9, %v2981_v50, %v3060_v21  ;;  %v4223_v9 = vld [vmem:[%s4366_s20 + $0x50] sm:$0xff] }
 0x470   : > { %v3462_v12 = vsel %vm364_vm0, %v3430_v41, %v3280_v7  ;;  %v3063_v60 = vmul.f32 %v5791_v34, %v2996_v40  ;;  %4180 = vmatprep.mubr.msk.f32.mxu1 %vm1684_vm14, %v3092_v22  ;;  %vm3030_vm5 = vcmp.gt.f32.partialorder %v2996_v40, 0.0 }
 0x471   : > { %v3560_v14 = vsel %vm3495_vm2, %v3463_v28, %v3528_v30  ;;  %vm3494_vm3 = vcmp.gt.f32.partialorder %v3462_v12, 0.0  ;;  %v3527_v10 = vmul.f32 %v5921_v35, %v3462_v12  ;;  %vm3029_vm10 = vcmp.gt.f32.partialorder %v2991_v49, 0.0  ;;  %4181 = vmatmul.mubr.msk.f32.gmra.mxu1 %vm1684_vm14, %v3093_v45 }
 0x472   : > { %3593 = vst.msk [vmem:[%s5932_s14 + $0x18] sm:$0xff] %vm3589_vm1, %v3560_v14  ;;  %v3062_v32 = vmul.f32 %v5791_v34, %v2991_v49  ;;  %v3095_v5 = vsel %vm3030_vm5, %v2996_v40, %v3063_v60  ;;  %v4222_v40 = vld [vmem:[%s4366_s20 + $0x58] sm:$0xff] }
 0x473   : > { %v3559_v25 = vsel %vm3494_vm3, %v3462_v12, %v3527_v10 }
 0x474   : > { %3592 = vst.msk [vmem:[%s5932_s14 + $0x10] sm:$0xff] %vm3589_vm1, %v3559_v25  ;;  %v3094_v56 = vsel %vm3029_vm10, %v2991_v49, %v3062_v32  ;;  %v4224_v25 = vld [vmem:[%s4366_s20 + $0x68] sm:$0xff] }
 0x475   : > { %4183 = vmatprep.mubr.msk.f32.mxu1 %vm1684_vm14, %v3094_v56 }
 0x476   : > { %4184 = vmatmul.mubr.msk.f32.gmra.mxu1 %vm1684_vm14, %v3095_v5 }
 0x479   : > { %v4146_v20 = vpop.f32.mrf.mxu1 }
 0x47a   : > { %v3295_v37 = vadd.f32 %v4146_v20, %v5915_v31 }
 0x47b   : > { %v3289_v43 = vpop.f32.mrf.mxu1 }
 0x47c   : > { %v3433_v52 = vadd.f32 %v4216_v63, %v3295_v37  ;;  %v3290_v34 = vadd.f32 %v5915_v31, %v3289_v43 }
 0x47e   : > { %v3465_v59 = vsel %vm364_vm0, %v3433_v52, %v3295_v37  ;;  %v3432_v48 = vadd.f32 %v4217_v19, %v3290_v34  ;;  %v4225_v37 = vld [vmem:[%s4366_s20 + $0x60] sm:$0xff] }
 0x47f   : > { %vm3497_vm11 = vcmp.gt.f32.partialorder %v3465_v59, 0.0  ;;  %v3530_v15 = vmul.f32 %v5921_v35, %v3465_v59 }
 0x480   : > { %v3464_v26 = vsel %vm364_vm0, %v3432_v48, %v3290_v34 }
 0x481   : > { %v3562_v16 = vsel %vm3497_vm11, %v3465_v59, %v3530_v15  ;;  %vm3496_vm14 = vcmp.gt.f32.partialorder %v3464_v26, 0.0  ;;  %v3529_v13 = vmul.f32 %v5921_v35, %v3464_v26 }
 0x482   : > { %3595 = vst.msk [vmem:[%s5932_s14 + $0x28] sm:$0xff] %vm3589_vm1, %v3562_v16  ;;  %v4226_v16 = vld [vmem:[%s4366_s20 + $0x78] sm:$0xff] }
 0x483   : > { %v3561_v0 = vsel %vm3496_vm14, %v3464_v26, %v3529_v13 }
 0x484   : > { %3594 = vst.msk [vmem:[%s5932_s14 + $0x20] sm:$0xff] %vm3589_vm1, %v3561_v0 }
 0x489   : > { %v4149_v61 = vpop.f32.mrf.mxu1 }
 0x48a   : > { %v3305_v29 = vadd.f32 %v4149_v61, %v5915_v31 }
 0x48b   : > { %v3299_v44 = vpop.f32.mrf.mxu1 }
 0x48c   : > { %v3435_v1 = vadd.f32 %v4218_v39, %v3305_v29  ;;  %v3300_v46 = vadd.f32 %v5915_v31, %v3299_v44 }
 0x48e   : > { %v3467_v18 = vsel %vm364_vm0, %v3435_v1, %v3305_v29  ;;  %v3434_v36 = vadd.f32 %v4219_v42, %v3300_v46  ;;  %v4227_v29 = vld [vmem:[%s4366_s20 + $0x70] sm:$0xff] }
 0x48f   : > { %vm3499_vm12 = vcmp.gt.f32.partialorder %v3467_v18, 0.0  ;;  %v3532_v23 = vmul.f32 %v5921_v35, %v3467_v18 }
 0x490   : > { %v3466_v53 = vsel %vm364_vm0, %v3434_v36, %v3300_v46 }
 0x491   : > { %v3564_v58 = vsel %vm3499_vm12, %v3467_v18, %v3532_v23  ;;  %vm3498_vm13 = vcmp.gt.f32.partialorder %v3466_v53, 0.0  ;;  %v3531_v57 = vmul.f32 %v5921_v35, %v3466_v53 }
 0x492   : > { %3597 = vst.msk [vmem:[%s5932_s14 + $0x38] sm:$0xff] %vm3589_vm1, %v3564_v58  ;;  %v4228_v58 = vld [vmem:[%s4366_s20 + $0x88] sm:$0xff] }
 0x493   : > { %v3563_v27 = vsel %vm3498_vm13, %v3466_v53, %v3531_v57 }
 0x494   : > { %3596 = vst.msk [vmem:[%s5932_s14 + $0x30] sm:$0xff] %vm3589_vm1, %v3563_v27 }
 0x499   : > { %v4152_v47 = vpop.f32.mrf.mxu1 }
 0x49a   : > { %v3315_v2 = vadd.f32 %v4152_v47, %v5915_v31 }
 0x49b   : > { %v3309_v62 = vpop.f32.mrf.mxu1 }
 0x49c   : > { %v3437_v38 = vadd.f32 %v4220_v51, %v3315_v2  ;;  %v3310_v4 = vadd.f32 %v5915_v31, %v3309_v62 }
 0x49e   : > { %v3469_v11 = vsel %vm364_vm0, %v3437_v38, %v3315_v2  ;;  %v3436_v50 = vadd.f32 %v4221_v55, %v3310_v4  ;;  %v4229_v2 = vld [vmem:[%s4366_s20 + $0x80] sm:$0xff] }
 0x49f   : > { %vm3501_vm15 = vcmp.gt.f32.partialorder %v3469_v11, 0.0  ;;  %v3534_v17 = vmul.f32 %v5921_v35, %v3469_v11 }
 0x4a0   : > { %v3468_v6 = vsel %vm364_vm0, %v3436_v50, %v3310_v4 }
 0x4a1   : > { %v3566_v54 = vsel %vm3501_vm15, %v3469_v11, %v3534_v17  ;;  %vm3500_vm4 = vcmp.gt.f32.partialorder %v3468_v6, 0.0  ;;  %v3533_v3 = vmul.f32 %v5921_v35, %v3468_v6 }
 0x4a2   : > { %3599 = vst.msk [vmem:[%s5932_s14 + $0x48] sm:$0xff] %vm3589_vm1, %v3566_v54  ;;  %v4230_v54 = vld [vmem:[%s4366_s20 + $0x98] sm:$0xff] }
 0x4a3   : > { %v3565_v8 = vsel %vm3500_vm4, %v3468_v6, %v3533_v3 }
 0x4a4   : > { %3598 = vst.msk [vmem:[%s5932_s14 + $0x40] sm:$0xff] %vm3589_vm1, %v3565_v8 }
 0x4a9   : > { %v4155_v7 = vpop.f32.mrf.mxu1 }
 0x4aa   : > { %v3325_v24 = vadd.f32 %v4155_v7, %v5915_v31 }
 0x4ab   : > { %v3319_v21 = vpop.f32.mrf.mxu1 }
 0x4ac   : > { %v3439_v28 = vadd.f32 %v4222_v40, %v3325_v24  ;;  %v3320_v33 = vadd.f32 %v5915_v31, %v3319_v21 }
 0x4ae   : > { %v3471_v41 = vsel %vm364_vm0, %v3439_v28, %v3325_v24  ;;  %v3438_v30 = vadd.f32 %v4223_v9, %v3320_v33  ;;  %v4231_v24 = vld [vmem:[%s4366_s20 + $0x90] sm:$0xff] }
 0x4af   : > { %vm3503_vm6 = vcmp.gt.f32.partialorder %v3471_v41, 0.0  ;;  %v3536_v12 = vmul.f32 %v5921_v35, %v3471_v41 }
 0x4b0   : > { %v3470_v49 = vsel %vm364_vm0, %v3438_v30, %v3320_v33 }
 0x4b1   : > { %v3568_v22 = vsel %vm3503_vm6, %v3471_v41, %v3536_v12  ;;  %vm3502_vm7 = vcmp.gt.f32.partialorder %v3470_v49, 0.0  ;;  %v3535_v45 = vmul.f32 %v5921_v35, %v3470_v49 }
 0x4b2   : > { %3601 = vst.msk [vmem:[%s5932_s14 + $0x58] sm:$0xff] %vm3589_vm1, %v3568_v22  ;;  %v4232_v22 = vld [vmem:[%s4366_s20 + $0xa8] sm:$0xff] }
 0x4b3   : > { %v3567_v14 = vsel %vm3502_vm7, %v3470_v49, %v3535_v45 }
 0x4b4   : > { %3600 = vst.msk [vmem:[%s5932_s14 + $0x50] sm:$0xff] %vm3589_vm1, %v3567_v14 }
 0x4b8   : > { %v4158_v10 = vpop.f32.mrf.mxu1 }
 0x4b9   : > { %v3335_v60 = vadd.f32 %v4158_v10, %v5915_v31 }
 0x4ba   : > { %v3329_v32 = vpop.f32.mrf.mxu1 }
 0x4bb   : > { %v3441_v56 = vadd.f32 %v4224_v25, %v3335_v60  ;;  %v3330_v5 = vadd.f32 %v5915_v31, %v3329_v32 }
 0x4bd   : > { %v3473_v20 = vsel %vm364_vm0, %v3441_v56, %v3335_v60  ;;  %v3440_v43 = vadd.f32 %v4225_v37, %v3330_v5  ;;  %v4233_v60 = vld [vmem:[%s4366_s20 + $0xa0] sm:$0xff] }
 0x4be   : > { %vm3505_vm8 = vcmp.gt.f32.partialorder %v3473_v20, 0.0  ;;  %v3538_v63 = vmul.f32 %v5921_v35, %v3473_v20 }
 0x4bf   : > { %v3472_v52 = vsel %vm364_vm0, %v3440_v43, %v3330_v5 }
 0x4c0   : > { %v3570_v34 = vsel %vm3505_vm8, %v3473_v20, %v3538_v63  ;;  %vm3504_vm9 = vcmp.gt.f32.partialorder %v3472_v52, 0.0  ;;  %v3537_v59 = vmul.f32 %v5921_v35, %v3472_v52 }
 0x4c1   : > { %3603 = vst.msk [vmem:[%s5932_s14 + $0x68] sm:$0xff] %vm3589_vm1, %v3570_v34  ;;  %v4234_v34 = vld [vmem:[%s4366_s20 + $0xb8] sm:$0xff] }
 0x4c2   : > { %v3569_v19 = vsel %vm3504_vm9, %v3472_v52, %v3537_v59 }
 0x4c3   : > { %3602 = vst.msk [vmem:[%s5932_s14 + $0x60] sm:$0xff] %vm3589_vm1, %v3569_v19 }
 0x4c8   : > { %v4161_v48 = vpop.f32.mrf.mxu1 }
 0x4c9   : > { %v3345_v15 = vadd.f32 %v4161_v48, %v5915_v31 }
 0x4ca   : > { %v3339_v26 = vpop.f32.mrf.mxu1 }
 0x4cb   : > { %v3443_v13 = vadd.f32 %v4226_v16, %v3345_v15  ;;  %v3340_v0 = vadd.f32 %v5915_v31, %v3339_v26 }
 0x4cd   : > { %v3475_v61 = vsel %vm364_vm0, %v3443_v13, %v3345_v15  ;;  %v3442_v44 = vadd.f32 %v4227_v29, %v3340_v0  ;;  %v4235_v15 = vld [vmem:[%s4366_s20 + $0xb0] sm:$0xff] }
 0x4ce   : > { %vm3507_vm2 = vcmp.gt.f32.partialorder %v3475_v61, 0.0  ;;  %v3540_v39 = vmul.f32 %v5921_v35, %v3475_v61 }
 0x4cf   : > { %v3474_v1 = vsel %vm364_vm0, %v3442_v44, %v3340_v0 }
 0x4d0   : > { %v3572_v46 = vsel %vm3507_vm2, %v3475_v61, %v3540_v39  ;;  %vm3506_vm3 = vcmp.gt.f32.partialorder %v3474_v1, 0.0  ;;  %v3539_v18 = vmul.f32 %v5921_v35, %v3474_v1 }
 0x4d1   : > { %3605 = vst.msk [vmem:[%s5932_s14 + $0x78] sm:$0xff] %vm3589_vm1, %v3572_v46  ;;  %v4236_v46 = vld [vmem:[%s4366_s20 + $0xc8] sm:$0xff] }
 0x4d2   : > { %v3571_v42 = vsel %vm3506_vm3, %v3474_v1, %v3539_v18 }
 0x4d3   : > { %3604 = vst.msk [vmem:[%s5932_s14 + $0x70] sm:$0xff] %vm3589_vm1, %v3571_v42 }
 0x4d8   : > { %v4164_v36 = vpop.f32.mrf.mxu1 }
 0x4d9   : > { %v3355_v23 = vadd.f32 %v4164_v36, %v5915_v31 }
 0x4da   : > { %v3349_v53 = vpop.f32.mrf.mxu1 }
 0x4db   : > { %v3445_v57 = vadd.f32 %v4228_v58, %v3355_v23  ;;  %v3350_v27 = vadd.f32 %v5915_v31, %v3349_v53 }
 0x4dd   : > { %v3477_v47 = vsel %vm364_vm0, %v3445_v57, %v3355_v23  ;;  %v3444_v62 = vadd.f32 %v4229_v2, %v3350_v27  ;;  %v4237_v23 = vld [vmem:[%s4366_s20 + $0xc0] sm:$0xff] }
 0x4de   : > { %vm3509_vm5 = vcmp.gt.f32.partialorder %v3477_v47, 0.0  ;;  %v3542_v51 = vmul.f32 %v5921_v35, %v3477_v47 }
 0x4df   : > { %v3476_v38 = vsel %vm364_vm0, %v3444_v62, %v3350_v27 }
 0x4e0   : > { %v3574_v4 = vsel %vm3509_vm5, %v3477_v47, %v3542_v51  ;;  %vm3508_vm10 = vcmp.gt.f32.partialorder %v3476_v38, 0.0  ;;  %v3541_v11 = vmul.f32 %v5921_v35, %v3476_v38 }
 0x4e1   : > { %3607 = vst.msk [vmem:[%s5932_s14 + $0x88] sm:$0xff] %vm3589_vm1, %v3574_v4  ;;  %v4238_v4 = vld [vmem:[%s4366_s20 + $0xd8] sm:$0xff] }
 0x4e2   : > { %v3573_v55 = vsel %vm3508_vm10, %v3476_v38, %v3541_v11 }
 0x4e3   : > { %3606 = vst.msk [vmem:[%s5932_s14 + $0x80] sm:$0xff] %vm3589_vm1, %v3573_v55 }
 0x4e8   : > { %v4167_v50 = vpop.f32.mrf.mxu1 }
 0x4e9   : > { %v3365_v17 = vadd.f32 %v4167_v50, %v5915_v31 }
 0x4ea   : > { %v3359_v6 = vpop.f32.mrf.mxu1 }
 0x4eb   : > { %v3447_v3 = vadd.f32 %v4230_v54, %v3365_v17  ;;  %v3360_v8 = vadd.f32 %v5915_v31, %v3359_v6 }
 0x4ed   : > { %v3479_v7 = vsel %vm364_vm0, %v3447_v3, %v3365_v17  ;;  %v3446_v21 = vadd.f32 %v4231_v24, %v3360_v8  ;;  %v4239_v17 = vld [vmem:[%s4366_s20 + $0xd0] sm:$0xff] }
 0x4ee   : > { %vm3511_vm11 = vcmp.gt.f32.partialorder %v3479_v7, 0.0  ;;  %v3544_v40 = vmul.f32 %v5921_v35, %v3479_v7 }
 0x4ef   : > { %v3478_v28 = vsel %vm364_vm0, %v3446_v21, %v3360_v8 }
 0x4f0   : > { %v3576_v33 = vsel %vm3511_vm11, %v3479_v7, %v3544_v40  ;;  %vm3510_vm14 = vcmp.gt.f32.partialorder %v3478_v28, 0.0  ;;  %v3543_v41 = vmul.f32 %v5921_v35, %v3478_v28 }
 0x4f1   : > { %3609 = vst.msk [vmem:[%s5932_s14 + $0x98] sm:$0xff] %vm3589_vm1, %v3576_v33 }
 0x4f2   : > { %v3575_v9 = vsel %vm3510_vm14, %v3478_v28, %v3543_v41  ;;  %v4240_v28 = vld [vmem:[%s4366_s20 + $0xe8] sm:$0xff] }
 0x4f3   : > { %3608 = vst.msk [vmem:[%s5932_s14 + $0x90] sm:$0xff] %vm3589_vm1, %v3575_v9 }
 0x4f8   : > { %v4170_v30 = vpop.f32.mrf.mxu1 }
 0x4f9   : > { %v3375_v12 = vadd.f32 %v4170_v30, %v5915_v31 }
 0x4fa   : > { %v3369_v49 = vpop.f32.mrf.mxu1 }
 0x4fb   : > { %v3449_v45 = vadd.f32 %v4232_v22, %v3375_v12  ;;  %v3370_v14 = vadd.f32 %v5915_v31, %v3369_v49  ;;  %v4241_v49 = vld [vmem:[%s4366_s20 + $0xe0] sm:$0xff] }
 0x4fd   : > { %v3481_v10 = vsel %vm364_vm0, %v3449_v45, %v3375_v12  ;;  %v3448_v32 = vadd.f32 %v4233_v60, %v3370_v14 }
 0x4fe   : > { %vm3513_vm12 = vcmp.gt.f32.partialorder %v3481_v10, 0.0  ;;  %v3546_v25 = vmul.f32 %v5921_v35, %v3481_v10 }
 0x4ff   : > { %v3480_v56 = vsel %vm364_vm0, %v3448_v32, %v3370_v14  ;;  %v4242_v32 = vld [vmem:[%s4366_s20 + $0xf8] sm:$0xff] }
 0x500   : > { %v3578_v5 = vsel %vm3513_vm12, %v3481_v10, %v3546_v25  ;;  %vm3512_vm13 = vcmp.gt.f32.partialorder %v3480_v56, 0.0  ;;  %v3545_v20 = vmul.f32 %v5921_v35, %v3480_v56 }
 0x501   : > { %3611 = vst.msk [vmem:[%s5932_s14 + $0xa8] sm:$0xff] %vm3589_vm1, %v3578_v5 }
 0x502   : > { %v3577_v37 = vsel %vm3512_vm13, %v3480_v56, %v3545_v20 }
 0x503   : > { %3610 = vst.msk [vmem:[%s5932_s14 + $0xa0] sm:$0xff] %vm3589_vm1, %v3577_v37 }
 0x508   : > { %v4173_v43 = vpop.f32.mrf.mxu1 }
 0x509   : > { %v3385_v63 = vadd.f32 %v4173_v43, %v5915_v31  ;;  %v4243_v43 = vld [vmem:[%s4366_s20 + $0xf0] sm:$0xff] }
 0x50a   : > { %v3379_v52 = vpop.f32.mrf.mxu1 }
 0x50b   : > { %v3451_v59 = vadd.f32 %v4234_v34, %v3385_v63  ;;  %v3380_v19 = vadd.f32 %v5915_v31, %v3379_v52 }
 0x50d   : > { %v3483_v48 = vsel %vm364_vm0, %v3451_v59, %v3385_v63  ;;  %v3450_v26 = vadd.f32 %v4235_v15, %v3380_v19 }
 0x50e   : > { %vm3515_vm15 = vcmp.gt.f32.partialorder %v3483_v48, 0.0  ;;  %v3548_v16 = vmul.f32 %v5921_v35, %v3483_v48 }
 0x50f   : > { %v3482_v13 = vsel %vm364_vm0, %v3450_v26, %v3380_v19 }
 0x510   : > { %v3580_v0 = vsel %vm3515_vm15, %v3483_v48, %v3548_v16  ;;  %vm3514_vm4 = vcmp.gt.f32.partialorder %v3482_v13, 0.0  ;;  %v3547_v61 = vmul.f32 %v5921_v35, %v3482_v13 }
 0x511   : > { %3613 = vst.msk [vmem:[%s5932_s14 + $0xb8] sm:$0xff] %vm3589_vm1, %v3580_v0 }
 0x512   : > { %v3579_v29 = vsel %vm3514_vm4, %v3482_v13, %v3547_v61 }
 0x513   : > { %3612 = vst.msk [vmem:[%s5932_s14 + $0xb0] sm:$0xff] %vm3589_vm1, %v3579_v29 }
 0x51c   : > { %v4176_v44 = vpop.f32.mrf.mxu1 }
 0x51d   : > { %v3395_v39 = vadd.f32 %v4176_v44, %v5915_v31 }
 0x51e   : > { %v3389_v1 = vpop.f32.mrf.mxu1 }
 0x51f   : > { %v3453_v18 = vadd.f32 %v4236_v46, %v3395_v39  ;;  %v3390_v42 = vadd.f32 %v5915_v31, %v3389_v1 }
 0x521   : > { %v3485_v36 = vsel %vm364_vm0, %v3453_v18, %v3395_v39  ;;  %v3452_v53 = vadd.f32 %v4237_v23, %v3390_v42 }
 0x522   : > { %vm3517_vm6 = vcmp.gt.f32.partialorder %v3485_v36, 0.0  ;;  %v3550_v58 = vmul.f32 %v5921_v35, %v3485_v36 }
 0x523   : > { %v3484_v57 = vsel %vm364_vm0, %v3452_v53, %v3390_v42 }
 0x524   : > { %v3582_v27 = vsel %vm3517_vm6, %v3485_v36, %v3550_v58  ;;  %vm3516_vm7 = vcmp.gt.f32.partialorder %v3484_v57, 0.0  ;;  %v3549_v47 = vmul.f32 %v5921_v35, %v3484_v57 }
 0x525   : > { %3615 = vst.msk [vmem:[%s5932_s14 + $0xc8] sm:$0xff] %vm3589_vm1, %v3582_v27 }
 0x526   : > { %v3581_v2 = vsel %vm3516_vm7, %v3484_v57, %v3549_v47 }
 0x527   : > { %3614 = vst.msk [vmem:[%s5932_s14 + $0xc0] sm:$0xff] %vm3589_vm1, %v3581_v2 }
 0x52c   : > { %v4179_v62 = vpop.f32.mrf.mxu1 }
 0x52d   : > { %v3405_v51 = vadd.f32 %v4179_v62, %v5915_v31 }
 0x52e   : > { %v3399_v38 = vpop.f32.mrf.mxu1 }
 0x52f   : > { %v3455_v11 = vadd.f32 %v4238_v4, %v3405_v51  ;;  %v3400_v55 = vadd.f32 %v5915_v31, %v3399_v38 }
 0x531   : > { %v3487_v50 = vsel %vm364_vm0, %v3455_v11, %v3405_v51  ;;  %v3454_v6 = vadd.f32 %v4239_v17, %v3400_v55  ;;  %v4182_v3 = vpop.f32.mrf.mxu1 }
 0x532   : > { %vm3519_vm8 = vcmp.gt.f32.partialorder %v3487_v50, 0.0  ;;  %v3552_v54 = vmul.f32 %v5921_v35, %v3487_v50  ;;  %v3415_v7 = vadd.f32 %v4182_v3, %v5915_v31 }
 0x533   : > { %v3486_v8 = vsel %vm364_vm0, %v3454_v6, %v3400_v55  ;;  %v3409_v40 = vpop.f32.mrf.mxu1 }
 0x534   : > { %v3584_v24 = vsel %vm3519_vm8, %v3487_v50, %v3552_v54  ;;  %vm3518_vm9 = vcmp.gt.f32.partialorder %v3486_v8, 0.0  ;;  %v3551_v21 = vmul.f32 %v5921_v35, %v3486_v8  ;;  %v3457_v33 = vadd.f32 %v4240_v28, %v3415_v7 }
 0x535   : > { %3617 = vst.msk [vmem:[%s5932_s14 + $0xd8] sm:$0xff] %vm3589_vm1, %v3584_v24  ;;  %v3410_v41 = vadd.f32 %v5915_v31, %v3409_v40 }
 0x536   : > { %v3583_v9 = vsel %vm3518_vm9, %v3486_v8, %v3551_v21  ;;  %v4185_v30 = vpop.f32.mrf.mxu1  ;;  %v3489_v12 = vsel %vm364_vm0, %v3457_v33, %v3415_v7 }
 0x537   : > { %3616 = vst.msk [vmem:[%s5932_s14 + $0xd0] sm:$0xff] %vm3589_vm1, %v3583_v9  ;;  %v3456_v22 = vadd.f32 %v4241_v49, %v3410_v41  ;;  %v3425_v45 = vadd.f32 %v4185_v30, %v5915_v31  ;;  %vm3521_vm2 = vcmp.gt.f32.partialorder %v3489_v12, 0.0  ;;  %v3554_v14 = vmul.f32 %v5921_v35, %v3489_v12 }
 0x538   : > { %v3419_v10 = vpop.f32.mrf.mxu1 }
 0x539   : > { %v3488_v60 = vsel %vm364_vm0, %v3456_v22, %v3410_v41  ;;  %v3459_v25 = vadd.f32 %v4242_v32, %v3425_v45  ;;  %v3420_v56 = vadd.f32 %v5915_v31, %v3419_v10  ;;  %v3586_v5 = vsel %vm3521_vm2, %v3489_v12, %v3554_v14 }
 0x53a   : > { %vm3520_vm3 = vcmp.gt.f32.partialorder %v3488_v60, 0.0  ;;  %v3553_v20 = vmul.f32 %v5921_v35, %v3488_v60  ;;  %3619 = vst.msk [vmem:[%s5932_s14 + $0xe8] sm:$0xff] %vm3589_vm1, %v3586_v5 }
 0x53b   : > { %v3491_v37 = vsel %vm364_vm0, %v3459_v25, %v3425_v45  ;;  %v3458_v63 = vadd.f32 %v4243_v43, %v3420_v56 }
 0x53c   : > { %v3585_v52 = vsel %vm3520_vm3, %v3488_v60, %v3553_v20  ;;  %vm3523_vm5 = vcmp.gt.f32.partialorder %v3491_v37, 0.0  ;;  %v3556_v34 = vmul.f32 %v5921_v35, %v3491_v37 }
 0x53d   : > { %3618 = vst.msk [vmem:[%s5932_s14 + $0xe0] sm:$0xff] %vm3589_vm1, %v3585_v52  ;;  %v3490_v31 = vsel %vm364_vm0, %v3458_v63, %v3420_v56 }
 0x53e   : > { %v3588_v59 = vsel %vm3523_vm5, %v3491_v37, %v3556_v34  ;;  %vm3522_vm10 = vcmp.gt.f32.partialorder %v3490_v31, 0.0  ;;  %v3555_v19 = vmul.f32 %v5921_v35, %v3490_v31 }
 0x53f   : > { %3621 = vst.msk [vmem:[%s5932_s14 + $0xf8] sm:$0xff] %vm3589_vm1, %v3588_v59 }
 0x540   : > { %v3587_v48 = vsel %vm3522_vm10, %v3490_v31, %v3555_v19 }
 0x541   : > { %3620 = vst.msk [vmem:[%s5932_s14 + $0xf0] sm:$0xff] %vm3589_vm1, %v3587_v48 }
 0x542 PF: > { %s19_s27 = sadd.s32 1, %s4269_s27  }
 0x543   : > { %p16_p1 = scmp.ge.s32.totalorder %s19_s27, 4  }
 0x545   :  { %18 = sbr.rel (!%p16_p1) target bundleno = 1 (0x1), region = 87 }
 0x54a   :  { %3643 = vsyncpa [#allocation3], 1 }
 0x54b   :  { %3645 = vsyncpa [#allocation3 + $0x1], 1 }

</bundles_post_ra>
